<compile_context>
chip_gen: v7x
topology: tpu7x:2x2x1
jax: 0.10.0
libtpu: 0.0.40
codegen_flags: <defaults>
</compile_context>

<pallas_src>
import functools

import jax
import jax.numpy as jnp
from jax.experimental import pallas as pl
from jax.experimental.pallas import tpu as pltpu

TIME_HORIZON = 2.0   # stands in for args.time_horizon
DATA_SIZE = 10       # stands in for args.data_size (length of batch_u)

# 256 rows/step fills the 2x256x256 MXU on v6e/v7x; 128 is already enough on
# v5e (4x128x128) but 256 is also fine there.
ROW_TILE = 256


def _odefunc_mlp_kernel(x_ref, w1_ref, b1_ref, w2_ref, b2_ref, w3_ref, b3_ref,
                        o_ref):
  """Transposed MLP: features on sublanes, rows on lanes (lane-dense output).

  x_ref : (8, TR)   rows 0:3 = state y, rows 3:5 = control u, rows 5:8 = 0
  w1    : (50, 8)   zero-padded columns 5:8
  w2    : (20, 50)
  w3    : (3, 20)
  o_ref : (3, TR)
  """
  x = x_ref[...]                                                    # (8, TR)
  h1 = jnp.sin(
      jnp.dot(w1_ref[...], x, preferred_element_type=jnp.float32)
      + b1_ref[...])                                                # (50, TR)
  h2 = jnp.sin(
      jnp.dot(w2_ref[...], h1, preferred_element_type=jnp.float32)
      + b2_ref[...])                                                # (20, TR)
  out = (jnp.dot(w3_ref[...], h2, preferred_element_type=jnp.float32)
         + b3_ref[...])                                             # (3, TR)
  o_ref[...] = out.astype(o_ref.dtype)


def _resident(shape):
  """Whole-array block, constant index_map -> DMA'd once, VMEM-resident."""
  return pl.BlockSpec(shape, lambda i: (0,) * len(shape))


@functools.partial(jax.jit, static_argnames=("time_horizon",))
def odefunc_forward_steps(ts, ys, batch_u, params, *,
                          time_horizon=TIME_HORIZON):
  """Evaluate ODEFunc.forward for N (t_i, y_i) pairs in one fused kernel.

  ts:      (N,)        query times
  ys:      (N, B, 3)   states
  batch_u: (T, B, 2)   control inputs over the time grid
  returns: (N, B, 3)   dy/dt for every query
  """
  N, B, SD = ys.shape
  T = batch_u.shape[0]
  w1p, b1, w2, b2, w3, b3 = params

  # time_index = int(t * (T - 1) / time_horizon), device-side (traced-t safe).
  # Clipped so an out-of-range t cannot index OOB.
  # NOTE: computed in float32; near exact grid boundaries this could differ by
  # 1 from PyTorch's double-precision int() -- acceptable for this model.
  scale = jnp.float32((T - 1) / time_horizon)
  time_idx = jnp.clip((ts.astype(jnp.float32) * scale).astype(jnp.int32),
                      0, T - 1)

  # Plain-XLA gather + concat (review opt 2): tiny, removes per-step DMAs.
  u = batch_u[time_idx]                                      # (N, B, 2)
  x = jnp.concatenate([ys, u], axis=-1).reshape(N * B, 5)    # (N*B, 5)

  # Transposed, padded, lane-dense layout: (8 features, R_pad rows).
  R = N * B
  R_pad = ((R + ROW_TILE - 1) // ROW_TILE) * ROW_TILE
  x_t = jnp.zeros((8, R_pad), jnp.float32).at[:5, :R].set(x.T)

  grid = (R_pad // ROW_TILE,)
  out_t = pl.pallas_call(
      _odefunc_mlp_kernel,
      out_shape=jax.ShapeDtypeStruct((3, R_pad), jnp.float32),
      grid_spec=pltpu.PrefetchScalarGridSpec(
          num_scalar_prefetch=0,
          grid=grid,
          in_specs=[
              pl.BlockSpec((8, ROW_TILE), lambda i: (0, i)),   # x.T row tile
              _resident((50, 8)),    # w1 (zero-padded input features 5->8)
              _resident((50, 1)),    # b1
              _resident((20, 50)),   # w2
              _resident((20, 1)),    # b2
              _resident((3, 20)),    # w3
              _resident((3, 1)),     # b3
          ],
          out_specs=pl.BlockSpec((3, ROW_TILE), lambda i: (0, i)),
      ),
      compiler_params=pltpu.CompilerParams(
          # Row tiles are independent; splits across TCs only when there is
          # more than one 256-row tile (>=512 rows), per review.
          dimension_semantics=("parallel",)),
  )(x_t, w1p, b1, w2, b2, w3, b3)

  # Drop padded rows, back to (N, B, 3).  Cheap XLA layout plumbing.
  return out_t[:, :R].T.reshape(N, B, 3)


def _mlp_xla(x, params):
  """Plain-XLA MLP (same math as the PyTorch nn.Sequential)."""
  w1p, b1, w2, b2, w3, b3 = params
  w1 = w1p[:, :5]                                   # strip the feature padding
  h1 = jnp.sin(x @ w1.T + b1[:, 0])
  h2 = jnp.sin(h1 @ w2.T + b2[:, 0])
  return h2 @ w3.T + b3[:, 0]


def odefunc_forward(t, y, batch_u, params, time_horizon=TIME_HORIZON):
  """Single ODEFunc.forward(t, y); t may be a traced JAX scalar.

  Per the perf review (opt 9): at N=1 / ~20 kFLOP a pallas_call is pure launch
  overhead, so the single-evaluation path uses fused XLA ops with identical
  math.  Batched solver steps should go through odefunc_forward_steps.
  """
  T = batch_u.shape[0]
  scale = jnp.float32((T - 1) / time_horizon)
  idx = jnp.clip((jnp.asarray(t, jnp.float32) * scale).astype(jnp.int32),
                 0, T - 1)
  u = batch_u[idx]                                  # (B, 2)
  x = jnp.concatenate([y, u], axis=-1)              # (B, 5)
  return _mlp_xla(x, params)


def init_params(key):
  """nn.init.normal_(weight, std=0.1); bias = 0.  PyTorch (out, in) layout.

  The first-layer weight is zero-padded from (50, 5) to (50, 8) so the kernel
  runs a single fused dot on the 8-feature padded input."""
  k1, k2, k3 = jax.random.split(key, 3)
  w1 = 0.1 * jax.random.normal(k1, (50, 5), dtype=jnp.float32)
  w1p = jnp.pad(w1, ((0, 0), (0, 3)))               # (50, 8)
  b1 = jnp.zeros((50, 1), dtype=jnp.float32)
  w2 = 0.1 * jax.random.normal(k2, (20, 50), dtype=jnp.float32)
  b2 = jnp.zeros((20, 1), dtype=jnp.float32)
  w3 = 0.1 * jax.random.normal(k3, (3, 20), dtype=jnp.float32)
  b3 = jnp.zeros((3, 1), dtype=jnp.float32)
  return (w1p, b1, w2, b2, w3, b3)


def _reference_forward_steps(ts, ys, batch_u, params,
                             time_horizon=TIME_HORIZON):
  """Pure-JAX reference (same math as the PyTorch module)."""
  T = batch_u.shape[0]
  scale = jnp.float32((T - 1) / time_horizon)
  idx = jnp.clip((ts.astype(jnp.float32) * scale).astype(jnp.int32), 0, T - 1)
  u = batch_u[idx]                                  # (N, B, 2)
  x = jnp.concatenate([ys, u], axis=-1)             # (N, B, 5)
  return _mlp_xla(x, params)


if __name__ == "__main__":
  key = jax.random.PRNGKey(0)
  k_params, k_y, k_u, k_t = jax.random.split(key, 4)

  B = 8        # batch of Dubins-car states
  T = DATA_SIZE
  N = 16       # number of fused ODEFunc.forward evaluations (solver steps)

  params = init_params(k_params)
  ys = jax.random.normal(k_y, (N, B, 3), dtype=jnp.float32)          # states (x, y, theta)
  batch_u = jax.random.normal(k_u, (T, B, 2), dtype=jnp.float32)     # controls over time grid
  ts = jax.random.uniform(k_t, (N,), jnp.float32, 0.0, TIME_HORIZON) # query times

  # Fused multi-step evaluation: one lane-dense Pallas block covering all N*B
  # rows, weights resident in VMEM.
  out = odefunc_forward_steps(ts, ys, batch_u, params,
                              time_horizon=TIME_HORIZON)
  out = jax.block_until_ready(out)
  ref = _reference_forward_steps(ts, ys, batch_u, params,
                                 time_horizon=TIME_HORIZON)
  assert out.shape == (N, B, 3), out.shape
  assert jnp.allclose(out, ref, atol=1e-5, rtol=1e-5), "mismatch vs reference"

  # Single-evaluation path with a *traced* t inside jit (the original
  # `int(float(t) * ...)` failure mode) -- must trace and match.
  single = jax.jit(lambda t, y: odefunc_forward(t, y, batch_u, params))(
      ts[0], ys[0])
  single = jax.block_until_ready(single)
  assert single.shape == (B, 3), single.shape
  assert jnp.allclose(single, ref[0], atol=1e-5, rtol=1e-5), "single-step mismatch"

  print("KERNEL_OK")
</pallas_src>

<mosaic_0001>
module attributes {stable_mosaic.version = 11 : i64} {
  func.func @_odefunc_mlp_kernel(%arg0: i32, %arg1: memref<8x256xf32, #tpu.memory_space<vmem>>, %arg2: memref<50x8xf32, #tpu.memory_space<vmem>>, %arg3: memref<50x1xf32, #tpu.memory_space<vmem>>, %arg4: memref<20x50xf32, #tpu.memory_space<vmem>>, %arg5: memref<20x1xf32, #tpu.memory_space<vmem>>, %arg6: memref<3x20xf32, #tpu.memory_space<vmem>>, %arg7: memref<3x1xf32, #tpu.memory_space<vmem>>, %arg8: memref<3x256xf32, #tpu.memory_space<vmem>>) attributes {dimension_semantics = [#tpu.dimension_semantics<parallel>], iteration_bounds = array<i64: 1>, scalar_prefetch = 0 : i64, scratch_operands = 0 : i64, tpu.core_type = #tpu.core_type<tc>, window_params = [{transform_indices = @transform_0, window_bounds = array<i64: 8, 256>}, {pipeline_mode = #tpu.pipeline_mode<synchronous>, transform_indices = @transform_1, window_bounds = array<i64: 50, 8>}, {pipeline_mode = #tpu.pipeline_mode<synchronous>, transform_indices = @transform_2, window_bounds = array<i64: 50, 1>}, {pipeline_mode = #tpu.pipeline_mode<synchronous>, transform_indices = @transform_3, window_bounds = array<i64: 20, 50>}, {pipeline_mode = #tpu.pipeline_mode<synchronous>, transform_indices = @transform_4, window_bounds = array<i64: 20, 1>}, {pipeline_mode = #tpu.pipeline_mode<synchronous>, transform_indices = @transform_5, window_bounds = array<i64: 3, 20>}, {pipeline_mode = #tpu.pipeline_mode<synchronous>, transform_indices = @transform_6, window_bounds = array<i64: 3, 1>}, {transform_indices = @transform_7, window_bounds = array<i64: 3, 256>}]} {
    %c0 = arith.constant 0 : index
    %c0_0 = arith.constant 0 : index
    %0 = vector.load %arg1[%c0, %c0_0] : memref<8x256xf32, #tpu.memory_space<vmem>>, vector<8x256xf32>
    %c0_1 = arith.constant 0 : index
    %c0_2 = arith.constant 0 : index
    %1 = vector.load %arg2[%c0_1, %c0_2] : memref<50x8xf32, #tpu.memory_space<vmem>>, vector<50x8xf32>
    %cst = arith.constant dense<0.000000e+00> : vector<50x256xf32>
    %2 = tpu.matmul %1, %0, %cst {dimension_numbers = #tpu.dot_dimension_numbers<[1], [0], [0], [1], [0, 0, 1, 1], [], []>} : vector<50x8xf32>, vector<8x256xf32>, vector<50x256xf32> -> vector<50x256xf32>
    %c0_3 = arith.constant 0 : index
    %c0_4 = arith.constant 0 : index
    %3 = vector.load %arg3[%c0_3, %c0_4] : memref<50x1xf32, #tpu.memory_space<vmem>>, vector<50x1xf32>
    %4 = vector.broadcast %3 : vector<50x1xf32> to vector<50x256xf32>
    %5 = arith.addf %2, %4 : vector<50x256xf32>
    %6 = math.sin %5 : vector<50x256xf32>
    %c0_5 = arith.constant 0 : index
    %c0_6 = arith.constant 0 : index
    %7 = vector.load %arg4[%c0_5, %c0_6] : memref<20x50xf32, #tpu.memory_space<vmem>>, vector<20x50xf32>
    %cst_7 = arith.constant dense<0.000000e+00> : vector<20x256xf32>
    %8 = tpu.matmul %7, %6, %cst_7 {dimension_numbers = #tpu.dot_dimension_numbers<[1], [0], [0], [1], [0, 0, 1, 1], [], []>} : vector<20x50xf32>, vector<50x256xf32>, vector<20x256xf32> -> vector<20x256xf32>
    %c0_8 = arith.constant 0 : index
    %c0_9 = arith.constant 0 : index
    %9 = vector.load %arg5[%c0_8, %c0_9] : memref<20x1xf32, #tpu.memory_space<vmem>>, vector<20x1xf32>
    %10 = vector.broadcast %9 : vector<20x1xf32> to vector<20x256xf32>
    %11 = arith.addf %8, %10 : vector<20x256xf32>
    %12 = math.sin %11 : vector<20x256xf32>
    %c0_10 = arith.constant 0 : index
    %c0_11 = arith.constant 0 : index
    %13 = vector.load %arg6[%c0_10, %c0_11] : memref<3x20xf32, #tpu.memory_space<vmem>>, vector<3x20xf32>
    %cst_12 = arith.constant dense<0.000000e+00> : vector<3x256xf32>
    %14 = tpu.matmul %13, %12, %cst_12 {dimension_numbers = #tpu.dot_dimension_numbers<[1], [0], [0], [1], [0, 0, 1, 1], [], []>} : vector<3x20xf32>, vector<20x256xf32>, vector<3x256xf32> -> vector<3x256xf32>
    %c0_13 = arith.constant 0 : index
    %c0_14 = arith.constant 0 : index
    %15 = vector.load %arg7[%c0_13, %c0_14] : memref<3x1xf32, #tpu.memory_space<vmem>>, vector<3x1xf32>
    %16 = vector.broadcast %15 : vector<3x1xf32> to vector<3x256xf32>
    %17 = arith.addf %14, %16 : vector<3x256xf32>
    %c0_15 = arith.constant 0 : index
    %c0_16 = arith.constant 0 : index
    %18 = vector.load %arg8[%c0_15, %c0_16] : memref<3x256xf32, #tpu.memory_space<vmem>>, vector<3x256xf32>
    tpu.vector_store %arg8[%c0_15, %c0_16], %17 {strides = array<i32>} : memref<3x256xf32, #tpu.memory_space<vmem>>, vector<3x256xf32>,
    return
  }
  func.func @transform_0(%arg0: i32) -> (i32, i32) {
    %c0_i32 = arith.constant 0 : i32
    %c0_i32_0 = arith.constant 0 : i32
    return %c0_i32, %arg0 : i32, i32
  }
  func.func @transform_1(%arg0: i32) -> (i32, i32) {
    %c0_i32 = arith.constant 0 : i32
    %c0_i32_0 = arith.constant 0 : i32
    %c0_i32_1 = arith.constant 0 : i32
    return %c0_i32, %c0_i32_0 : i32, i32
  }
  func.func @transform_2(%arg0: i32) -> (i32, i32) {
    %c0_i32 = arith.constant 0 : i32
    %c0_i32_0 = arith.constant 0 : i32
    %c0_i32_1 = arith.constant 0 : i32
    return %c0_i32, %c0_i32_0 : i32, i32
  }
  func.func @transform_3(%arg0: i32) -> (i32, i32) {
    %c0_i32 = arith.constant 0 : i32
    %c0_i32_0 = arith.constant 0 : i32
    %c0_i32_1 = arith.constant 0 : i32
    return %c0_i32, %c0_i32_0 : i32, i32
  }
  func.func @transform_4(%arg0: i32) -> (i32, i32) {
    %c0_i32 = arith.constant 0 : i32
    %c0_i32_0 = arith.constant 0 : i32
    %c0_i32_1 = arith.constant 0 : i32
    return %c0_i32, %c0_i32_0 : i32, i32
  }
  func.func @transform_5(%arg0: i32) -> (i32, i32) {
    %c0_i32 = arith.constant 0 : i32
    %c0_i32_0 = arith.constant 0 : i32
    %c0_i32_1 = arith.constant 0 : i32
    return %c0_i32, %c0_i32_0 : i32, i32
  }
  func.func @transform_6(%arg0: i32) -> (i32, i32) {
    %c0_i32 = arith.constant 0 : i32
    %c0_i32_0 = arith.constant 0 : i32
    %c0_i32_1 = arith.constant 0 : i32
    return %c0_i32, %c0_i32_0 : i32, i32
  }
  func.func @transform_7(%arg0: i32) -> (i32, i32) {
    %c0_i32 = arith.constant 0 : i32
    %c0_i32_0 = arith.constant 0 : i32
    return %c0_i32, %arg0 : i32, i32
  }
}

</mosaic_0001>

<bundles_post_ra>
// kernel: odefunc_forward_steps.1
= control target key start
LH: loop header
LB: loop body
LE: loop exit
PB: predicated region body
PF: predicated region fallthrough
CT: control target
= control target key end

     0   :  { %v4806_v2 = vmov 0.0   ;;  %vm77_vm0 = vcmask 64512   ;;  %v2787_v4 = vmov 0   ;;  %v4823_v58 = vmov 683565275   ;;  %s4798_s0 = inlined_call_operand.vmem [shape: f32[8,256], index: 0, kind: input, shape index: {}]   ;;  %s4799_s1 = inlined_call_operand.vmem [shape: f32[50,8], index: 1, kind: input, shape index: {}]   ;;  %s4800_s2 = inlined_call_operand.vmem [shape: f32[50,1], index: 2, kind: input, shape index: {}]   ;;  %s4801_s4 = inlined_call_operand.vmem [shape: f32[20,1], index: 4, kind: input, shape index: {}]   ;;  %s4802_s6 = inlined_call_operand.vmem [shape: f32[3,1], index: 6, kind: input, shape index: {}]   ;;  %s4803_s3 = inlined_call_operand.vmem [shape: f32[20,50], index: 3, kind: input, shape index: {}]   ;;  %s4804_s5 = inlined_call_operand.vmem [shape: f32[3,20], index: 5, kind: input, shape index: {}]   ;;  %s4805_s7 = inlined_call_operand.vmem [shape: f32[3,256], index: 7, kind: output, shape index: {}]  }
   0x1   :  { %v27_v0 = vld [vmem:[%s4798_s0 + $0x8] sm:$0xff]  ;;  %v26_v1 = vld [vmem:[%s4798_s0] sm:$0xff]  ;;  %163 = vmatprep.mubr.f32.mxu0 %v4806_v2  ;;  %2704 = vset.pattern.permute.xlu0 %v2787_v4  ;;  %v37_v6 = vld [vmem:[%s4800_s2 + $0x10] sm:$0xff]  ;;  %v4816_v60 = vmov 2475754826  }
   0x2   :  { %v28_v3 = vld [vmem:[%s4799_s1] sm:$0xff]  ;;  %99 = vmatprep.subr.mxu0 %v27_v0  ;;  %2705 = vset.pattern.permute.xlu1 %v2787_v4  ;;  %v29_v7 = vld [vmem:[%s4799_s1 + $0x8] sm:$0xff]  ;;  %v38_v9 = vld [vmem:[%s4800_s2 + $0x18] sm:$0xff] }
   0x3   :  { %100 = vmatpush1.msra.mxu0 %v26_v1  ;;  %1764 = vmatprep.mubr.f32.mxu1 %v4806_v2  ;;  %v35_v5 = vld [vmem:[%s4800_s2] sm:$0xff]  ;;  %v36_v8 = vld [vmem:[%s4800_s2 + $0x8] sm:$0xff]  ;;  %v30_v10 = vld [vmem:[%s4799_s1 + $0x10] sm:$0xff]  ;;  %v4814_v1 = vmov 2131351028  }
   0x4   :  { %2505 = vmatmul.mubr.msk.f32.vlgmr.msra.gmra.mrb[0].mxu0 %vm77_vm0, %v28_v3  ;;  %44 = vperm.xlu0 %2704, %v35_v5   ;;  %v39_v11 = vld [vmem:[%s4800_s2 + $0x20] sm:$0xff]  ;;  %v40_v12 = vld [vmem:[%s4800_s2 + $0x28] sm:$0xff]  ;;  %v31_v13 = vld [vmem:[%s4799_s1 + $0x18] sm:$0xff]  ;;  %v4812_v5 = vmov 2102212464  }
   0x5   :  { %169 = vmatprep.mubr.f32.mxu0 %v4806_v2  ;;  %54 = vperm.xlu1 %2705, %v37_v6   ;;  %v41_v14 = vld [vmem:[%s4800_s2 + $0x30] sm:$0x3]  ;;  %v1665_v15 = vld [vmem:[%s4801_s4] sm:$0xff]  ;;  %v1666_v17 = vld [vmem:[%s4801_s4 + $0x8] sm:$0xff] }
   0x6   :  { %v32_v16 = vld [vmem:[%s4799_s1 + $0x20] sm:$0xff]  ;;  %v1667_v18 = vld [vmem:[%s4801_s4 + $0x10] sm:$0xf]  ;;  %v33_v19 = vld [vmem:[%s4799_s1 + $0x28] sm:$0xff] }
   0x7   :  { %v2408_v20 = vld [vmem:[%s4802_s6] sm:$0x7]  ;;  %v34_v21 = vld [vmem:[%s4799_s1 + $0x30] sm:$0x3] }
   0x8   :  { %2506 = vmatmul.mubr.msk.f32.gmra.mrb[2].mxu0 %vm77_vm0, %v29_v7  ;;  %49 = vperm.xlu0 %2704, %v36_v8  }
   0x9   :  { %175 = vmatprep.mubr.f32.mxu0 %v4806_v2  ;;  %59 = vperm.xlu1 %2705, %v38_v9   ;;  %v4821_v9 = vmov 920167782  }
   0xc   :  { %2507 = vmatmul.mubr.msk.f32.gmra.mrb[4].mxu0 %vm77_vm0, %v30_v10  ;;  %64 = vperm.xlu0 %2704, %v39_v11  }
   0xd   :  { %181 = vmatprep.mubr.f32.mxu0 %v4806_v2  ;;  %69 = vperm.xlu1 %2705, %v40_v12   ;;  %v4819_v12 = vmov 1326507024  }
  0x10   :  { %2508 = vmatmul.mubr.msk.f32.gmra.mrb[6].mxu0 %vm77_vm0, %v31_v13  ;;  %74 = vperm.xlu0 %2704, %v41_v14  }
  0x11   :  { %187 = vmatprep.mubr.f32.mxu0 %v4806_v2  ;;  %1670 = vperm.xlu1 %2705, %v1665_v15  }
  0x14   :  { %2509 = vmatmul.mubr.msk.f32.gmra.mrb[8].mxu0 %vm77_vm0, %v32_v16  ;;  %1675 = vperm.xlu0 %2704, %v1666_v17  }
  0x15   :  { %193 = vmatprep.mubr.f32.mxu0 %v4806_v2  ;;  %1680 = vperm.xlu1 %2705, %v1667_v18  }
  0x18   :  { %2510 = vmatmul.mubr.msk.f32.gmra.mrb[10].mxu0 %vm77_vm0, %v33_v19  ;;  %2411 = vperm.xlu0 %2704, %v2408_v20  }
  0x19   :  { %199 = vmatprep.mubr.f32.mxu0 %v4806_v2 }
  0x1c   :  { %2511 = vmatmul.mubr.msk.f32.gmra.mrb[12].mxu0 %vm77_vm0, %v34_v21 }
  0x83   :  { %v45_v22 = vpop.permute.xlu0 %44 }
  0x87   :  { %v50_v29 = vpop.permute.xlu0 %49 }
  0xd7   :  { %v165_v23 = vpop.f32.mrb[0].mxu0 }
  0xd8   :  { %v2909_v24 = vadd.f32 %v165_v23, %v45_v22  ;;  %v167_v25 = vpop.f32.mrb[1].mxu0 }
  0xd9   :  { %v2911_v26 = vadd.f32 %v167_v25, %v45_v22 }
  0xda   :  { %4898 = vst [vmem:[#allocation2_spill] sm:$0xff] %v2909_v24  ;;  %v4809_v27 = vand.u32 2147483647, %v2909_v24  ;;  %v209_v28 = vand.u32 2139095040, %v2909_v24 }
  0xdb   :  { %v313_v30 = vand.u32 2139095040, %v2911_v26  ;;  %v171_v31 = vpop.f32.mrb[2].mxu0 }
  0xdc   :  { %v210_v32 = vshrl.u32 %v209_v28, 23  ;;  %v2916_v33 = vadd.f32 %v171_v31, %v50_v29  ;;  %v173_v34 = vpop.f32.mrb[3].mxu0  ;;  %v213_v35 = vand.u32 8388607, %v4809_v27 }
  0xdd   :  { %v314_v37 = vshrl.u32 %v313_v30, 23  ;;  %v2920_v38 = vadd.f32 %v173_v34, %v50_v29 }
  0xde   :  { %v2512_v36 = vadd.s32 4294967169, %v210_v32  ;;  %v417_v39 = vand.u32 2139095040, %v2916_v33  ;;  %v214_v43 = vor.u32 8388608, %v213_v35  ;;  %v4808_v45 = vand.u32 2147483647, %v2916_v33 }
  0xdf   :  { %4899 = vst [vmem:[#allocation3_spill] sm:$0xff] %v2920_v38  ;;  %v2923_v40 = vpop.f32.mrb[4].mxu0  ;;  %v2516_v44 = vadd.s32 4294967169, %v314_v37  ;;  %v521_v46 = vand.u32 2139095040, %v2920_v38 }
  0xe0   :  { %v216_v41 = vadd.s32 1, %v2512_v36  ;;  %v2925_v42 = vpop.f32.mrb[5].mxu0  ;;  %v418_v48 = vshrl.u32 %v417_v39, 23  ;;  %v2933_v52 = vshll.u32 %v214_v43, 8  ;;  %v421_v55 = vand.u32 8388607, %v4808_v45 }
  0xe1   :  { %v320_v54 = vadd.s32 1, %v2516_v44  ;;  %v522_v56 = vshrl.u32 %v521_v46, 23 }
  0xe2   :  { %vm217_vm1 = vcmp.gt.s32.totalorder %v216_v41, 0  ;;  %v2520_v62 = vadd.s32 4294967169, %v418_v48  ;;  %v422_v17 = vor.u32 8388608, %v421_v55  ;;  %v2965_v48 = vpop.permute.xlu1 %54 }
  0xe3   :  { %v218_v47 = vsel %vm217_vm1, %v216_v41, 0  ;;  %v2929_v49 = vpop.f32.mrb[6].mxu0  ;;  %vm321_vm6 = vcmp.gt.s32.totalorder %v320_v54, 0 }
  0xe4   :  { %v220_v50 = vand.u32 31, %v218_v47  ;;  %v2931_v51 = vpop.f32.mrb[7].mxu0  ;;  %v219_v57 = vshrl.u32 %v218_v47, 5  ;;  %v424_v23 = vadd.s32 1, %v2520_v62  ;;  %v2963_v46 = vsel %vm321_vm6, %v320_v54, 0 }
  0xe5   :  { %v2524_v47 = vadd.s32 4294967169, %v522_v56  ;;  %v2977_v54 = vshll.u32 %v422_v17, 8 }
  0xe6   :  { %v221_v53 = vsub.s32 32, %v220_v50  ;;  %v223_v59 = vshll.u32 %v4823_v58, %v220_v50  ;;  %v226_v61 = vshll.u32 %v4816_v60, %v220_v50  ;;  %v229_v4 = vshll.u32 %v4814_v1, %v220_v50 }
  0xe7   :  { %v2939_v63 = vpop.f32.mrb[8].mxu0  ;;  %v232_v8 = vshll.u32 %v4812_v5, %v220_v50  ;;  %v235_v11 = vshll.u32 %v4821_v9, %v220_v50  ;;  %vm238_vm2 = vcmp.lt.s32.totalorder %v219_v57, 1  ;;  %vm241_vm3 = vcmp.lt.s32.totalorder %v219_v57, 4 }
  0xe8   :  { %v224_v0 = vshrl.u32 %v4816_v60, %v221_v53  ;;  %v227_v3 = vshrl.u32 %v4814_v1, %v221_v53  ;;  %v230_v6 = vshrl.u32 %v4812_v5, %v221_v53  ;;  %v2945_v7 = vpop.f32.mrb[9].mxu0  ;;  %v233_v10 = vshrl.u32 %v4821_v9, %v221_v53 }
  0xe9   :  { %v236_v13 = vshrl.u32 %v4819_v12, %v221_v53  ;;  %v222_v25 = vshrl.u32 %v4823_v58, %v221_v53  ;;  %vm240_vm4 = vcmp.lt.s32.totalorder %v219_v57, 3  ;;  %vm239_vm5 = vcmp.lt.s32.totalorder %v219_v57, 2 }
  0xea   :  { %v225_v14 = vor.u32 %v224_v0, %v223_v59  ;;  %v228_v15 = vor.u32 %v227_v3, %v226_v61  ;;  %v231_v16 = vor.u32 %v230_v6, %v229_v4  ;;  %v234_v18 = vor.u32 %v233_v10, %v232_v8 }
  0xeb   :  { %v237_v19 = vor.u32 %v236_v13, %v235_v11  ;;  %v2952_v32 = vpop.f32.mrb[10].mxu0  ;;  %vm425_vm7 = vcmp.gt.s32.totalorder %v424_v23, 0  ;;  %v2969_v57 = vadd.f32 %v2923_v40, %v2965_v48  ;;  %v2975_v61 = vand.u32 31, %v2963_v46 }
  0xec   :  { %v243_v20 = vsel %vm241_vm3, %v231_v16, 2102212464  ;;  %v246_v21 = vsel %vm238_vm2, %v225_v14, %v228_v15  ;;  %v250_v22 = vsel %vm238_vm2, %v228_v15, %v231_v16  ;;  %v247_v28 = vsel %vm241_vm3, %v234_v18, 920167782 }
  0xed   :  { %v251_v29 = vsel %vm241_vm3, %v237_v19, 1326507024  ;;  %v248_v30 = vsel %vm240_vm4, %v231_v16, %v247_v28  ;;  %v242_v34 = vsel %vm238_vm2, %v222_v25, %v225_v14  ;;  %v244_v35 = vsel %vm240_vm4, %v228_v15, %v243_v20  ;;  %4900 = vst [vmem:[#allocation4_spill] sm:$0xff] %v2969_v57 }
  0xee   :  { %v252_v31 = vsel %vm240_vm4, %v234_v18, %v251_v29  ;;  %v249_v36 = vsel %vm239_vm5, %v246_v21, %v248_v30  ;;  %v245_v50 = vsel %vm239_vm5, %v242_v34, %v244_v35  ;;  %v426_v53 = vsel %vm425_vm7, %v424_v23, 0 }
  0xef   :  { %v253_v37 = vsel %vm239_vm5, %v250_v22, %v252_v31  ;;  %v2959_v43 = vmul.u32.u64.low %v2933_v52, %v249_v36  ;;  %v2960_v44 = vmul.u32.u64.high %v2933_v52, %v249_v36, %v2959_v43  ;;  %v428_v55 = vand.u32 31, %v426_v53 }
  0xf0   :  { %v2955_v39 = vmul.u32.u64.low %v2933_v52, %v253_v37  ;;  %v2956_v41 = vmul.u32.u64.high %v2933_v52, %v253_v37, %v2955_v39  ;;  %v261_v56 = vmul.u32 %v2933_v52, %v245_v50  ;;  %v427_v62 = vshrl.u32 %v426_v53, 5 }
  0xf1   :  { %v264_v59 = vadd.s32 1, %v2960_v44  ;;  %v429_v0 = vsub.s32 32, %v428_v55  ;;  %v528_v3 = vadd.s32 1, %v2524_v47  ;;  %v431_v40 = vshll.u32 %v4823_v58, %v428_v55 }
  0xf2   :  { %vm263_vm8 = vc.u32 %v2956_v41, %v2959_v43  ;;  %v434_v6 = vshll.u32 %v4816_v60, %v428_v55  ;;  %v437_v8 = vshll.u32 %v4814_v1, %v428_v55  ;;  %v440_v14 = vshll.u32 %v4812_v5, %v428_v55 }
  0xf3   :  { %v265_v4 = vsel %vm263_vm8, %v264_v59, %v2960_v44  ;;  %v432_v11 = vshrl.u32 %v4816_v60, %v429_v0  ;;  %v435_v13 = vshrl.u32 %v4814_v1, %v429_v0  ;;  %v438_v52 = vshrl.u32 %v4812_v5, %v429_v0 }
  0xf4   :  { %v266_v10 = vadd.s32 %v265_v4, %v261_v56  ;;  %v441_v15 = vshrl.u32 %v4821_v9, %v429_v0  ;;  %v443_v16 = vshll.u32 %v4821_v9, %v428_v55  ;;  %v444_v17 = vshrl.u32 %v4819_v12, %v429_v0 }
  0xf5   :  { %v433_v19 = vor.u32 %v432_v11, %v431_v40  ;;  %v436_v20 = vor.u32 %v435_v13, %v434_v6  ;;  %vm446_vm9 = vcmp.lt.s32.totalorder %v427_v62, 1  ;;  %v430_v21 = vshrl.u32 %v4823_v58, %v429_v0  ;;  %v3011_v40 = vpop.f32.mrb[11].mxu0 }
  0xf6   :  { %v267_v18 = vadd.s32 536870912, %v266_v10  ;;  %v439_v22 = vor.u32 %v438_v52, %v437_v8  ;;  %v442_v23 = vor.u32 %v441_v15, %v440_v14  ;;  %v445_v25 = vor.u32 %v444_v17, %v443_v16 }
  0xf7   :  { %vm448_vm10 = vcmp.lt.s32.totalorder %v427_v62, 3  ;;  %vm449_vm11 = vcmp.lt.s32.totalorder %v427_v62, 4  ;;  %v454_v29 = vsel %vm446_vm9, %v433_v19, %v436_v20  ;;  %vm447_vm12 = vcmp.lt.s32.totalorder %v427_v62, 2 }
  0xf8   :  { %v2992_v28 = vshrl.u32 %v267_v18, 30  ;;  %v451_v30 = vsel %vm449_vm11, %v439_v22, 2102212464  ;;  %v455_v31 = vsel %vm449_vm11, %v442_v23, 920167782  ;;  %v458_v34 = vsel %vm446_vm9, %v436_v20, %v439_v22 }
  0xf9   :  { %v459_v35 = vsel %vm449_vm11, %v445_v25, 1326507024  ;;  %v456_v37 = vsel %vm448_vm10, %v439_v22, %v455_v31  ;;  %v450_v44 = vsel %vm446_vm9, %v430_v21, %v433_v19  ;;  %v452_v55 = vsel %vm448_vm10, %v436_v20, %v451_v30 }
  0xfa   :  { %4901 = vst [vmem:[#allocation5_spill] sm:$0xff] %v2992_v28  ;;  %v269_v36 = vshll.u32 %v2992_v28, 30  ;;  %v460_v39 = vsel %vm448_vm10, %v442_v23, %v459_v35  ;;  %v457_v47 = vsel %vm447_vm12, %v454_v29, %v456_v37  ;;  %v3015_v8 = vsub.s32 32, %v2975_v61 }
  0xfb   :  { %v461_v50 = vsel %vm447_vm12, %v458_v34, %v460_v39  ;;  %v3007_v0 = vmul.u32.u64.low %v2977_v54, %v457_v47  ;;  %v3008_v4 = vmul.u32.u64.high %v2977_v54, %v457_v47, %v3007_v0  ;;  %vm529_vm13 = vcmp.gt.s32.totalorder %v528_v3, 0 }
  0xfc   :  { %v3000_v53 = vsub.s32 %v266_v10, %v269_v36  ;;  %v3003_v59 = vmul.u32.u64.low %v2977_v54, %v461_v50  ;;  %v3004_v56 = vmul.u32.u64.high %v2977_v54, %v461_v50, %v3003_v59  ;;  %v625_v10 = vand.u32 2139095040, %v2969_v57 }
  0xfd   :  { %v453_v11 = vsel %vm447_vm12, %v450_v44, %v452_v55  ;;  %v4811_v13 = vand.u32 2147483647, %v2969_v57  ;;  %v3024_v14 = vadd.f32 %v2925_v42, %v2965_v48  ;;  %v472_v15 = vadd.s32 1, %v3008_v4 }
  0xfe   :  { %v272_v6 = vsub.s32 0, %v3000_v53  ;;  %vm471_vm14 = vc.u32 %v3004_v56, %v3007_v0  ;;  %v530_v16 = vsel %vm529_vm13, %v528_v3, 0  ;;  %v626_v17 = vshrl.u32 %v625_v10, 23 }
  0xff   :  { %v337_v18 = vshrl.u32 %v4821_v9, %v3015_v8  ;;  %v469_v62 = vmul.u32 %v2977_v54, %v453_v11  ;;  %v3032_v19 = vshrl.u32 %v2963_v46, 5  ;;  %v340_v20 = vshrl.u32 %v4819_v12, %v3015_v8  ;;  %v3070_v11 = vpop.permute.xlu1 %59 }
 0x100   :  { %v2513_v52 = vmin.u32 %v272_v6, %v3000_v53  ;;  %v473_v42 = vsel %vm471_vm14, %v472_v15, %v3008_v4  ;;  %v2528_v48 = vadd.s32 4294967169, %v626_v17  ;;  %v336_v21 = vshll.u32 %v4812_v5, %v2975_v61 }
 0x101   :  { %v474_v22 = vadd.s32 %v473_v42, %v469_v62  ;;  %v3039_v3 = vand.u32 31, %v530_v16  ;;  %v629_v23 = vand.u32 8388607, %v4811_v13  ;;  %v339_v46 = vshll.u32 %v4821_v9, %v2975_v61 }
 0x102   :  { %v274_v25 = vclz %v2513_v52  ;;  %v632_v54 = vadd.s32 1, %v2528_v48  ;;  %v729_v29 = vand.u32 2139095040, %v3024_v14  ;;  %v3046_v30 = vor.u32 %v337_v18, %v336_v21 }
 0x103   :  { %4902 = vst [vmem:[#allocation6_spill] sm:$0xff] %v3039_v3  ;;  %v475_v31 = vadd.s32 536870912, %v474_v22  ;;  %v341_v34 = vor.u32 %v340_v20, %v339_v46  ;;  %v3049_v35 = vsub.s32 32, %v3039_v3  ;;  %v630_v36 = vor.u32 8388608, %v629_v23 }
 0x104   :  { %4903 = vst [vmem:[#allocation7_spill] sm:$0xff] %v3046_v30  ;;  %vm633_vm15 = vcmp.gt.s32.totalorder %v632_v54, 0  ;;  %v4810_v37 = vand.u32 2147483647, %v3024_v14  ;;  %v2514_v39 = vadd.s32 4294967294, %v274_v25  ;;  %vm345_vm0 = vcmp.lt.s32.totalorder %v3032_v19, 4 }
 0x105   :  { %4904 = vst [vmem:[#allocation8_spill] sm:$0xff] %v3049_v35  ;;  %v634_v44 = vsel %vm633_vm15, %v632_v54, 0  ;;  %v730_v47 = vshrl.u32 %v729_v29, 23  ;;  %v3056_v50 = vsel %vm345_vm0, %v3046_v30, 920167782  ;;  %v3058_v55 = vshrl.u32 %v475_v31, 30 }
 0x106   :  { %4905 = vst [vmem:[#allocation9_spill] sm:$0xff] %v3056_v50  ;;  %v3062_v59 = vadd.s32 %v2959_v43, %v2956_v41  ;;  %v3066_v4 = vsel %vm345_vm0, %v341_v34, 1326507024  ;;  %v3068_v6 = vshrl.u32 %v530_v16, 5  ;;  %v636_v10 = vand.u32 31, %v634_v44 }
 0x107   :  { %4906 = vst [vmem:[#allocation10_spill] sm:$0xff] %v3058_v55  ;;  %4907 = vst [vmem:[#allocation11_spill] sm:$0xff] %v3066_v4  ;;  %v544_v52 = vshll.u32 %v4812_v5, %v3039_v3  ;;  %v545_v15 = vshrl.u32 %v4821_v9, %v3049_v35  ;;  %v3076_v17 = vshll.u32 %v630_v36, 8  ;;  %v3080_v41 = vand.u32 8388607, %v4810_v37 }
 0x108   :  { %4908 = vst [vmem:[#allocation12_spill] sm:$0xff] %v3068_v6  ;;  %vm2515_vm1 = vcmp.lt.s32.totalorder %v2514_v39, 0  ;;  %v637_v43 = vsub.s32 32, %v636_v10  ;;  %v2532_v18 = vadd.s32 4294967169, %v730_v47  ;;  %v3084_v16 = vadd.f32 %v2929_v49, %v3070_v11 }
 0x109   :  { %v477_v62 = vshll.u32 %v3058_v55, 30  ;;  %v635_v20 = vshrl.u32 %v634_v44, 5  ;;  %v639_v42 = vshll.u32 %v4823_v58, %v636_v10  ;;  %v642_v48 = vshll.u32 %v4816_v60, %v636_v10 }
 0x10a   :  { %4909 = vst [vmem:[#allocation13_spill] sm:$0xff] %v3084_v16  ;;  %v640_v21 = vshrl.u32 %v4816_v60, %v637_v43  ;;  %v643_v23 = vshrl.u32 %v4814_v1, %v637_v43  ;;  %v645_v25 = vshll.u32 %v4814_v1, %v636_v10  ;;  %v646_v46 = vshrl.u32 %v4812_v5, %v637_v43 }
 0x10b   :  { %v3093_v54 = vsel %vm2515_vm1, 0, %v2514_v39  ;;  %v648_v49 = vshll.u32 %v4812_v5, %v636_v10  ;;  %v649_v29 = vshrl.u32 %v4821_v9, %v637_v43  ;;  %v651_v31 = vshll.u32 %v4821_v9, %v636_v10 }
 0x10c   :  { %v641_v34 = vor.u32 %v640_v21, %v639_v42  ;;  %v644_v36 = vor.u32 %v643_v23, %v642_v48  ;;  %v647_v44 = vor.u32 %v646_v46, %v645_v25  ;;  %v652_v47 = vshrl.u32 %v4819_v12, %v637_v43  ;;  %v3110_v46 = vpop.f32.mrb[12].mxu0 }
 0x10d   :  { %v3099_v2 = vsub.s32 %v474_v22, %v477_v62  ;;  %v650_v45 = vor.u32 %v649_v29, %v648_v49  ;;  %v734_v27 = vor.u32 8388608, %v3080_v41  ;;  %v4818_v37 = vand.u32 2147483647, %v3084_v16 }
 0x10e   :  { %v282_v39 = vsub.s32 4294967266, %v3093_v54  ;;  %v653_v13 = vor.u32 %v652_v47, %v651_v31  ;;  %vm654_vm2 = vcmp.lt.s32.totalorder %v635_v20, 1  ;;  %v736_v5 = vadd.s32 1, %v2532_v18 }
 0x10f   :  { %vm656_vm3 = vcmp.lt.s32.totalorder %v635_v20, 3  ;;  %vm657_vm4 = vcmp.lt.s32.totalorder %v635_v20, 4  ;;  %v662_v10 = vsel %vm654_vm2, %v641_v34, %v644_v36  ;;  %v833_v42 = vand.u32 2139095040, %v3084_v16 }
 0x110   :  { %v659_v48 = vsel %vm657_vm4, %v647_v44, 2102212464  ;;  %v663_v21 = vsel %vm657_vm4, %v650_v45, 920167782  ;;  %v666_v22 = vsel %vm654_vm2, %v644_v36, %v647_v44  ;;  %v667_v62 = vsel %vm657_vm4, %v653_v13, 1326507024 }
 0x111   :  { %v480_v41 = vsub.s32 0, %v3099_v2  ;;  %v638_v23 = vshrl.u32 %v4823_v58, %v637_v43  ;;  %vm655_vm5 = vcmp.lt.s32.totalorder %v635_v20, 2  ;;  %v664_v25 = vsel %vm656_vm3, %v647_v44, %v663_v21 }
 0x112   :  { %v278_v18 = vsub.s32 32, %v3093_v54  ;;  %v665_v49 = vsel %vm655_vm5, %v662_v10, %v664_v25  ;;  %v668_v29 = vsel %vm656_vm3, %v650_v45, %v667_v62  ;;  %vm737_vm6 = vcmp.gt.s32.totalorder %v736_v5, 0 }
 0x113   :  { %v283_v31 = vadd.s32 127, %v282_v39  ;;  %v658_v47 = vsel %vm654_vm2, %v638_v23, %v641_v34  ;;  %v660_v13 = vsel %vm656_vm3, %v644_v36, %v659_v48  ;;  %v669_v1 = vsel %vm655_vm5, %v666_v22, %v668_v29 }
 0x114   :  { %v3119_v43 = vmul.u32.u64.low %v3076_v17, %v669_v1  ;;  %v3120_v60 = vmul.u32.u64.high %v3076_v17, %v669_v1, %v3119_v43  ;;  %v3123_v44 = vmul.u32.u64.low %v3076_v17, %v665_v49  ;;  %v3124_v21 = vmul.u32.u64.high %v3076_v17, %v665_v49, %v3123_v44 }
 0x115   :  { %v2521_v10 = vmin.u32 %v480_v41, %v3099_v2  ;;  %v3130_v45 = vshll.u32 %v4821_v9, %v3039_v3  ;;  %v738_v34 = vsel %vm737_vm6, %v736_v5, 0  ;;  %v834_v39 = vshrl.u32 %v833_v42, 23 }
 0x116   :  { %v3132_v36 = vor.u32 %v545_v15, %v544_v52  ;;  %v3136_v48 = vshrl.u32 %v4819_v12, %v3049_v35  ;;  %v661_v1 = vsel %vm655_vm5, %v658_v47, %v660_v13  ;;  %v740_v22 = vand.u32 31, %v738_v34 }
 0x117   :  { %v279_v62 = vshll.u32 %v3000_v53, %v3093_v54  ;;  %v280_v41 = vshrl.u32 %v3062_v59, %v278_v18  ;;  %v3142_v23 = vshll.u32 %v734_v27, 8  ;;  %v3146_v5 = vand.u32 8388607, %v4818_v37 }
 0x118   :  { %4910 = vst [vmem:[#allocation14_spill] sm:$0xff] %v3132_v36  ;;  %v284_v52 = vshll.u32 %v283_v31, 23  ;;  %vm679_vm7 = vc.u32 %v3120_v60, %v3123_v44  ;;  %v680_v15 = vadd.s32 1, %v3124_v21  ;;  %v741_v20 = vsub.s32 32, %v740_v22 }
 0x119   :  { %v482_v42 = vclz %v2521_v10  ;;  %v677_v25 = vmul.u32 %v3076_v17, %v661_v1  ;;  %v743_v53 = vshll.u32 %v4823_v58, %v740_v22  ;;  %v2536_v54 = vadd.s32 4294967169, %v834_v39 }
 0x11a   :  { %v681_v27 = vsel %vm679_vm7, %v680_v15, %v3124_v21  ;;  %v4911_v59 = vmov 2475754826   ;;  %v4912_v29 = vmov 2131351028   ;;  %v739_v13 = vshrl.u32 %v738_v34, 5 }
 0x11b   :  { %v744_v18 = vshrl.u32 %v4911_v59, %v741_v20  ;;  %v746_v49 = vshll.u32 %v4911_v59, %v740_v22  ;;  %v747_v31 = vshrl.u32 %v4912_v29, %v741_v20  ;;  %v682_v47 = vadd.s32 %v681_v27, %v677_v25 }
 0x11c   :  { %v749_v43 = vshll.u32 %v4912_v29, %v740_v22  ;;  %v4913_v37 = vmov 2102212464   ;;  %v4914_v1 = vmov 920167782   ;;  %v3161_v58 = vor.u32 %v280_v41, %v279_v62 }
 0x11d   :  { %v750_v12 = vshrl.u32 %v4913_v37, %v741_v20  ;;  %v745_v10 = vor.u32 %v744_v18, %v743_v53  ;;  %v748_v9 = vor.u32 %v747_v31, %v746_v49  ;;  %v752_v17 = vshll.u32 %v4913_v37, %v740_v22  ;;  %v3172_v31 = vpop.f32.mrb[13].mxu0 }
 0x11e   :  { %v753_v39 = vshrl.u32 %v4914_v1, %v741_v20  ;;  %v3163_v21 = vor.u32 4788187, %v284_v52  ;;  %v683_v15 = vadd.s32 536870912, %v682_v47  ;;  %v3165_v28 = vadd.s32 4294967294, %v482_v42 }
 0x11f   :  { %v751_v55 = vor.u32 %v750_v12, %v749_v43  ;;  %v755_v34 = vshll.u32 %v4914_v1, %v740_v22  ;;  %v4915_v27 = vmov 1326507024   ;;  %vm758_vm8 = vcmp.lt.s32.totalorder %v739_v13, 1 }
 0x120   :  { %v754_v25 = vor.u32 %v753_v39, %v752_v17  ;;  %v756_v3 = vshrl.u32 %v4915_v27, %v741_v20  ;;  %v3169_v35 = vshrl.u32 %v683_v15, 30  ;;  %vm761_vm9 = vcmp.lt.s32.totalorder %v739_v13, 4 }
 0x121   :  { %v840_v53 = vadd.s32 1, %v2536_v54  ;;  %v4917_v18 = vmov 683565275   ;;  %v763_v41 = vsel %vm761_vm9, %v751_v55, 2102212464  ;;  %v766_v52 = vsel %vm758_vm8, %v745_v10, %v748_v9 }
 0x122   :  { %4916 = vst [vmem:[#allocation15_spill] sm:$0xff] %v3169_v35  ;;  %v742_v49 = vshrl.u32 %v4917_v18, %v741_v20  ;;  %v757_v62 = vor.u32 %v756_v3, %v755_v34  ;;  %v685_v12 = vshll.u32 %v3169_v35, 30  ;;  %vm759_vm10 = vcmp.lt.s32.totalorder %v739_v13, 2 }
 0x123   :  { %vm760_vm11 = vcmp.lt.s32.totalorder %v739_v13, 3  ;;  %v767_v42 = vsel %vm761_vm9, %v754_v25, 920167782  ;;  %v770_v17 = vsel %vm758_vm8, %v748_v9, %v751_v55  ;;  %vm841_vm12 = vcmp.gt.s32.totalorder %v840_v53, 0 }
 0x124   :  { %v762_v22 = vsel %vm758_vm8, %v742_v49, %v745_v10  ;;  %v768_v43 = vsel %vm760_vm11, %v751_v55, %v767_v42  ;;  %v771_v39 = vsel %vm761_vm9, %v757_v62, 1326507024  ;;  %v3175_v15 = vsub.s32 %v682_v47, %v685_v12 }
 0x125   :  { %v764_v38 = vsel %vm760_vm11, %v748_v9, %v763_v41  ;;  %v769_v54 = vsel %vm759_vm10, %v766_v52, %v768_v43  ;;  %v772_v20 = vsel %vm760_vm11, %v754_v25, %v771_v39  ;;  %v842_v47 = vsel %vm841_vm12, %v840_v53, 0 }
 0x126   :  { %v773_v3 = vsel %vm759_vm10, %v770_v17, %v772_v20  ;;  %v3180_v34 = vmul.u32.u64.low %v3142_v23, %v769_v54  ;;  %v3181_v30 = vmul.u32.u64.high %v3142_v23, %v769_v54, %v3180_v34  ;;  %v688_v35 = vsub.s32 0, %v3175_v15 }
 0x127   :  { %v3186_v10 = vmul.u32.u64.low %v3142_v23, %v773_v3  ;;  %v3187_v55 = vmul.u32.u64.high %v3142_v23, %v773_v3, %v3186_v10  ;;  %v3191_v9 = vadd.s32 %v3007_v0, %v3004_v56  ;;  %v549_v25 = vor.u32 %v3136_v48, %v3130_v45 }
 0x128   :  { %vm553_vm13 = vcmp.lt.s32.totalorder %v3068_v6, 4  ;;  %v765_v49 = vsel %vm759_vm10, %v762_v22, %v764_v38  ;;  %v844_v62 = vand.u32 31, %v842_v47  ;;  %v286_v41 = vand.u32 2147483647, %v3163_v21 }
 0x129   :  { %v288_v52 = vcvt.s32.f32 %v3161_v58  ;;  %v2529_v12 = vmin.u32 %v688_v35, %v3175_v15  ;;  %v3202_v53 = vadd.f32 %v2931_v51, %v3070_v11  ;;  %vm2523_vm14 = vcmp.lt.s32.totalorder %v3165_v28, 0 }
 0x12a   :  { %v784_v56 = vadd.s32 1, %v3181_v30  ;;  %v838_v0 = vor.u32 8388608, %v3146_v5  ;;  %v845_v45 = vsub.s32 32, %v844_v62  ;;  %v781_v38 = vmul.u32 %v3142_v23, %v765_v49 }
 0x12b   :  { %4918 = vst [vmem:[#allocation16_spill] sm:$0xff] %v3202_v53  ;;  %v690_v48 = vclz %v2529_v12  ;;  %vm783_vm15 = vc.u32 %v3187_v55, %v3180_v34  ;;  %v3210_v58 = vshrl.u32 %v842_v47, 5  ;;  %v847_v51 = vshll.u32 %v4917_v18, %v844_v62 }
 0x12c   :  { %v785_v35 = vsel %vm783_vm15, %v784_v56, %v3181_v30  ;;  %v848_v11 = vshrl.u32 %v4911_v59, %v845_v45  ;;  %v851_v13 = vshrl.u32 %v4912_v29, %v845_v45  ;;  %v850_v5 = vshll.u32 %v4911_v59, %v844_v62 }
 0x12d   :  { %v2530_v21 = vadd.s32 4294967294, %v690_v48  ;;  %v786_v42 = vadd.s32 %v785_v35, %v781_v38  ;;  %v854_v22 = vshrl.u32 %v4913_v37, %v845_v45  ;;  %v853_v43 = vshll.u32 %v4912_v29, %v844_v62 }
 0x12e   :  { %v849_v23 = vor.u32 %v848_v11, %v847_v51  ;;  %v856_v17 = vshll.u32 %v4913_v37, %v844_v62  ;;  %v857_v39 = vshrl.u32 %v4914_v1, %v845_v45  ;;  %v852_v54 = vor.u32 %v851_v13, %v850_v5 }
 0x12f   :  { %vm2531_vm1 = vcmp.lt.s32.totalorder %v2530_v21, 0  ;;  %v787_v30 = vadd.s32 536870912, %v786_v42  ;;  %v860_v20 = vshrl.u32 %v4915_v27, %v845_v45  ;;  %v855_v10 = vor.u32 %v854_v22, %v853_v43 }
 0x130   :  { %v3222_v3 = vsel %vm2531_vm1, 0, %v2530_v21  ;;  %v858_v47 = vor.u32 %v857_v39, %v856_v17  ;;  %v859_v49 = vshll.u32 %v4914_v1, %v844_v62  ;;  %v3228_v12 = vsel %vm553_vm13, %v3132_v36, 920167782 }
 0x131   :  { %4919 = vst [vmem:[#allocation17_spill] sm:$0xff] %v3228_v12  ;;  %v3232_v56 = vsel %vm553_vm13, %v549_v25, 1326507024  ;;  %v698_v48 = vsub.s32 4294967266, %v3222_v3  ;;  %v3235_v38 = vshrl.u32 %v787_v30, 30  ;;  %v289_v35 = vmul.f32 %v288_v52, %v286_v41 }
 0x132   :  { %4920 = vst [vmem:[#allocation18_spill] sm:$0xff] %v3232_v56  ;;  %v3240_v51 = vsel %vm2523_vm14, 0, %v3165_v28  ;;  %v861_v62 = vor.u32 %v860_v20, %v859_v49  ;;  %v937_v11 = vand.u32 2139095040, %v3202_v53  ;;  %vm862_vm2 = vcmp.lt.s32.totalorder %v3210_v58, 1 }
 0x133   :  { %4921 = vst [vmem:[#allocation19_spill] sm:$0xff] %v3235_v38  ;;  %v789_v13 = vshll.u32 %v3235_v38, 30  ;;  %vm865_vm3 = vcmp.lt.s32.totalorder %v3210_v58, 4  ;;  %v878_v25 = vshll.u32 %v838_v0, 8  ;;  %v846_v21 = vshrl.u32 %v4917_v18, %v845_v45 }
 0x134   :  { %v867_v5 = vsel %vm865_vm3, %v855_v10, 2102212464  ;;  %v870_v41 = vsel %vm862_vm2, %v849_v23, %v852_v54  ;;  %v871_v52 = vsel %vm865_vm3, %v858_v47, 920167782  ;;  %v699_v22 = vadd.s32 127, %v698_v48 }
 0x135   :  { %v3249_v28 = vsub.s32 %v786_v42, %v789_v13  ;;  %vm863_vm4 = vcmp.lt.s32.totalorder %v3210_v58, 2  ;;  %vm864_vm5 = vcmp.lt.s32.totalorder %v3210_v58, 3  ;;  %vm208_vm6 = vcmp.lt.s32.totalorder %v2909_v24, 0 }
 0x136   :  { %v872_v43 = vsel %vm864_vm5, %v855_v10, %v871_v52  ;;  %v874_v0 = vsel %vm862_vm2, %v852_v54, %v855_v10  ;;  %v875_v17 = vsel %vm865_vm3, %v861_v62, 1326507024  ;;  %v938_v45 = vshrl.u32 %v937_v11, 23 }
 0x137   :  { %v792_v39 = vsub.s32 0, %v3249_v28  ;;  %v866_v30 = vsel %vm862_vm2, %v846_v21, %v849_v23  ;;  %v868_v20 = vsel %vm864_vm5, %v852_v54, %v867_v5  ;;  %v873_v42 = vsel %vm863_vm4, %v870_v41, %v872_v43 }
 0x138   :  { %v876_v49 = vsel %vm864_vm5, %v858_v47, %v875_v17  ;;  %v3261_v48 = vmul.u32.u64.low %v878_v25, %v873_v42  ;;  %v3262_v13 = vmul.u32.u64.high %v878_v25, %v873_v42, %v3261_v48  ;;  %v2540_v52 = vadd.s32 4294967169, %v938_v45  ;;  %v3273_v47 = vpop.permute.xlu0 %64 }
 0x139   :  { %v694_v38 = vsub.s32 32, %v3222_v3  ;;  %v2533_v10 = vmin.u32 %v792_v39, %v3249_v28  ;;  %v877_v62 = vsel %vm863_vm4, %v874_v0, %v876_v49  ;;  %v4840_v11 = vand.u32 2147483647, %v3202_v53 }
 0x13a   :  { %v700_v23 = vshll.u32 %v699_v22, 23  ;;  %v3270_v54 = vmul.u32.u64.low %v878_v25, %v877_v62  ;;  %v3271_v21 = vmul.u32.u64.high %v878_v25, %v877_v62, %v3270_v54  ;;  %v944_v5 = vadd.s32 1, %v2540_v52 }
 0x13b   :  { %v290_v41 = vxor.u32 2147483648, %v289_v35  ;;  %v678_v43 = vadd.s32 %v3123_v44, %v3120_v60  ;;  %v794_v17 = vclz %v2533_v10  ;;  %v869_v45 = vsel %vm863_vm4, %v866_v30, %v868_v20 }
 0x13c   :  { %v490_v39 = vsub.s32 4294967266, %v3240_v51  ;;  %v888_v0 = vadd.s32 1, %v3262_v13  ;;  %vm945_vm7 = vcmp.gt.s32.totalorder %v944_v5, 0  ;;  %v3283_v22 = vadd.f32 %v2939_v63, %v3273_v47 }
 0x13d   :  { %v696_v42 = vshrl.u32 %v678_v43, %v694_v38  ;;  %v2534_v49 = vadd.s32 4294967294, %v794_v17  ;;  %v941_v52 = vand.u32 8388607, %v4840_v11  ;;  %v946_v62 = vsel %vm945_vm7, %v944_v5, 0 }
 0x13e   :  { %4922 = vst [vmem:[#allocation20_spill] sm:$0xff] %v3283_v22  ;;  %v701_v60 = vor.u32 4788187, %v700_v23  ;;  %v885_v44 = vmul.u32 %v878_v25, %v869_v45  ;;  %vm887_vm8 = vc.u32 %v3271_v21, %v3261_v48  ;;  %v948_v58 = vand.u32 31, %v946_v62 }
 0x13f   :  { %v3291_v30 = vsel %vm208_vm6, %v290_v41, %v289_v35  ;;  %v695_v63 = vshll.u32 %v3175_v15, %v3222_v3  ;;  %vm2535_vm9 = vcmp.lt.s32.totalorder %v2534_v49, 0  ;;  %v889_v38 = vsel %vm887_vm8, %v888_v0, %v3262_v13 }
 0x140   :  { %4923 = vst [vmem:[#allocation21_spill] sm:$0xff] %v3291_v30  ;;  %v486_v20 = vsub.s32 32, %v3240_v51  ;;  %v3297_v10 = vsel %vm2535_vm9, 0, %v2534_v49  ;;  %v890_v23 = vadd.s32 %v889_v38, %v885_v44  ;;  %v949_v25 = vsub.s32 32, %v948_v58 }
 0x141   :  { %v3301_v5 = vadd.s32 127, %v490_v39  ;;  %v697_v43 = vor.u32 %v696_v42, %v695_v63  ;;  %v702_v41 = vand.u32 2147483647, %v701_v60  ;;  %v942_v15 = vor.u32 8388608, %v941_v52 }
 0x142   :  { %v891_v17 = vadd.s32 536870912, %v890_v23  ;;  %v1041_v3 = vand.u32 2139095040, %v3283_v22  ;;  %v802_v13 = vsub.s32 4294967266, %v3297_v10  ;;  %v951_v45 = vshll.u32 %v4917_v18, %v948_v58 }
 0x143   :  { %v952_v0 = vshrl.u32 %v4911_v59, %v949_v25  ;;  %v954_v49 = vshll.u32 %v4911_v59, %v948_v58  ;;  %v955_v39 = vshrl.u32 %v4912_v29, %v949_v25  ;;  %v957_v42 = vshll.u32 %v4912_v29, %v948_v58 }
 0x144   :  { %v3309_v44 = vshrl.u32 %v891_v17, 30  ;;  %v958_v60 = vshrl.u32 %v4913_v37, %v949_v25  ;;  %v704_v63 = vcvt.s32.f32 %v697_v43  ;;  %v947_v52 = vshrl.u32 %v946_v62, 5 }
 0x145   :  { %v953_v38 = vor.u32 %v952_v0, %v951_v45  ;;  %v960_v11 = vshll.u32 %v4913_v37, %v948_v58  ;;  %v956_v35 = vor.u32 %v955_v39, %v954_v49  ;;  %v961_v24 = vshrl.u32 %v4914_v1, %v949_v25 }
 0x146   :  { %4924 = vst [vmem:[#allocation22_spill] sm:$0xff] %v3309_v44  ;;  %v893_v54 = vshll.u32 %v3309_v44, 30  ;;  %v959_v30 = vor.u32 %v958_v60, %v957_v42  ;;  %v705_v36 = vmul.f32 %v704_v63, %v702_v41  ;;  %v803_v17 = vadd.s32 127, %v802_v13 }
 0x147   :  { %v963_v56 = vshll.u32 %v4914_v1, %v948_v58  ;;  %v964_v12 = vshrl.u32 %v4915_v27, %v949_v25  ;;  %v962_v4 = vor.u32 %v961_v24, %v960_v11  ;;  %v982_v43 = vshll.u32 %v942_v15, 8 }
 0x148   :  { %v3319_v6 = vsub.s32 %v890_v23, %v893_v54  ;;  %v1042_v62 = vshrl.u32 %v1041_v3, 23  ;;  %v798_v45 = vsub.s32 32, %v3297_v10  ;;  %vm966_vm10 = vcmp.lt.s32.totalorder %v947_v52, 1 }
 0x149   :  { %v965_v0 = vor.u32 %v964_v12, %v963_v56  ;;  %vm969_vm11 = vcmp.lt.s32.totalorder %v947_v52, 4  ;;  %v950_v39 = vshrl.u32 %v4917_v18, %v949_v25  ;;  %v974_v13 = vsel %vm966_vm10, %v953_v38, %v956_v35 }
 0x14a   :  { %v896_v49 = vsub.s32 0, %v3319_v6  ;;  %v971_v41 = vsel %vm969_vm11, %v959_v30, 2102212464  ;;  %v804_v42 = vshll.u32 %v803_v17, 23  ;;  %vm968_vm12 = vcmp.lt.s32.totalorder %v947_v52, 3 }
 0x14b   :  { %v975_v58 = vsel %vm969_vm11, %v962_v4, 920167782  ;;  %v978_v60 = vsel %vm966_vm10, %v956_v35, %v959_v30  ;;  %vm967_vm14 = vcmp.lt.s32.totalorder %v947_v52, 2  ;;  %v979_v11 = vsel %vm969_vm11, %v965_v0, 1326507024 }
 0x14c   :  { %v2537_v23 = vmin.u32 %v896_v49, %v3319_v6  ;;  %v976_v24 = vsel %vm968_vm12, %v959_v30, %v975_v58  ;;  %vm4864_vm15 = vcmp.lt.s32.totalorder %v2969_v57, 0  ;;  %v970_v12 = vsel %vm966_vm10, %v950_v39, %v953_v38 }
 0x14d   :  { %v972_v56 = vsel %vm968_vm12, %v956_v35, %v971_v41  ;;  %v977_v54 = vsel %vm967_vm14, %v974_v13, %v976_v24  ;;  %v980_v15 = vsel %vm968_vm12, %v962_v4, %v979_v11  ;;  %v488_v44 = vshrl.u32 %v3191_v9, %v486_v20 }
 0x14e   :  { %v898_v3 = vclz %v2537_v23  ;;  %v981_v25 = vsel %vm967_vm14, %v978_v60, %v980_v15  ;;  %v3328_v63 = vmul.u32.u64.low %v982_v43, %v977_v54  ;;  %v3329_v17 = vmul.u32.u64.high %v982_v43, %v977_v54, %v3328_v63 }
 0x14f   :  { %v3333_v49 = vmul.u32.u64.low %v982_v43, %v981_v25  ;;  %v3334_v50 = vmul.u32.u64.high %v982_v43, %v981_v25, %v3333_v49  ;;  %v2544_v30 = vadd.s32 4294967169, %v1042_v62  ;;  %v782_v38 = vadd.s32 %v3180_v34, %v3187_v55 }
 0x150   :  { %v2538_v35 = vadd.s32 4294967294, %v898_v3  ;;  %v973_v0 = vsel %vm967_vm14, %v970_v12, %v972_v56  ;;  %v4925_v4 = vand.u32 2147483647, %v3283_v22  ;;  %v492_v41 = vshll.u32 %v3301_v5, 23 }
 0x151   :  { %v706_v13 = vxor.u32 2147483648, %v705_v36  ;;  %v1048_v58 = vadd.s32 1, %v2544_v30  ;;  %v3344_v9 = vadd.f32 %v2945_v7, %v3273_v47  ;;  %v800_v20 = vshrl.u32 %v782_v38, %v798_v45 }
 0x152   :  { %v1045_v39 = vand.u32 8388607, %v4925_v4  ;;  %v3346_v60 = vor.u32 4788187, %v804_v42  ;;  %vm2539_vm1 = vcmp.lt.s32.totalorder %v2538_v35, 0  ;;  %v992_v34 = vadd.s32 1, %v3329_v17 }
 0x153   :  { %4926 = vst [vmem:[#allocation23_spill] sm:$0xff] %v3344_v9  ;;  %v901_v55 = vsel %vm2539_vm1, 0, %v2538_v35  ;;  %v989_v52 = vmul.u32 %v982_v43, %v973_v0  ;;  %vm991_vm2 = vc.u32 %v3334_v50, %v3328_v63  ;;  %vm1049_vm3 = vcmp.gt.s32.totalorder %v1048_v58, 0 }
 0x154   :  { %v4927_v5 = vshll.u32 %v3099_v2, %v3240_v51  ;;  %v906_v23 = vsub.s32 4294967266, %v901_v55  ;;  %v993_v7 = vsel %vm991_vm2, %v992_v34, %v3329_v17  ;;  %v1046_v47 = vor.u32 8388608, %v1045_v39 }
 0x155   :  { %v3357_v45 = vor.u32 4788187, %v492_v41  ;;  %v799_v42 = vshll.u32 %v3249_v28, %v3297_v10  ;;  %v994_v24 = vadd.s32 %v993_v7, %v989_v52  ;;  %v1050_v43 = vsel %vm1049_vm3, %v1048_v58, 0 }
 0x156   :  { %v3354_v62 = vor.u32 %v488_v44, %v4927_v5  ;;  %v3363_v11 = vsel %vm4864_vm15, %v706_v13, %v705_v36  ;;  %v886_v2 = vadd.s32 %v3261_v48, %v3271_v21  ;;  %v907_v51 = vadd.s32 127, %v906_v23 }
 0x157   :  { %v1052_v44 = vand.u32 31, %v1050_v43  ;;  %v3367_v12 = vor.u32 %v800_v20, %v799_v42  ;;  %v806_v56 = vand.u32 2147483647, %v3346_v60  ;;  %v995_v54 = vadd.s32 536870912, %v994_v24 }
 0x158   :  { %v4848_v15 = vand.u32 2147483647, %v3344_v9  ;;  %v902_v3 = vsub.s32 32, %v901_v55  ;;  %v3371_v10 = vshll.u32 %v1046_v47, 8  ;;  %v1145_v25 = vand.u32 2139095040, %v3344_v9 }
 0x159   :  { %v1053_v28 = vsub.s32 32, %v1052_v44  ;;  %v908_v36 = vshll.u32 %v907_v51, 23  ;;  %v3374_v17 = vshrl.u32 %v995_v54, 30  ;;  %v1051_v49 = vshrl.u32 %v1050_v43, 5 }
 0x15a   :  { %v1055_v48 = vshll.u32 %v4917_v18, %v1052_v44  ;;  %v1058_v30 = vshll.u32 %v4911_v59, %v1052_v44  ;;  %v1061_v38 = vshll.u32 %v4912_v29, %v1052_v44  ;;  %v1064_v35 = vshll.u32 %v4913_v37, %v1052_v44 }
 0x15b   :  { %v1056_v21 = vshrl.u32 %v4911_v59, %v1053_v28  ;;  %v997_v0 = vshll.u32 %v3374_v17, 30  ;;  %v1059_v4 = vshrl.u32 %v4912_v29, %v1053_v28  ;;  %v1062_v39 = vshrl.u32 %v4913_v37, %v1053_v28 }
 0x15c   :  { %v1065_v41 = vshrl.u32 %v4914_v1, %v1053_v28  ;;  %v903_v13 = vshll.u32 %v3319_v6, %v901_v55  ;;  %v1067_v20 = vshll.u32 %v4914_v1, %v1052_v44  ;;  %v1068_v34 = vshrl.u32 %v4915_v27, %v1053_v28 }
 0x15d   :  { %v1057_v58 = vor.u32 %v1056_v21, %v1055_v48  ;;  %v3388_v52 = vsub.s32 %v994_v24, %v997_v0  ;;  %v1060_v5 = vor.u32 %v1059_v4, %v1058_v30  ;;  %v1063_v23 = vor.u32 %v1062_v39, %v1061_v38 }
 0x15e   :  { %v1066_v7 = vor.u32 %v1065_v41, %v1064_v35  ;;  %v4928_v47 = vand.u32 2147483647, %v2969_v57  ;;  %v4929_v42 = vmov 0  ;;  %v904_v43 = vshrl.u32 %v886_v2, %v902_v3 }
 0x15f   :  { %v909_v51 = vor.u32 4788187, %v908_v36  ;;  %v1069_v54 = vor.u32 %v1068_v34, %v1067_v20  ;;  %v1146_v6 = vshrl.u32 %v1145_v25, 23  ;;  %v1000_v55 = vsub.s32 0, %v3388_v52 }
 0x160   :  { %vm3392_vm4 = vcmp.le.f32.partialorder %v4928_v47, 0.7853982  ;;  %v1054_v44 = vshrl.u32 %v4917_v18, %v1053_v28  ;;  %vm1070_vm5 = vcmp.lt.s32.totalorder %v1051_v49, 1  ;;  %vm1073_vm7 = vcmp.lt.s32.totalorder %v1051_v49, 4 }
 0x161   :  { %v4930_v42 = vsel %vm3392_vm4, 4294967295, %v4929_v42  ;;  %vm1072_vm8 = vcmp.lt.s32.totalorder %v1051_v49, 3  ;;  %v1075_v24 = vsel %vm1073_vm7, %v1063_v23, 2102212464  ;;  %v1078_v48 = vsel %vm1070_vm5, %v1057_v58, %v1060_v5 }
 0x162   :  { %4931 = vst [vmem:[#allocation24_spill] sm:$0xff] %v4930_v42  ;;  %v1079_v21 = vsel %vm1073_vm7, %v1066_v7, 920167782  ;;  %v2541_v30 = vmin.u32 %v1000_v55, %v3388_v52  ;;  %vm1071_vm9 = vcmp.lt.s32.totalorder %v1051_v49, 2  ;;  %v1082_v35 = vsel %vm1070_vm5, %v1060_v5, %v1063_v23 }
 0x163   :  { %v1080_v38 = vsel %vm1072_vm8, %v1063_v23, %v1079_v21  ;;  %v905_v0 = vor.u32 %v904_v43, %v903_v13  ;;  %v1083_v3 = vsel %vm1073_vm7, %v1069_v54, 1326507024  ;;  %v2548_v25 = vadd.s32 4294967169, %v1146_v6  ;;  %v3408_v23 = vpop.permute.xlu1 %69 }
 0x164   :  { %v1081_v2 = vsel %vm1071_vm9, %v1078_v48, %v1080_v38  ;;  %v1002_v36 = vclz %v2541_v30  ;;  %v1074_v4 = vsel %vm1070_vm5, %v1054_v44, %v1057_v58  ;;  %v1076_v39 = vsel %vm1072_vm8, %v1060_v5, %v1075_v24 }
 0x165   :  { %v1084_v28 = vsel %vm1072_vm8, %v1066_v7, %v1083_v3  ;;  %v3402_v20 = vmul.u32.u64.low %v3371_v10, %v1081_v2  ;;  %v3403_v34 = vmul.u32.u64.high %v3371_v10, %v1081_v2, %v3402_v20  ;;  %v1149_v47 = vand.u32 8388607, %v4848_v15 }
 0x166   :  { %v1085_v41 = vsel %vm1071_vm9, %v1082_v35, %v1084_v28  ;;  %v910_v13 = vand.u32 2147483647, %v909_v51  ;;  %v2542_v43 = vadd.s32 4294967294, %v1002_v36  ;;  %v808_v58 = vcvt.s32.f32 %v3367_v12 }
 0x167   :  { %v3411_v54 = vmul.u32.u64.low %v3371_v10, %v1085_v41  ;;  %v3412_v6 = vmul.u32.u64.high %v3371_v10, %v1085_v41, %v3411_v54  ;;  %v1077_v5 = vsel %vm1071_vm9, %v1074_v4, %v1076_v39  ;;  %v1152_v7 = vadd.s32 1, %v2548_v25 }
 0x168   :  { %v3418_v55 = vadd.f32 %v2952_v32, %v3408_v23  ;;  %v494_v44 = vand.u32 2147483647, %v3357_v45  ;;  %v3425_v51 = vsel %vm3392_vm4, %v2969_v57, %v3363_v11  ;;  %v912_v24 = vcvt.s32.f32 %v905_v0 }
 0x169   :  { %vm2543_vm10 = vcmp.lt.s32.totalorder %v2542_v43, 0  ;;  %v3429_v12 = vmul.f32 %v808_v58, %v806_v56  ;;  %v1096_v48 = vadd.s32 1, %v3403_v34  ;;  %vm1153_vm11 = vcmp.gt.s32.totalorder %v1152_v7, 0 }
 0x16a   :  { %v3431_v49 = vsel %vm2543_vm10, 0, %v2542_v43  ;;  %v496_v32 = vcvt.s32.f32 %v3354_v62  ;;  %v3435_v45 = vmul.f32 %v912_v24, %v910_v13  ;;  %v1093_v21 = vmul.u32 %v3371_v10, %v1077_v5 }
 0x16b   :  { %v1150_v30 = vor.u32 8388608, %v1149_v47  ;;  %v1006_v11 = vsub.s32 32, %v3431_v49  ;;  %vm1095_vm12 = vc.u32 %v3412_v6, %v3402_v20  ;;  %v1154_v60 = vsel %vm1153_vm11, %v1152_v7, 0 }
 0x16c   :  { %v1249_v56 = vand.u32 2139095040, %v3418_v55  ;;  %v3442_v38 = vmul.f32 %v496_v32, %v494_v44  ;;  %2706 = vcosq.f32 %v3425_v51  ;;  %v1010_v35 = vsub.s32 4294967266, %v3431_v49 }
 0x16d   :  { %v1097_v62 = vsel %vm1095_vm12, %v1096_v48, %v3403_v34  ;;  %v810_v0 = vxor.u32 2147483648, %v3429_v12  ;;  %v990_v10 = vadd.s32 %v3328_v63, %v3334_v50  ;;  %v1156_v3 = vand.u32 31, %v1154_v60 }
 0x16e   :  { %v1098_v2 = vadd.s32 %v1097_v62, %v1093_v21  ;;  %v914_v25 = vxor.u32 2147483648, %v3435_v45  ;;  %v1007_v36 = vshll.u32 %v3388_v52, %v3431_v49  ;;  %v3453_v4 = vshll.u32 %v1150_v30, 8 }
 0x16f   :  { %v1008_v28 = vshrl.u32 %v990_v10, %v1006_v11  ;;  %v1157_v47 = vsub.s32 32, %v1156_v3  ;;  %v1250_v34 = vshrl.u32 %v1249_v56, 23  ;;  %v1011_v13 = vadd.s32 127, %v1010_v35 }
 0x170   :  { %v1099_v41 = vadd.s32 536870912, %v1098_v2  ;;  %v1155_v43 = vshrl.u32 %v1154_v60, 5  ;;  %v1159_v54 = vshll.u32 %v4917_v18, %v1156_v3  ;;  %v1162_v50 = vshll.u32 %v4911_v59, %v1156_v3 }
 0x171   :  { %v1160_v58 = vshrl.u32 %v4911_v59, %v1157_v47  ;;  %v1163_v52 = vshrl.u32 %v4912_v29, %v1157_v47  ;;  %v1165_v5 = vshll.u32 %v4912_v29, %v1156_v3  ;;  %v1166_v7 = vshrl.u32 %v4913_v37, %v1157_v47 }
 0x172   :  { %v3458_v63 = vshrl.u32 %v1099_v41, 30  ;;  %v1168_v44 = vshll.u32 %v4913_v37, %v1156_v3  ;;  %v1169_v24 = vshrl.u32 %v4914_v1, %v1157_v47  ;;  %v1171_v49 = vshll.u32 %v4914_v1, %v1156_v3 }
 0x173   :  { %vm4893_vm14 = vcmp.lt.s32.totalorder %v3024_v14, 0  ;;  %vm4863_vm1 = vcmp.lt.s32.totalorder %v3084_v16, 0  ;;  %v1161_v32 = vor.u32 %v1160_v58, %v1159_v54  ;;  %v1164_v21 = vor.u32 %v1163_v52, %v1162_v50 }
 0x174   :  { %4932 = vst [vmem:[#allocation25_spill] sm:$0xff] %v3458_v63  ;;  %v1101_v48 = vshll.u32 %v3458_v63, 30  ;;  %v1172_v30 = vshrl.u32 %v4915_v27, %v1157_v47  ;;  %v1012_v11 = vshll.u32 %v1011_v13, 23  ;;  %v1167_v60 = vor.u32 %v1166_v7, %v1165_v5 }
 0x175   :  { %v1170_v56 = vor.u32 %v1169_v24, %v1168_v44  ;;  %vm1174_vm2 = vcmp.lt.s32.totalorder %v1155_v43, 1  ;;  %vm1175_vm3 = vcmp.lt.s32.totalorder %v1155_v43, 2  ;;  %vm1177_vm5 = vcmp.lt.s32.totalorder %v1155_v43, 4 }
 0x176   :  { %v3471_v35 = vsub.s32 %v1098_v2, %v1101_v48  ;;  %v1173_v62 = vor.u32 %v1172_v30, %v1171_v49  ;;  %v3473_v10 = vpop.eup %2706  ;;  %vm1176_vm7 = vcmp.lt.s32.totalorder %v1155_v43, 3  ;;  %v1179_v3 = vsel %vm1177_vm5, %v1167_v60, 2102212464 }
 0x177   :  { %4933 = vst [vmem:[#allocation26_spill] sm:$0xff] %v3473_v10  ;;  %v1182_v41 = vsel %vm1174_vm2, %v1161_v32, %v1164_v21  ;;  %v1183_v15 = vsel %vm1177_vm5, %v1170_v56, 920167782  ;;  %v1158_v50 = vshrl.u32 %v4917_v18, %v1157_v47  ;;  %v1186_v58 = vsel %vm1174_vm2, %v1164_v21, %v1167_v60 }
 0x178   :  { %v1104_v54 = vsub.s32 0, %v3471_v35  ;;  %v1184_v13 = vsel %vm1176_vm7, %v1167_v60, %v1183_v15  ;;  %v1013_v52 = vor.u32 4788187, %v1012_v11  ;;  %v1187_v5 = vsel %vm1177_vm5, %v1173_v62, 1326507024  ;;  %v3504_v60 = vpop.permute.xlu0 %74 }
 0x179   :  { %v1185_v2 = vsel %vm1175_vm3, %v1182_v41, %v1184_v13  ;;  %v2552_v7 = vadd.s32 4294967169, %v1250_v34  ;;  %v1178_v24 = vsel %vm1174_vm2, %v1158_v50, %v1161_v32  ;;  %v1180_v49 = vsel %vm1176_vm7, %v1164_v21, %v1179_v3 }
 0x17a   :  { %v2545_v44 = vmin.u32 %v1104_v54, %v3471_v35  ;;  %v1188_v48 = vsel %vm1176_vm7, %v1170_v56, %v1187_v5  ;;  %v1009_v30 = vor.u32 %v1008_v28, %v1007_v36  ;;  %2708 = vsinq.f32 %v3425_v51 }
 0x17b   :  { %v1189_v39 = vsel %vm1175_vm3, %v1186_v58, %v1188_v48  ;;  %v3484_v63 = vmul.u32.u64.low %v3453_v4, %v1185_v2  ;;  %v3485_v47 = vmul.u32.u64.high %v3453_v4, %v1185_v2, %v3484_v63  ;;  %v3496_v32 = vsel %vm4893_vm14, %v810_v0, %v3429_v12 }
 0x17c   :  { %v1106_v15 = vclz %v2545_v44  ;;  %v3490_v11 = vmul.u32.u64.low %v3453_v4, %v1189_v39  ;;  %v3491_v34 = vmul.u32.u64.high %v3453_v4, %v1189_v39, %v3490_v11  ;;  %v3501_v36 = vsel %vm4863_vm1, %v914_v25, %v3435_v45 }
 0x17d   :  { %v1181_v28 = vsel %vm1175_vm3, %v1178_v24, %v1180_v49  ;;  %v1256_v21 = vadd.s32 1, %v2552_v7  ;;  %v1014_v51 = vand.u32 2147483647, %v1013_v52  ;;  %v4934_v39 = vand.u32 2147483647, %v3418_v55 }
 0x17e   :  { %v2546_v56 = vadd.s32 4294967294, %v1106_v15  ;;  %v3510_v3 = vadd.f32 %v3011_v40, %v3408_v23  ;;  %v1016_v12 = vcvt.s32.f32 %v1009_v30  ;;  %v1200_v0 = vadd.s32 1, %v3485_v47 }
 0x17f   :  { %v1253_v62 = vand.u32 8388607, %v4934_v39  ;;  %vm1257_vm8 = vcmp.gt.s32.totalorder %v1256_v21, 0  ;;  %v3515_v45 = vadd.f32 %v3110_v46, %v3504_v60  ;;  %v1197_v25 = vmul.u32 %v3453_v4, %v1181_v28 }
 0x180   :  { %vm2547_vm9 = vcmp.lt.s32.totalorder %v2546_v56, 0  ;;  %vm1199_vm10 = vc.u32 %v3491_v34, %v3484_v63  ;;  %v1258_v43 = vsel %vm1257_vm8, %v1256_v21, 0  ;;  %v1094_v41 = vadd.s32 %v3402_v20, %v3412_v6 }
 0x181   :  { %v1109_v40 = vsel %vm2547_vm9, 0, %v2546_v56  ;;  %v1201_v23 = vsel %vm1199_vm10, %v1200_v0, %v3485_v47  ;;  %v1260_v54 = vand.u32 31, %v1258_v43  ;;  %v3523_v50 = vmul.f32 %v1016_v12, %v1014_v51 }
 0x182   :  { %v1114_v13 = vsub.s32 4294967266, %v1109_v40  ;;  %v1202_v58 = vadd.s32 %v1201_v23, %v1197_v25  ;;  %v1254_v46 = vor.u32 8388608, %v1253_v62  ;;  %v1110_v52 = vsub.s32 32, %v1109_v40 }
 0x183   :  { %v1261_v2 = vsub.s32 32, %v1260_v54  ;;  %v4852_v4 = vand.u32 2147483647, %v3510_v3  ;;  %v1353_v5 = vand.u32 2139095040, %v3510_v3  ;;  %v1263_v24 = vshll.u32 %v4917_v18, %v1260_v54 }
 0x184   :  { %v1115_v7 = vadd.s32 127, %v1114_v13  ;;  %v1203_v44 = vadd.s32 536870912, %v1202_v58  ;;  %v1266_v20 = vshll.u32 %v4911_v59, %v1260_v54  ;;  %v1269_v48 = vshll.u32 %v4912_v29, %v1260_v54  ;;  %v3533_v47 = vpop.eup %2708 }
 0x185   :  { %v1264_v6 = vshrl.u32 %v4911_v59, %v1261_v2  ;;  %v1267_v49 = vshrl.u32 %v4912_v29, %v1261_v2  ;;  %v1270_v30 = vshrl.u32 %v4913_v37, %v1261_v2  ;;  %4935 = vst [vmem:[#allocation27_spill] sm:$0xff] %v3533_v47  ;;  %v1259_v11 = vshrl.u32 %v1258_v43, 5 }
 0x186   :  { %v3535_v15 = vshrl.u32 %v1203_v44, 30  ;;  %v1272_v28 = vshll.u32 %v4913_v37, %v1260_v54  ;;  %v1273_v21 = vshrl.u32 %v4914_v1, %v1261_v2  ;;  %v3539_v62 = vshll.u32 %v1254_v46, 8 }
 0x187   :  { %v1265_v51 = vor.u32 %v1264_v6, %v1263_v24  ;;  %v1268_v56 = vor.u32 %v1267_v49, %v1266_v20  ;;  %v1271_v39 = vor.u32 %v1270_v30, %v1269_v48  ;;  %v4937_v12 = vand.u32 2147483647, %v3024_v14 }
 0x188   :  { %4936 = vst [vmem:[#allocation28_spill] sm:$0xff] %v3535_v15  ;;  %v1111_v25 = vshll.u32 %v3471_v35, %v1109_v40  ;;  %v1116_v23 = vshll.u32 %v1115_v7, 23  ;;  %v1205_v43 = vshll.u32 %v3535_v15, 30  ;;  %v1274_v13 = vor.u32 %v1273_v21, %v1272_v28 }
 0x189   :  { %vm3543_vm11 = vcmp.le.f32.partialorder %v4937_v12, 0.7853982  ;;  %v4940_v44 = vand.u32 2147483647, %v3084_v16  ;;  %v4941_v24 = vmov 0  ;;  %v1112_v46 = vshrl.u32 %v1094_v41, %v1110_v52 }
 0x18a   :  { %v1262_v20 = vshrl.u32 %v4917_v18, %v1261_v2  ;;  %v1275_v6 = vshll.u32 %v4914_v1, %v1260_v54  ;;  %v1276_v49 = vshrl.u32 %v4915_v27, %v1261_v2  ;;  %v3558_v48 = vsub.s32 %v1202_v58, %v1205_v43 }
 0x18b   :  { %vm3551_vm12 = vcmp.le.f32.partialorder %v4940_v44, 0.7853982  ;;  %vm1278_vm2 = vcmp.lt.s32.totalorder %v1259_v11, 1  ;;  %vm1280_vm3 = vcmp.lt.s32.totalorder %v1259_v11, 3  ;;  %vm1281_vm5 = vcmp.lt.s32.totalorder %v1259_v11, 4 }
 0x18c   :  { %v4942_v24 = vsel %vm3551_vm12, 4294967295, %v4941_v24  ;;  %v1277_v35 = vor.u32 %v1276_v49, %v1275_v6  ;;  %v1283_v40 = vsel %vm1281_vm5, %v1271_v39, 2102212464  ;;  %v1286_v7 = vsel %vm1278_vm2, %v1265_v51, %v1268_v56 }
 0x18d   :  { %4943 = vst [vmem:[#allocation29_spill] sm:$0xff] %v4942_v24  ;;  %v1287_v30 = vsel %vm1281_vm5, %v1274_v13, 920167782  ;;  %v1117_v28 = vor.u32 4788187, %v1116_v23  ;;  %v1208_v21 = vsub.s32 0, %v3558_v48  ;;  %v1113_v52 = vor.u32 %v1112_v46, %v1111_v25 }
 0x18e   :  { %vm1279_vm7 = vcmp.lt.s32.totalorder %v1259_v11, 2  ;;  %v1288_v41 = vsel %vm1280_vm3, %v1271_v39, %v1287_v30  ;;  %v1290_v58 = vsel %vm1278_vm2, %v1268_v56, %v1271_v39  ;;  %v1291_v2 = vsel %vm1281_vm5, %v1277_v35, 1326507024 }
 0x18f   :  { %v1289_v54 = vsel %vm1279_vm7, %v1286_v7, %v1288_v41  ;;  %v2549_v12 = vmin.u32 %v1208_v21, %v3558_v48  ;;  %v1282_v43 = vsel %vm1278_vm2, %v1262_v20, %v1265_v51  ;;  %v1284_v44 = vsel %vm1280_vm3, %v1268_v56, %v1283_v40 }
 0x190   :  { %v1292_v6 = vsel %vm1280_vm3, %v1274_v13, %v1291_v2  ;;  %vm4882_vm8 = vcmp.lt.s32.totalorder %v3202_v53, 0  ;;  %v3572_v49 = vmul.u32.u64.low %v3539_v62, %v1289_v54  ;;  %v3573_v25 = vmul.u32.u64.high %v3539_v62, %v1289_v54, %v3572_v49 }
 0x191   :  { %v1293_v23 = vsel %vm1279_vm7, %v1290_v58, %v1292_v6  ;;  %v1354_v46 = vshrl.u32 %v1353_v5, 23  ;;  %v1118_v39 = vand.u32 2147483647, %v1117_v28  ;;  %v1210_v35 = vclz %v2549_v12 }
 0x192   :  { %v3577_v7 = vmul.u32.u64.low %v3539_v62, %v1293_v23  ;;  %v3578_v30 = vmul.u32.u64.high %v3539_v62, %v1293_v23, %v3577_v7  ;;  %v814_v51 = vsel %vm3543_vm11, %v3024_v14, %v3496_v32  ;;  %v1285_v56 = vsel %vm1279_vm7, %v1282_v43, %v1284_v44 }
 0x193   :  { %v2556_v13 = vadd.s32 4294967169, %v1354_v46  ;;  %v1357_v20 = vand.u32 8388607, %v4852_v4  ;;  %v3591_v5 = vsel %vm3551_vm12, %v3084_v16, %v3501_v36  ;;  %v1120_v40 = vcvt.s32.f32 %v1113_v52 }
 0x194   :  { %v2550_v28 = vadd.s32 4294967294, %v1210_v35  ;;  %v1457_v21 = vand.u32 2139095040, %v3515_v45  ;;  %v1018_v41 = vxor.u32 2147483648, %v3523_v50  ;;  %v1304_v32 = vadd.s32 1, %v3573_v25 }
 0x195   :  { %v1360_v11 = vadd.s32 1, %v2556_v13  ;;  %v4851_v54 = vand.u32 2147483647, %v3515_v45  ;;  %v3597_v58 = vmul.f32 %v1120_v40, %v1118_v39  ;;  %v1301_v2 = vmul.u32 %v3539_v62, %v1285_v56 }
 0x196   :  { %vm2551_vm9 = vcmp.lt.s32.totalorder %v2550_v28, 0  ;;  %vm1303_vm10 = vc.u32 %v3578_v30, %v3572_v49  ;;  %v1358_v12 = vor.u32 8388608, %v1357_v20  ;;  %2710 = vcosq.f32 %v814_v51 }
 0x197   :  { %v1213_v36 = vsel %vm2551_vm9, 0, %v2550_v28  ;;  %v1305_v52 = vsel %vm1303_vm10, %v1304_v32, %v3573_v25  ;;  %vm1361_vm2 = vcmp.gt.s32.totalorder %v1360_v11, 0  ;;  %v1458_v6 = vshrl.u32 %v1457_v21, 23 }
 0x198   :  { %v1218_v43 = vsub.s32 4294967266, %v1213_v36  ;;  %v1306_v44 = vadd.s32 %v1305_v52, %v1301_v2  ;;  %2712 = vsinq.f32 %v814_v51  ;;  %v1214_v23 = vsub.s32 32, %v1213_v36 }
 0x199   :  { %v1362_v46 = vsel %vm1361_vm2, %v1360_v11, 0  ;;  %v3605_v39 = vand.u32 8388607, %v4851_v54  ;;  %2714 = vcosq.f32 %v3591_v5  ;;  %v3611_v62 = vsel %vm4882_vm8, %v1018_v41, %v3523_v50 }
 0x19a   :  { %v1219_v25 = vadd.s32 127, %v1218_v43  ;;  %v1307_v35 = vadd.s32 536870912, %v1306_v44  ;;  %v1198_v51 = vadd.s32 %v3484_v63, %v3491_v34  ;;  %v1364_v56 = vand.u32 31, %v1362_v46 }
 0x19b   :  { %v3616_v13 = vshll.u32 %v1358_v12, 8  ;;  %v1215_v20 = vshll.u32 %v3558_v48, %v1213_v36  ;;  %v2560_v21 = vadd.s32 4294967169, %v1458_v6  ;;  %v1363_v11 = vshrl.u32 %v1362_v46, 5 }
 0x19c   :  { %v1220_v40 = vshll.u32 %v1219_v25, 23  ;;  %v3619_v28 = vshrl.u32 %v1307_v35, 30  ;;  %v1216_v32 = vshrl.u32 %v1198_v51, %v1214_v23  ;;  %v1365_v50 = vsub.s32 32, %v1364_v56 }
 0x19d   :  { %v1367_v52 = vshll.u32 %v4917_v18, %v1364_v56  ;;  %v1370_v63 = vshll.u32 %v4911_v59, %v1364_v56  ;;  %v1373_v34 = vshll.u32 %v4912_v29, %v1364_v56  ;;  %v1376_v23 = vshll.u32 %v4913_v37, %v1364_v56 }
 0x19e   :  { %4944 = vst [vmem:[#allocation30_spill] sm:$0xff] %v3619_v28  ;;  %v1309_v2 = vshll.u32 %v3619_v28, 30  ;;  %v1221_v12 = vor.u32 4788187, %v1220_v40  ;;  %v1368_v48 = vshrl.u32 %v4911_v59, %v1365_v50  ;;  %v1371_v36 = vshrl.u32 %v4912_v29, %v1365_v50 }
 0x19f   :  { %v1374_v43 = vshrl.u32 %v4913_v37, %v1365_v50  ;;  %v1377_v46 = vshrl.u32 %v4914_v1, %v1365_v50  ;;  %v1379_v25 = vshll.u32 %v4914_v1, %v1364_v56  ;;  %v4945_v35 = vand.u32 2147483647, %v3202_v53 }
 0x1a0   :  { %v3629_v6 = vsub.s32 %v1306_v44, %v1309_v2  ;;  %v4946_v51 = vmov 0  ;;  %v1369_v40 = vor.u32 %v1368_v48, %v1367_v52  ;;  %v1372_v54 = vor.u32 %v1371_v36, %v1370_v63  ;;  %v3641_v7 = vpop.eup %2710 }
 0x1a1   :  { %vm3636_vm3 = vcmp.le.f32.partialorder %v4945_v35, 0.7853982  ;;  %v1375_v4 = vor.u32 %v1374_v43, %v1373_v34  ;;  %v1380_v41 = vshrl.u32 %v4915_v27, %v1365_v50  ;;  %vm4862_vm5 = vcmp.lt.s32.totalorder %v3283_v22, 0 }
 0x1a2   :  { %v4947_v51 = vsel %vm3636_vm3, 4294967295, %v4946_v51  ;;  %v1217_v44 = vor.u32 %v1216_v32, %v1215_v20  ;;  %v1312_v2 = vsub.s32 0, %v3629_v6  ;;  %v1378_v28 = vor.u32 %v1377_v46, %v1376_v23  ;;  %v3645_v15 = vpop.eup %2712 }
 0x1a3   :  { %4948 = vst [vmem:[#allocation31_spill] sm:$0xff] %v4947_v51  ;;  %v1464_v56 = vadd.s32 1, %v2560_v21  ;;  %v1222_v35 = vand.u32 2147483647, %v1221_v12  ;;  %v1366_v24 = vshrl.u32 %v4917_v18, %v1365_v50  ;;  %v1381_v16 = vor.u32 %v1380_v41, %v1379_v25  ;;  %v3648_v52 = vpop.eup %2714 }
 0x1a4   :  { %vm1382_vm7 = vcmp.lt.s32.totalorder %v1363_v11, 1  ;;  %4949 = vst [vmem:[#allocation32_spill] sm:$0xff] %v3648_v52  ;;  %v2553_v63 = vmin.u32 %v1312_v2, %v3629_v6  ;;  %vm1384_vm9 = vcmp.lt.s32.totalorder %v1363_v11, 3  ;;  %vm1385_vm10 = vcmp.lt.s32.totalorder %v1363_v11, 4 }
 0x1a5   :  { %v1390_v34 = vsel %vm1382_vm7, %v1369_v40, %v1372_v54  ;;  %v1387_v48 = vsel %vm1385_vm10, %v1375_v4, 2102212464  ;;  %v1391_v20 = vsel %vm1385_vm10, %v1378_v28, 920167782  ;;  %v1394_v32 = vsel %vm1382_vm7, %v1372_v54, %v1375_v4 }
 0x1a6   :  { %v1395_v36 = vsel %vm1385_vm10, %v1381_v16, 1326507024  ;;  %v1314_v43 = vclz %v2553_v63  ;;  %vm1383_vm2 = vcmp.lt.s32.totalorder %v1363_v11, 2  ;;  %v1392_v21 = vsel %vm1384_vm9, %v1375_v4, %v1391_v20 }
 0x1a7   :  { %v3654_v50 = vadd.f32 %v3172_v31, %v3504_v60  ;;  %v1224_v41 = vcvt.s32.f32 %v1217_v44  ;;  %v1386_v12 = vsel %vm1382_vm7, %v1366_v24, %v1369_v40  ;;  %v1393_v23 = vsel %vm1383_vm2, %v1390_v34, %v1392_v21 }
 0x1a8   :  { %v1396_v46 = vsel %vm1384_vm9, %v1378_v28, %v1395_v36  ;;  %v2554_v25 = vadd.s32 4294967294, %v1314_v43  ;;  %v1388_v2 = vsel %vm1384_vm9, %v1372_v54, %v1387_v48  ;;  %vm1465_vm10 = vcmp.gt.s32.totalorder %v1464_v56, 0 }
 0x1a9   :  { %v1397_v52 = vsel %vm1383_vm2, %v1394_v32, %v1396_v46  ;;  %v3660_v16 = vmul.f32 %v1224_v41, %v1222_v35  ;;  %v1466_v31 = vsel %vm1465_vm10, %v1464_v56, 0  ;;  %v3670_v60 = vsel %vm3636_vm3, %v3202_v53, %v3611_v62 }
 0x1aa   :  { %v3663_v4 = vmul.u32.u64.low %v3616_v13, %v1397_v52  ;;  %v3664_v63 = vmul.u32.u64.high %v3616_v13, %v1397_v52, %v3663_v4  ;;  %vm2555_vm7 = vcmp.lt.s32.totalorder %v2554_v25, 0  ;;  %v4950_v28 = vxor.u32 2147483648, %v3597_v58 }
 0x1ab   :  { %v3673_v24 = vmul.u32.u64.low %v3616_v13, %v1393_v23  ;;  %v3674_v54 = vmul.u32.u64.high %v3616_v13, %v1393_v23, %v3673_v24  ;;  %v1317_v44 = vsel %vm2555_vm7, 0, %v2554_v25  ;;  %v1389_v56 = vsel %vm1383_vm2, %v1386_v12, %v1388_v2 }
 0x1ac   :  { %v3682_v40 = vsel %vm4862_vm5, %v4950_v28, %v3597_v58  ;;  %v1468_v35 = vand.u32 31, %v1466_v31  ;;  %v1302_v62 = vadd.s32 %v3572_v49, %v3578_v30  ;;  %v1322_v52 = vsub.s32 4294967266, %v1317_v44 }
 0x1ad   :  { %v4951_v34 = vor.u32 8388608, %v3605_v39  ;;  %v1318_v36 = vsub.s32 32, %v1317_v44  ;;  %vm1407_vm9 = vc.u32 %v3664_v63, %v3673_v24  ;;  %v1405_v43 = vmul.u32 %v3616_v13, %v1389_v56 }
 0x1ae   :  { %v1469_v58 = vsub.s32 32, %v1468_v35  ;;  %v1323_v11 = vadd.s32 127, %v1322_v52  ;;  %v1408_v21 = vadd.s32 1, %v3674_v54  ;;  %v1467_v49 = vshrl.u32 %v1466_v31, 5 }
 0x1af   :  { %v3689_v48 = vshll.u32 %v4951_v34, 8  ;;  %v1471_v30 = vshll.u32 %v4917_v18, %v1468_v35  ;;  %v1474_v41 = vshll.u32 %v4911_v59, %v1468_v35  ;;  %v1477_v25 = vshll.u32 %v4912_v29, %v1468_v35 }
 0x1b0   :  { %v1472_v39 = vshrl.u32 %v4911_v59, %v1469_v58  ;;  %v1475_v12 = vshrl.u32 %v4912_v29, %v1469_v58  ;;  %v1324_v23 = vshll.u32 %v1323_v11, 23  ;;  %v1409_v46 = vsel %vm1407_vm9, %v1408_v21, %v3674_v54 }
 0x1b1   :  { %v1478_v2 = vshrl.u32 %v4913_v37, %v1469_v58  ;;  %v1319_v13 = vshll.u32 %v3629_v6, %v1317_v44  ;;  %v1320_v4 = vshrl.u32 %v1302_v62, %v1318_v36  ;;  %v1410_v28 = vadd.s32 %v1409_v46, %v1405_v43 }
 0x1b2   :  { %v1473_v31 = vor.u32 %v1472_v39, %v1471_v30  ;;  %v1476_v56 = vor.u32 %v1475_v12, %v1474_v41  ;;  %v1480_v34 = vshll.u32 %v4913_v37, %v1468_v35  ;;  %v1481_v20 = vshrl.u32 %v4914_v1, %v1469_v58 }
 0x1b3   :  { %v1479_v52 = vor.u32 %v1478_v2, %v1477_v25  ;;  %v4952_v32 = vand.u32 2147483647, %v3283_v22  ;;  %v4953_v11 = vmov 0  ;;  %v1325_v54 = vor.u32 4788187, %v1324_v23 }
 0x1b4   :  { %v1411_v21 = vadd.s32 536870912, %v1410_v28  ;;  %v1483_v10 = vshll.u32 %v4914_v1, %v1468_v35  ;;  %v1484_v6 = vshrl.u32 %v4915_v27, %v1469_v58  ;;  %vm4865_vm10 = vcmp.lt.s32.totalorder %v3344_v9, 0 }
 0x1b5   :  { %vm3709_vm2 = vcmp.le.f32.partialorder %v4952_v32, 0.7853982  ;;  %v1470_v44 = vshrl.u32 %v4917_v18, %v1469_v58  ;;  %v1482_v62 = vor.u32 %v1481_v20, %v1480_v34  ;;  %vm1486_vm7 = vcmp.lt.s32.totalorder %v1467_v49, 1 }
 0x1b6   :  { %v4954_v11 = vsel %vm3709_vm2, 4294967295, %v4953_v11  ;;  %vm1489_vm9 = vcmp.lt.s32.totalorder %v1467_v49, 4  ;;  %v1321_v36 = vor.u32 %v1320_v4, %v1319_v13  ;;  %v3717_v43 = vshrl.u32 %v1411_v21, 30 }
 0x1b7   :  { %4955 = vst [vmem:[#allocation33_spill] sm:$0xff] %v4954_v11  ;;  %v1485_v32 = vor.u32 %v1484_v6, %v1483_v10  ;;  %v1491_v30 = vsel %vm1489_vm9, %v1479_v52, 2102212464  ;;  %vm1487_vm5 = vcmp.lt.s32.totalorder %v1467_v49, 2  ;;  %vm1488_vm1 = vcmp.lt.s32.totalorder %v1467_v49, 3 }
 0x1b8   :  { %4956 = vst [vmem:[#allocation34_spill] sm:$0xff] %v3717_v43  ;;  %v1494_v39 = vsel %vm1486_vm7, %v1473_v31, %v1476_v56  ;;  %v1495_v35 = vsel %vm1489_vm9, %v1482_v62, 920167782  ;;  %v1326_v41 = vand.u32 2147483647, %v1325_v54  ;;  %v1413_v12 = vshll.u32 %v3717_v43, 30 }
 0x1b9   :  { %v1496_v23 = vsel %vm1488_vm1, %v1479_v52, %v1495_v35  ;;  %v1498_v46 = vsel %vm1486_vm7, %v1476_v56, %v1479_v52  ;;  %v1490_v58 = vsel %vm1486_vm7, %v1470_v44, %v1473_v31  ;;  %v1492_v20 = vsel %vm1488_vm1, %v1476_v56, %v1491_v30 }
 0x1ba   :  { %v1497_v25 = vsel %vm1487_vm5, %v1494_v39, %v1496_v23  ;;  %v1499_v2 = vsel %vm1489_vm9, %v1485_v32, 1326507024  ;;  %vm416_vm15 = vcmp.lt.s32.totalorder %v2916_v33, 0  ;;  %v3725_v10 = vsub.s32 %v1410_v28, %v1413_v12 }
 0x1bb   :  { %v1500_v13 = vsel %vm1488_vm1, %v1482_v62, %v1499_v2  ;;  %v3728_v4 = vmul.u32.u64.low %v3689_v48, %v1497_v25  ;;  %v3729_v34 = vmul.u32.u64.high %v3689_v48, %v1497_v25, %v3728_v4  ;;  %2716 = vsinq.f32 %v3591_v5 }
 0x1bc   :  { %v1328_v54 = vcvt.s32.f32 %v1321_v36  ;;  %v1501_v31 = vsel %vm1487_vm5, %v1498_v46, %v1500_v13  ;;  %v1561_v56 = vand.u32 2139095040, %v3654_v50  ;;  %2718 = vcosq.f32 %v3670_v60 }
 0x1bd   :  { %v1416_v52 = vsub.s32 0, %v3725_v10  ;;  %v3738_v28 = vmul.u32.u64.low %v3689_v48, %v1501_v31  ;;  %v3739_v21 = vmul.u32.u64.high %v3689_v48, %v1501_v31, %v3738_v28  ;;  %v1126_v6 = vsel %vm3709_vm2, %v3283_v22, %v3682_v40 }
 0x1be   :  { %v1329_v44 = vmul.f32 %v1328_v54, %v1326_v41  ;;  %v1493_v5 = vsel %vm1487_vm5, %v1490_v58, %v1492_v20  ;;  %v1562_v62 = vshrl.u32 %v1561_v56, 23  ;;  %v4957_v36 = vxor.u32 2147483648, %v3660_v16 }
 0x1bf   :  { %v2557_v30 = vmin.u32 %v1416_v52, %v3725_v10  ;;  %v1512_v39 = vadd.s32 1, %v3729_v34  ;;  %v4958_v35 = vand.u32 2147483647, %v3654_v50  ;;  %v498_v23 = vxor.u32 2147483648, %v3442_v38 }
 0x1c0   :  { %v1227_v32 = vsel %vm4865_vm10, %v4957_v36, %v3660_v16  ;;  %2720 = vsinq.f32 %v3670_v60  ;;  %v4959_v40 = vand.u32 2147483647, %v3344_v9  ;;  %v4960_v49 = vmov 0 }
 0x1c1   :  { %v1565_v12 = vand.u32 8388607, %v4958_v35  ;;  %v2564_v41 = vadd.s32 4294967169, %v1562_v62  ;;  %2722 = vcosq.f32 %v1126_v6  ;;  %v1418_v16 = vclz %v2557_v30 }
 0x1c2   :  { %vm3759_vm1 = vcmp.le.f32.partialorder %v4959_v40, 0.7853982  ;;  %v1509_v46 = vmul.u32 %v3689_v48, %v1493_v5  ;;  %vm1511_vm5 = vc.u32 %v3739_v21, %v3728_v4  ;;  %v1330_v60 = vxor.u32 2147483648, %v1329_v44 }
 0x1c3   :  { %v4961_v49 = vsel %vm3759_vm1, 4294967295, %v4960_v49  ;;  %v3769_v58 = vsel %vm3759_vm1, %v3344_v9, %v1227_v32  ;;  %v1513_v20 = vsel %vm1511_vm5, %v1512_v39, %v3729_v34  ;;  %v1568_v25 = vadd.s32 1, %v2564_v41 }
 0x1c4   :  { %4962 = vst [vmem:[#allocation35_spill] sm:$0xff] %v4961_v49  ;;  %v2558_v2 = vadd.s32 4294967294, %v1418_v16  ;;  %v1514_v13 = vadd.s32 %v1513_v20, %v1509_v46  ;;  %v1566_v54 = vor.u32 8388608, %v1565_v12  ;;  %v4866_v31 = vand.u32 2147483647, %v2911_v26 }
 0x1c5   :  { %v3776_v48 = vsel %vm416_vm15, %v498_v23, %v3442_v38  ;;  %2724 = vsinq.f32 %v1126_v6  ;;  %vm4880_vm7 = vcmp.lt.s32.totalorder %v3418_v55, 0  ;;  %vm1569_vm9 = vcmp.gt.s32.totalorder %v1568_v25, 0  ;;  %v3780_v52 = vpop.eup %2716 }
 0x1c6   :  { %2726 = vcosq.f32 %v3769_v58  ;;  %vm2559_vm10 = vcmp.lt.s32.totalorder %v2558_v2, 0  ;;  %v1515_v56 = vadd.s32 536870912, %v1514_v13  ;;  %v1570_v34 = vsel %vm1569_vm9, %v1568_v25, 0  ;;  %4963 = vst [vmem:[#allocation36_spill] sm:$0xff] %v3780_v52  ;;  %v3790_v62 = vpop.eup %2718 }
 0x1c7   :  { %v3784_v28 = vsel %vm4880_vm7, %v1330_v60, %v1329_v44  ;;  %v1406_v5 = vadd.s32 %v3673_v24, %v3664_v63  ;;  %v3788_v38 = vsel %vm2559_vm10, 0, %v2558_v2  ;;  %v1572_v6 = vand.u32 31, %v1570_v34  ;;  %4964 = vst [vmem:[#allocation37_spill] sm:$0xff] %v3790_v62 }
 0x1c8   :  { %v3792_v36 = vshrl.u32 %v1515_v56, 30  ;;  %v3794_v32 = vshll.u32 %v1566_v54, 8  ;;  %v3798_v30 = vand.u32 8388607, %v4866_v31  ;;  %v327_v44 = vshll.u32 %v4917_v18, %v2975_v61 }
 0x1c9   :  { %v1573_v39 = vsub.s32 32, %v1572_v6  ;;  %v328_v63 = vshrl.u32 %v4911_v59, %v3015_v8  ;;  %v330_v24 = vshll.u32 %v4911_v59, %v2975_v61  ;;  %v331_v35 = vshrl.u32 %v4912_v29, %v3015_v8 }
 0x1ca   :  { %4965 = vst [vmem:[#allocation38_spill] sm:$0xff] %v3792_v36  ;;  %v1426_v12 = vsub.s32 4294967266, %v3788_v38  ;;  %v1517_v23 = vshll.u32 %v3792_v36, 30  ;;  %v1575_v40 = vshll.u32 %v4917_v18, %v1572_v6  ;;  %v1578_v41 = vshll.u32 %v4911_v59, %v1572_v6  ;;  %v3812_v16 = vpop.eup %2720 }
 0x1cb   :  { %v1576_v46 = vshrl.u32 %v4911_v59, %v1573_v39  ;;  %v1579_v60 = vshrl.u32 %v4912_v29, %v1573_v39  ;;  %v1581_v20 = vshll.u32 %v4912_v29, %v1572_v6  ;;  %v1582_v25 = vshrl.u32 %v4913_v37, %v1573_v39  ;;  %v3818_v2 = vpop.eup %2722 }
 0x1cc   :  { %4966 = vst [vmem:[#allocation39_spill] sm:$0xff] %v3818_v2  ;;  %v3820_v54 = vsub.s32 %v1514_v13, %v1517_v23  ;;  %v1571_v56 = vshrl.u32 %v1570_v34, 5  ;;  %v1584_v31 = vshll.u32 %v4913_v37, %v1572_v6  ;;  %v1585_v36 = vshrl.u32 %v4914_v1, %v1573_v39 }
 0x1cd   :  { %v1577_v11 = vor.u32 %v1576_v46, %v1575_v40  ;;  %v1580_v22 = vor.u32 %v1579_v60, %v1578_v41  ;;  %v1583_v49 = vor.u32 %v1582_v25, %v1581_v20  ;;  %v333_v9 = vshll.u32 %v4912_v29, %v2975_v61 }
 0x1ce   :  { %v1422_v43 = vsub.s32 32, %v3788_v38  ;;  %v1520_v52 = vsub.s32 0, %v3820_v54  ;;  %v1586_v47 = vor.u32 %v1585_v36, %v1584_v31  ;;  %v334_v13 = vshrl.u32 %v4913_v37, %v3015_v8 }
 0x1cf   :  { %v3830_v23 = vpop.eup %2724  ;;  %v4968_v34 = vand.u32 2147483647, %v3418_v55  ;;  %v1427_v40 = vadd.s32 127, %v1426_v12  ;;  %v1574_v41 = vshrl.u32 %v4917_v18, %v1573_v39  ;;  %v1587_v61 = vshll.u32 %v4914_v1, %v1572_v6 }
 0x1d0   :  { %4967 = vst [vmem:[#allocation40_spill] sm:$0xff] %v3830_v23  ;;  %v1588_v46 = vshrl.u32 %v4915_v27, %v1573_v39  ;;  %v3841_v60 = vpop.eup %2726  ;;  %v2561_v31 = vmin.u32 %v1520_v52, %v3820_v54  ;;  %vm1590_vm5 = vcmp.lt.s32.totalorder %v1571_v56, 1  ;;  %vm1592_vm9 = vcmp.lt.s32.totalorder %v1571_v56, 3 }
 0x1d1   :  { %vm3834_vm10 = vcmp.le.f32.partialorder %v4968_v34, 0.7853982  ;;  %4971 = vst [vmem:[#allocation41_spill] sm:$0xff] %v3841_v60  ;;  %vm1593_vm7 = vcmp.lt.s32.totalorder %v1571_v56, 4  ;;  %v1598_v25 = vsel %vm1590_vm5, %v1577_v11, %v1580_v22  ;;  %vm1591_vm8 = vcmp.lt.s32.totalorder %v1571_v56, 2 }
 0x1d2   :  { %v1589_v36 = vor.u32 %v1588_v46, %v1587_v61  ;;  %v1595_v20 = vsel %vm1593_vm7, %v1583_v49, 2102212464  ;;  %v1599_v34 = vsel %vm1593_vm7, %v1586_v47, 920167782  ;;  %v1522_v23 = vclz %v2561_v31 }
 0x1d3   :  { %v1594_v12 = vsel %vm1590_vm5, %v1574_v41, %v1577_v11  ;;  %v1600_v42 = vsel %vm1592_vm9, %v1583_v49, %v1599_v34  ;;  %v1596_v6 = vsel %vm1592_vm9, %v1580_v22, %v1595_v20  ;;  %v1602_v39 = vsel %vm1590_vm5, %v1580_v22, %v1583_v49 }
 0x1d4   :  { %v1601_v1 = vsel %vm1591_vm8, %v1598_v25, %v1600_v42  ;;  %v1603_v27 = vsel %vm1593_vm7, %v1589_v36, 1326507024  ;;  %v1428_v60 = vshll.u32 %v1427_v40, 23  ;;  %v2562_v57 = vadd.s32 4294967294, %v1522_v23  ;;  %v4974_v23 = vld [vmem:[#allocation7_spill] sm:$0xff] }
 0x1d5   :  { %v1604_v52 = vsel %vm1592_vm9, %v1586_v47, %v1603_v27  ;;  %v329_v51 = vor.u32 %v328_v63, %v327_v44  ;;  %v1424_v53 = vshrl.u32 %v1406_v5, %v1422_v43  ;;  %v1597_v11 = vsel %vm1591_vm8, %v1594_v12, %v1596_v6 }
 0x1d6   :  { %v1605_v61 = vsel %vm1591_vm8, %v1602_v39, %v1604_v52  ;;  %v3848_v46 = vmul.u32.u64.low %v3794_v32, %v1601_v1  ;;  %v3849_v62 = vmul.u32.u64.high %v3794_v32, %v1601_v1, %v3848_v46  ;;  %vm2563_vm14 = vcmp.lt.s32.totalorder %v2562_v57, 0  ;;  %v4975_v52 = vld [vmem:[#allocation3_spill] sm:$0xff] }
 0x1d7   :  { %v3853_v41 = vmul.u32.u64.low %v3794_v32, %v1605_v61  ;;  %v3854_v31 = vmul.u32.u64.high %v3794_v32, %v1605_v61, %v3853_v41  ;;  %v1423_v22 = vshll.u32 %v3725_v10, %v3788_v38  ;;  %v1525_v42 = vsel %vm2563_vm14, 0, %v2562_v57 }
 0x1d8   :  { %v332_v49 = vor.u32 %v331_v35, %v330_v24  ;;  %v335_v27 = vor.u32 %v334_v13, %v333_v9  ;;  %2728 = vsinq.f32 %v3769_v58  ;;  %v1334_v1 = vsel %vm3834_vm10, %v3418_v55, %v3784_v28  ;;  %v4972_v58 = vld [vmem:[#allocation9_spill] sm:$0xff]  ;;  %v4973_v13 = vld [vmem:[#allocation11_spill] sm:$0xff] }
 0x1d9   :  { %v1429_v47 = vor.u32 4788187, %v1428_v60  ;;  %v1530_v43 = vsub.s32 4294967266, %v1525_v42  ;;  %v1425_v5 = vor.u32 %v1424_v53, %v1423_v22  ;;  %v1613_v44 = vmul.u32 %v3794_v32, %v1597_v11 }
 0x1da   :  { %v1616_v63 = vadd.s32 1, %v3849_v62  ;;  %v318_v56 = vor.u32 8388608, %v3798_v30  ;;  %v1526_v10 = vsub.s32 32, %v1525_v42  ;;  %vm1615_vm14 = vc.u32 %v3854_v31, %v3848_v46 }
 0x1db   :  { %vm342_vm8 = vcmp.lt.s32.totalorder %v3032_v19, 1  ;;  %vm344_vm7 = vcmp.lt.s32.totalorder %v3032_v19, 3  ;;  %v1531_v57 = vadd.s32 127, %v1530_v43  ;;  %v1430_v38 = vand.u32 2147483647, %v1429_v47 }
 0x1dc   :  { %v1617_v9 = vsel %vm1615_vm14, %v1616_v63, %v3849_v62  ;;  %v350_v53 = vsel %vm342_vm8, %v329_v51, %v332_v49  ;;  %v352_v28 = vsel %vm344_vm7, %v335_v27, %v4972_v58  ;;  %v1510_v32 = vadd.s32 %v3728_v4, %v3739_v21 }
 0x1dd   :  { %v1618_v30 = vadd.s32 %v1617_v9, %v1613_v44  ;;  %v326_v24 = vshrl.u32 %v4917_v18, %v3015_v8  ;;  %vm343_vm5 = vcmp.lt.s32.totalorder %v3032_v19, 2  ;;  %v347_v62 = vsel %vm345_vm0, %v335_v27, 2102212464 }
 0x1de   :  { %v354_v35 = vsel %vm342_vm8, %v332_v49, %v335_v27  ;;  %v356_v40 = vsel %vm344_vm7, %v4974_v23, %v4973_v13  ;;  %v1528_v60 = vshrl.u32 %v1510_v32, %v1526_v10  ;;  %v353_v4 = vsel %vm343_vm5, %v350_v53, %v352_v28 }
 0x1df   :  { %v1619_v36 = vadd.s32 536870912, %v1618_v30  ;;  %v357_v8 = vsel %vm343_vm5, %v354_v35, %v356_v40  ;;  %v1432_v21 = vcvt.s32.f32 %v1425_v5  ;;  %v1527_v20 = vshll.u32 %v3820_v54, %v1525_v42  ;;  %v4976_v5 = vld [vmem:[#allocation8_spill] sm:$0xff] }
 0x1e0   :  { %v1532_v25 = vshll.u32 %v1531_v57, 23  ;;  %v358_v34 = vshll.u32 %v318_v56, 8  ;;  %v346_v6 = vsel %vm342_vm8, %v326_v24, %v329_v51  ;;  %v348_v39 = vsel %vm344_vm7, %v332_v49, %v347_v62  ;;  %v4977_v57 = vld [vmem:[#allocation6_spill] sm:$0xff]  ;;  %v5038_v40 = vld [vmem:[#allocation20_spill] sm:$0xff] }
 0x1e1   :  { %v3894_v12 = vshrl.u32 %v1619_v36, 30  ;;  %v518_v61 = vand.u32 2147483647, %v4975_v52  ;;  %2730 = vcosq.f32 %v1334_v1  ;;  %v1433_v42 = vmul.f32 %v1432_v21, %v1430_v38 }
 0x1e2   :  { %v3901_v11 = vmul.u32.u64.low %v358_v34, %v357_v8  ;;  %v3902_v41 = vmul.u32.u64.high %v358_v34, %v357_v8, %v3901_v11  ;;  %v3904_v22 = vmul.u32.u64.low %v358_v34, %v353_v4  ;;  %v3905_v27 = vmul.u32.u64.high %v358_v34, %v353_v4, %v3904_v22  ;;  %v3908_v54 = vpop.eup %2728 }
 0x1e3   :  { %v1529_v47 = vor.u32 %v1528_v60, %v1527_v20  ;;  %v1621_v43 = vshll.u32 %v3894_v12, 30  ;;  %vm4895_vm0 = vcmp.lt.s32.totalorder %v3510_v3, 0  ;;  %v1533_v51 = vor.u32 4788187, %v1532_v25  ;;  %v4981_v20 = vld [vmem:[#allocation12_spill] sm:$0xff]  ;;  %v4982_v11 = vld [vmem:[#allocation17_spill] sm:$0xff] }
 0x1e4   :  { %v349_v49 = vsel %vm343_vm5, %v346_v6, %v348_v39  ;;  %v536_v44 = vshrl.u32 %v4911_v59, %v4976_v5  ;;  %v539_v63 = vshrl.u32 %v4912_v29, %v4976_v5  ;;  %v525_v10 = vand.u32 8388607, %v518_v61 }
 0x1e5   :  { %v3918_v56 = vsub.s32 %v1618_v30, %v1621_v43  ;;  %v535_v9 = vshll.u32 %v4917_v18, %v4977_v57  ;;  %v542_v53 = vshrl.u32 %v4913_v37, %v4976_v5  ;;  %vm367_vm9 = vc.u32 %v3902_v41, %v3904_v22  ;;  %v4983_v43 = vld [vmem:[#allocation18_spill] sm:$0xff] }
 0x1e6   :  { %v368_v19 = vadd.s32 1, %v3905_v27  ;;  %v538_v58 = vshll.u32 %v4911_v59, %v4977_v57  ;;  %v541_v28 = vshll.u32 %v4912_v29, %v4977_v57  ;;  %2732 = vsinq.f32 %v1334_v1 }
 0x1e7   :  { %v1434_v38 = vxor.u32 2147483648, %v1433_v42  ;;  %v1624_v32 = vsub.s32 0, %v3918_v56  ;;  %v365_v30 = vmul.u32 %v358_v34, %v349_v49  ;;  %v537_v62 = vor.u32 %v536_v44, %v535_v9 }
 0x1e8   :  { %v369_v24 = vsel %vm367_vm9, %v368_v19, %v3905_v27  ;;  %v540_v35 = vor.u32 %v539_v63, %v538_v58  ;;  %v543_v13 = vor.u32 %v542_v53, %v541_v28  ;;  %v4978_v23 = vand.u32 2147483647, %v3510_v3 }
 0x1e9   :  { %v1534_v60 = vand.u32 2147483647, %v1533_v51  ;;  %v1536_v36 = vcvt.s32.f32 %v1529_v47  ;;  %v2565_v4 = vmin.u32 %v1624_v32, %v3918_v56  ;;  %v370_v1 = vadd.s32 %v369_v24, %v365_v30  ;;  %v4984_v51 = vld [vmem:[#allocation14_spill] sm:$0xff] }
 0x1ea   :  { %vm3937_vm14 = vcmp.le.f32.partialorder %v4978_v23, 0.7853982  ;;  %v526_v8 = vor.u32 8388608, %v525_v10  ;;  %v534_v21 = vshrl.u32 %v4917_v18, %v4976_v5  ;;  %vm550_vm8 = vcmp.lt.s32.totalorder %v4981_v20, 1 }
 0x1eb   :  { %vm551_vm7 = vcmp.lt.s32.totalorder %v4981_v20, 2  ;;  %v1626_v25 = vclz %v2565_v4  ;;  %v371_v34 = vadd.s32 536870912, %v370_v1  ;;  %vm552_vm5 = vcmp.lt.s32.totalorder %v4981_v20, 3  ;;  %v3960_v5 = vpop.eup %2730 }
 0x1ec   :  { %v555_v6 = vsel %vm553_vm13, %v543_v13, 2102212464  ;;  %v558_v39 = vsel %vm550_vm8, %v537_v62, %v540_v35  ;;  %v560_v27 = vsel %vm552_vm5, %v543_v13, %v4982_v11  ;;  %v562_v47 = vsel %vm550_vm8, %v540_v35, %v543_v13  ;;  %v4985_v13 = vld [vmem:[#allocation5_spill] sm:$0xff] }
 0x1ed   :  { %v564_v49 = vsel %vm552_vm5, %v4984_v51, %v4983_v43  ;;  %v1435_v44 = vsel %vm4895_vm0, %v1434_v38, %v1433_v42  ;;  %v2566_v63 = vadd.s32 4294967294, %v1626_v25  ;;  %v3964_v10 = vshrl.u32 %v371_v34, 30  ;;  %v4990_v34 = vld [vmem:[#allocation21_spill] sm:$0xff] }
 0x1ee   :  { %v565_v57 = vsel %vm551_vm7, %v562_v47, %v564_v49  ;;  %v1537_v9 = vmul.f32 %v1536_v36, %v1534_v60  ;;  %v1614_v53 = vadd.s32 %v3848_v46, %v3854_v31  ;;  %v554_v19 = vsel %vm550_vm8, %v534_v21, %v537_v62  ;;  %v4986_v36 = vld [vmem:[#allocation2_spill] sm:$0xff] }
 0x1ef   :  { %v566_v58 = vshll.u32 %v526_v8, 8  ;;  %vm2567_vm13 = vcmp.lt.s32.totalorder %v2566_v63, 0  ;;  %v373_v28 = vshll.u32 %v3964_v10, 30  ;;  %v556_v42 = vsel %vm552_vm5, %v540_v35, %v555_v6 }
 0x1f0   :  { %v561_v38 = vsel %vm551_vm7, %v558_v39, %v560_v27  ;;  %v1629_v32 = vsel %vm2567_vm13, 0, %v2566_v63  ;;  %v292_v23 = vsub.s32 4, %v4985_v13  ;;  %v3981_v46 = vpop.eup %2732  ;;  %v4987_v4 = vand.u32 2147483647, %v4986_v36 }
 0x1f1   :  { %v3977_v30 = vmul.u32.u64.low %v566_v58, %v565_v57  ;;  %v3978_v24 = vmul.u32.u64.high %v566_v58, %v565_v57, %v3977_v30  ;;  %v1630_v31 = vsub.s32 32, %v1629_v32  ;;  %v1634_v62 = vsub.s32 4294967266, %v1629_v32 }
 0x1f2   :  { %v3983_v60 = vsub.s32 %v370_v1, %v373_v28  ;;  %vm3987_vm9 = vcmp.le.f32.partialorder %v4987_v4, 0.7853982  ;;  %v1438_v35 = vsel %vm3937_vm14, %v3510_v3, %v1435_v44  ;;  %v1631_v6 = vshll.u32 %v3918_v56, %v1629_v32  ;;  %v5012_v4 = vld [vmem:[#allocation16_spill] sm:$0xff] }
 0x1f3   :  { %v3994_v21 = vmul.u32.u64.low %v566_v58, %v561_v38  ;;  %v3995_v25 = vmul.u32.u64.high %v566_v58, %v561_v38, %v3994_v21  ;;  %v294_v1 = vsel %vm3987_vm9, %v4986_v36, %v4990_v34  ;;  %v1632_v39 = vshrl.u32 %v1614_v53, %v1630_v31  ;;  %v5047_v34 = vld [vmem:[#allocation38_spill] sm:$0xff] }
 0x1f4   :  { %v1635_v11 = vadd.s32 127, %v1634_v62  ;;  %v376_v27 = vsub.s32 0, %v3983_v60  ;;  %v1538_v47 = vxor.u32 2147483648, %v1537_v9  ;;  %v557_v43 = vsel %vm551_vm7, %v554_v19, %v556_v42 }
 0x1f5   :  { %vm575_vm8 = vc.u32 %v3978_v24, %v3994_v21  ;;  %v293_v51 = vsel %vm208_vm6, %v292_v23, %v4985_v13  ;;  %v1633_v49 = vor.u32 %v1632_v39, %v1631_v6  ;;  %2734 = vcosq.f32 %v294_v1 }
 0x1f6   :  { %v1636_v44 = vshll.u32 %v1635_v11, 23  ;;  %v2517_v63 = vmin.u32 %v376_v27, %v3983_v60  ;;  %v4991_v56 = vand.u32 2147483647, %v3515_v45  ;;  %v4992_v57 = vmov 0 }
 0x1f7   :  { %vm4894_vm7 = vcmp.lt.s32.totalorder %v3515_v45, 0  ;;  %v576_v20 = vadd.s32 1, %v3995_v25  ;;  %2736 = vsinq.f32 %v294_v1  ;;  %v573_v28 = vmul.u32 %v566_v58, %v557_v43  ;;  %v5000_v1 = vld [vmem:[#allocation10_spill] sm:$0xff] }
 0x1f8   :  { %vm4014_vm5 = vcmp.le.f32.partialorder %v4991_v56, 0.7853982  ;;  %v1637_v53 = vor.u32 4788187, %v1636_v44  ;;  %v378_v19 = vclz %v2517_v63  ;;  %v295_v42 = vsel %vm3987_vm9, 0, %v293_v51 }
 0x1f9   :  { %v4993_v57 = vsel %vm4014_vm5, 4294967295, %v4992_v57  ;;  %2738 = vcosq.f32 %v1438_v35  ;;  %v1539_v38 = vsel %vm4894_vm7, %v1538_v47, %v1537_v9  ;;  %v396_v32 = vsub.s32 4, %v3964_v10 }
 0x1fa   :  { %v577_v30 = vsel %vm575_vm8, %v576_v20, %v3995_v25  ;;  %v1638_v13 = vand.u32 2147483647, %v1637_v53  ;;  %v1640_v23 = vcvt.s32.f32 %v1633_v49  ;;  %v2518_v31 = vadd.s32 4294967294, %v378_v19  ;;  %v5006_v20 = vld [vmem:[#allocation19_spill] sm:$0xff] }
 0x1fb   :  { %v578_v58 = vadd.s32 %v577_v30, %v573_v28  ;;  %2740 = vsinq.f32 %v1438_v35  ;;  %v4994_v62 = vand.u32 2147483647, %v2911_v26  ;;  %vm4896_vm9 = vcmp.lt.s32.totalorder %v2911_v26, 0 }
 0x1fc   :  { %v299_v9 = vadd.s32 3, %v295_v42  ;;  %v4997_v8 = vand.u32 2147483647, %v3654_v50  ;;  %v1641_v25 = vmul.f32 %v1640_v23, %v1638_v13  ;;  %vm2519_vm8 = vcmp.lt.s32.totalorder %v2518_v31, 0 }
 0x1fd   :  { %vm4032_vm13 = vcmp.le.f32.partialorder %v4994_v62, 0.7853982  ;;  %v579_v35 = vadd.s32 536870912, %v578_v58  ;;  %v500_v6 = vsub.s32 4, %v5000_v1  ;;  %v1542_v39 = vsel %vm4014_vm5, %v3515_v45, %v1539_v38 }
 0x1fe   :  { %vm4039_vm7 = vcmp.le.f32.partialorder %v4997_v8, 0.7853982  ;;  %v366_v11 = vadd.s32 %v3904_v22, %v3902_v41  ;;  %v381_v27 = vsel %vm2519_vm8, 0, %v2518_v31  ;;  %v397_v47 = vsel %vm4896_vm9, %v396_v32, %v3964_v10 }
 0x1ff   :  { %v1642_v43 = vxor.u32 2147483648, %v1641_v25  ;;  %v382_v51 = vsub.s32 32, %v381_v27  ;;  %v386_v49 = vsub.s32 4294967266, %v381_v27  ;;  %v5001_v44 = vand.u32 2147483647, %v2916_v33  ;;  %v2735_v19 = vpop.eup %2734 }
 0x200   :  { %vm4061_vm6 = vcmp.le.f32.partialorder %v518_v61, 0.7853982  ;;  %v580_v41 = vshrl.u32 %v579_v35, 30  ;;  %v300_v22 = vand.u32 3, %v299_v9  ;;  %v812_v53 = vsub.s32 4, %v5006_v20 }
 0x201   :  { %vm4055_vm0 = vcmp.le.f32.partialorder %v5001_v44, 0.7853982  ;;  %v383_v28 = vshll.u32 %v3983_v60, %v381_v27  ;;  %v384_v42 = vshrl.u32 %v366_v11, %v382_v51  ;;  %v387_v38 = vadd.s32 127, %v386_v49  ;;  %v2737_v32 = vpop.eup %2736 }
 0x202   :  { %v502_v10 = vsel %vm4055_vm0, %v2916_v33, %v3776_v48  ;;  %v501_v61 = vsel %vm416_vm15, %v500_v6, %v5000_v1  ;;  %v399_v30 = vsel %vm4032_vm13, 0, %v397_v47  ;;  %v581_v13 = vshll.u32 %v580_v41, 30 }
 0x203   :  { %v604_v23 = vsub.s32 4, %v580_v41  ;;  %2742 = vcosq.f32 %v502_v10  ;;  %vm5007_vm8 = vcmp.lt.s32.totalorder %v3654_v50, 0  ;;  %v385_v31 = vor.u32 %v384_v42, %v383_v28  ;;  %v4078_v60 = vpop.eup %2738 }
 0x204   :  { %2744 = vcosq.f32 %v1542_v39  ;;  %v1643_v48 = vsel %vm5007_vm8, %v1642_v43, %v1641_v25  ;;  %v388_v62 = vshll.u32 %v387_v38, 23  ;;  %v4080_v9 = vsub.s32 %v578_v58, %v581_v13 }
 0x205   :  { %v306_v8 = vxor.u32 2147483648, %v2735_v19  ;;  %v503_v35 = vsel %vm4055_vm0, 0, %v501_v61  ;;  %vm5008_vm15 = vcmp.lt.s32.totalorder %v3024_v14, 0  ;;  %v403_v11 = vadd.s32 3, %v399_v30  ;;  %v4087_v47 = vpop.eup %2740 }
 0x206   :  { %v813_v1 = vsel %vm5008_vm15, %v812_v53, %v5006_v20  ;;  %v389_v6 = vor.u32 4788187, %v388_v62  ;;  %v303_v27 = vxor.u32 2147483648, %v2737_v32  ;;  %vm305_vm9 = vcmp.eq.s32.totalorder %v300_v22, 2 }
 0x207   :  { %v1646_v25 = vsel %vm4039_vm7, %v3654_v50, %v1643_v48  ;;  %v584_v58 = vsub.s32 0, %v4080_v9  ;;  %vm5009_vm8 = vcmp.lt.s32.totalorder %v4975_v52, 0  ;;  %2746 = vsinq.f32 %v502_v10 }
 0x208   :  { %v605_v43 = vsel %vm5009_vm8, %v604_v23, %v580_v41  ;;  %v390_v51 = vand.u32 2147483647, %v389_v6  ;;  %v392_v49 = vcvt.s32.f32 %v385_v31  ;;  %v507_v44 = vadd.s32 3, %v503_v35 }
 0x209   :  { %v815_v63 = vsel %vm3543_vm11, 0, %v813_v1  ;;  %2748 = vsinq.f32 %v1542_v39  ;;  %v2525_v20 = vmin.u32 %v584_v58, %v4080_v9  ;;  %vm302_vm0 = vcmp.eq.s32.totalorder %v300_v22, 0  ;;  %v5011_v58 = vld [vmem:[#allocation37_spill] sm:$0xff] }
 0x20a   :  { %v307_v53 = vsel %vm305_vm9, %v306_v8, %v2737_v32  ;;  %v393_v28 = vmul.f32 %v392_v49, %v390_v51  ;;  %v607_v42 = vsel %vm4061_vm6, 0, %v605_v43  ;;  %v304_v38 = vsel %vm302_vm0, %v2735_v19, %v303_v27 }
 0x20b   :  { %v819_v61 = vadd.s32 3, %v815_v63  ;;  %2750 = vcosq.f32 %v1646_v25  ;;  %v574_v41 = vadd.s32 %v3994_v21, %v3978_v24  ;;  %v586_v10 = vclz %v2525_v20 }
 0x20c   :  { %v508_v30 = vand.u32 3, %v507_v44  ;;  %2752 = vsinq.f32 %v1646_v25  ;;  %v394_v0 = vxor.u32 2147483648, %v393_v28  ;;  %v4102_v13 = vand.u32 3, %v403_v11 }
 0x20d   :  { %vm301_vm11 = vcmp.lt.s32.totalorder %v300_v22, 2  ;;  %v2743_v39 = vpop.eup %2742  ;;  %v2526_v23 = vadd.s32 4294967294, %v586_v10  ;;  %v4104_v32 = vadd.s32 3, %v607_v42  ;;  %v823_v19 = vxor.u32 2147483648, %v3645_v15 }
 0x20e   :  { %v308_v48 = vsel %vm301_vm11, %v304_v38, %v307_v53  ;;  %v4108_v31 = vpop.eup %2744  ;;  %vm5010_vm15 = vcmp.lt.s32.totalorder %v2911_v26, 0  ;;  %v820_v21 = vand.u32 3, %v819_v61  ;;  %v826_v62 = vxor.u32 2147483648, %v3641_v7 }
 0x20f   :  { %v395_v24 = vsel %vm5010_vm15, %v394_v0, %v393_v28  ;;  %v1020_v8 = vsub.s32 4, %v3374_v17  ;;  %vm2527_vm8 = vcmp.lt.s32.totalorder %v2526_v23, 0  ;;  %vm510_vm0 = vcmp.eq.s32.totalorder %v508_v30, 0  ;;  %v5015_v0 = vld [vmem:[#allocation15_spill] sm:$0xff] }
 0x210   :  { %v398_v22 = vsel %vm4032_vm13, %v2911_v26, %v395_v24  ;;  %vm513_vm9 = vcmp.eq.s32.totalorder %v508_v30, 2  ;;  %v589_v35 = vsel %vm2527_vm8, 0, %v2526_v23  ;;  %v514_v1 = vxor.u32 2147483648, %v2743_v39 }
 0x211   :  { %2754 = vcosq.f32 %v398_v22  ;;  %v1031_v6 = vxor.u32 2147483648, %v3812_v16  ;;  %v2747_v11 = vpop.eup %2746  ;;  %v590_v27 = vsub.s32 32, %v589_v35  ;;  %v594_v25 = vsub.s32 4294967266, %v589_v35 }
 0x212   :  { %2756 = vsinq.f32 %v398_v22  ;;  %vm506_vm11 = vweird.f32 %v2916_v33  ;;  %v1034_v43 = vxor.u32 2147483648, %v5011_v58  ;;  %v511_v51 = vxor.u32 2147483648, %v2747_v11 }
 0x213   :  { %vm822_vm15 = vcmp.eq.s32.totalorder %v820_v21, 0  ;;  %vm825_vm5 = vcmp.eq.s32.totalorder %v820_v21, 2  ;;  %vm5013_vm13 = vcmp.lt.s32.totalorder %v5012_v4, 0  ;;  %v4123_v44 = vpop.eup %2748  ;;  %v591_v63 = vshll.u32 %v4080_v9, %v589_v35 }
 0x214   :  { %v1021_v49 = vsel %vm5013_vm13, %v1020_v8, %v3374_v17  ;;  %v592_v20 = vshrl.u32 %v574_v41, %v590_v27  ;;  %v595_v53 = vadd.s32 127, %v594_v25  ;;  %v512_v38 = vsel %vm510_vm0, %v2743_v39, %v511_v51 }
 0x215   :  { %v1023_v42 = vsel %vm3636_vm3, 0, %v1021_v49  ;;  %v515_v61 = vsel %vm513_vm9, %v514_v1, %v2747_v11  ;;  %v708_v23 = vsub.s32 4, %v5015_v0  ;;  %v4131_v24 = vpop.eup %2750  ;;  %v824_v9 = vsel %vm822_vm15, %v3641_v7, %v823_v19  ;;  %v5017_v1 = vld [vmem:[#allocation4_spill] sm:$0xff] }
 0x216   :  { %v1027_v10 = vadd.s32 3, %v1023_v42  ;;  %v593_v17 = vor.u32 %v592_v20, %v591_v63  ;;  %v596_v8 = vshll.u32 %v595_v53, 23  ;;  %v827_v41 = vsel %vm825_vm5, %v826_v62, %v3645_v15  ;;  %v4138_v22 = vpop.eup %2752  ;;  %v5020_v20 = vld [vmem:[#allocation22_spill] sm:$0xff] }
 0x217   :  { %vm5016_vm3 = vweird.f32 %v4986_v36  ;;  %vm509_vm9 = vcmp.lt.s32.totalorder %v508_v30, 2  ;;  %vm5018_vm0 = vcmp.lt.s32.totalorder %v5017_v1, 0  ;;  %vm406_vm13 = vcmp.eq.s32.totalorder %v4102_v13, 0 }
 0x218   :  { %v4142_v39 = vsel %vm5016_vm3, nan, %v308_v48  ;;  %v1028_v35 = vand.u32 3, %v1027_v10  ;;  %v709_v11 = vsel %vm5018_vm0, %v708_v23, %v5015_v0  ;;  %v597_v27 = vor.u32 4788187, %v596_v8  ;;  %v5021_v10 = vld [vmem:[#allocation27_spill] sm:$0xff] }
 0x219   :  { %v516_v25 = vsel %vm509_vm9, %v512_v38, %v515_v61  ;;  %vm821_vm15 = vcmp.lt.s32.totalorder %v820_v21, 2  ;;  %v711_v15 = vsel %vm3392_vm4, 0, %v709_v11  ;;  %v600_v62 = vcvt.s32.f32 %v593_v17 }
 0x21a   :  { %v828_v19 = vsel %vm821_vm15, %v824_v9, %v827_v41  ;;  %vm1030_vm5 = vcmp.eq.s32.totalorder %v1028_v35, 0  ;;  %vm1033_vm8 = vcmp.eq.s32.totalorder %v1028_v35, 2  ;;  %v715_v36 = vadd.s32 3, %v711_v15 }
 0x21b   :  { %v598_v48 = vand.u32 2147483647, %v597_v27  ;;  %v1032_v30 = vsel %vm1030_vm5, %v5011_v58, %v1031_v6  ;;  %v1035_v51 = vsel %vm1033_vm8, %v1034_v43, %v3812_v16  ;;  %v2755_v49 = vpop.eup %2754  ;;  %vm405_vm3 = vcmp.lt.s32.totalorder %v4102_v13, 2  ;;  %v5022_v58 = vld [vmem:[#allocation26_spill] sm:$0xff] }
 0x21c   :  { %v4155_v63 = vsel %vm506_vm11, nan, %v516_v25  ;;  %vm1029_vm9 = vcmp.lt.s32.totalorder %v1028_v35, 2  ;;  %v716_v21 = vand.u32 3, %v715_v36  ;;  %v916_v53 = vsub.s32 4, %v5020_v20  ;;  %v2757_v28 = vpop.eup %2756 }
 0x21d   :  { %v410_v42 = vxor.u32 2147483648, %v2755_v49  ;;  %v601_v38 = vmul.f32 %v600_v62, %v598_v48  ;;  %v1036_v61 = vsel %vm1029_vm9, %v1032_v30, %v1035_v51  ;;  %v719_v0 = vxor.u32 2147483648, %v5021_v10  ;;  %v5029_v48 = vld [vmem:[#allocation32_spill] sm:$0xff] }
 0x21e   :  { %v407_v6 = vxor.u32 2147483648, %v2757_v28  ;;  %v4160_v16 = vand.u32 3, %v4104_v32  ;;  %vm818_vm4 = vweird.f32 %v3024_v14  ;;  %v722_v33 = vxor.u32 2147483648, %v5022_v58  ;;  %v5024_v14 = vld [vmem:[#allocation13_spill] sm:$0xff]  ;;  %v5030_v30 = vld [vmem:[#allocation28_spill] sm:$0xff] }
 0x21f   :  { %v602_v43 = vxor.u32 2147483648, %v601_v38  ;;  %v2602_v23 = vpack.c.bf16 %v4155_v63, %v4142_v39  ;;  %v4167_v17 = vsel %vm818_vm4, nan, %v828_v19  ;;  %vm1026_vm8 = vweird.f32 %v5012_v4  ;;  %v5028_v19 = vld [vmem:[#allocation36_spill] sm:$0xff] }
 0x220   :  { %vm5023_vm0 = vcmp.eq.s32.totalorder %v4102_v13, 2  ;;  %v4172_v9 = vsel %vm1026_vm8, nan, %v1036_v61  ;;  %vm714_vm15 = vweird.f32 %v5017_v1  ;;  %vm718_vm5 = vcmp.eq.s32.totalorder %v716_v21, 0 }
 0x221   :  { %v411_v8 = vsel %vm5023_vm0, %v410_v42, %v2757_v28  ;;  %vm5025_vm9 = vcmp.lt.s32.totalorder %v5024_v14, 0  ;;  %vm5026_vm11 = vcmp.lt.s32.totalorder %v4975_v52, 0  ;;  %v720_v35 = vsel %vm718_vm5, %v5022_v58, %v719_v0 }
 0x222   :  { %v917_v32 = vsel %vm5025_vm9, %v916_v53, %v5020_v20  ;;  %v603_v41 = vsel %vm5026_vm11, %v602_v43, %v601_v38  ;;  %vm721_vm4 = vcmp.eq.s32.totalorder %v716_v21, 2  ;;  %v408_v27 = vsel %vm406_vm13, %v2755_v49, %v407_v6  ;;  %v5031_v49 = vld [vmem:[#allocation34_spill] sm:$0xff]  ;;  %v5032_v38 = vld [vmem:[#allocation23_spill] sm:$0xff] }
 0x223   :  { %v919_v4 = vsel %vm3551_vm12, 0, %v917_v32  ;;  %v606_v25 = vsel %vm4061_vm6, %v4975_v52, %v603_v41  ;;  %v723_v7 = vsel %vm721_vm4, %v722_v33, %v5021_v10  ;;  %vm922_vm8 = vweird.f32 %v5024_v14  ;;  %v5037_v32 = vld [vmem:[#allocation25_spill] sm:$0xff] }
 0x224   :  { %v923_v15 = vadd.s32 3, %v919_v4  ;;  %2758 = vcosq.f32 %v606_v25  ;;  %v927_v36 = vxor.u32 2147483648, %v5028_v19  ;;  %v930_v62 = vxor.u32 2147483648, %v5029_v48 }
 0x225   :  { %v1228_v51 = vsub.s32 4, %v5030_v30  ;;  %2760 = vsinq.f32 %v606_v25  ;;  %vm717_vm12 = vcmp.lt.s32.totalorder %v716_v21, 2  ;;  %v1436_v53 = vsub.s32 4, %v5031_v49 }
 0x226   :  { %v924_v20 = vand.u32 3, %v923_v15  ;;  %v412_v56 = vsel %vm405_vm3, %v408_v27, %v411_v8  ;;  %v2604_v28 = vpack.c.bf16 %v4172_v9, %v4167_v17  ;;  %v724_v42 = vsel %vm717_vm12, %v720_v35, %v723_v7  ;;  %v5040_v15 = vld [vmem:[#allocation30_spill] sm:$0xff] }
 0x227   :  { %vm5033_vm6 = vcmp.lt.s32.totalorder %v5032_v38, 0  ;;  %vm617_vm5 = vcmp.eq.s32.totalorder %v4160_v16, 2  ;;  %vm5035_vm3 = vcmp.lt.s32.totalorder %v3510_v3, 0  ;;  %vm5036_vm9 = vweird.f32 %v2911_v26 }
 0x228   :  { %v1229_v61 = vsel %vm5033_vm6, %v1228_v51, %v5030_v30  ;;  %vm925_vm13 = vcmp.lt.s32.totalorder %v924_v20, 2  ;;  %vm926_vm11 = vcmp.eq.s32.totalorder %v924_v20, 0  ;;  %vm929_vm0 = vcmp.eq.s32.totalorder %v924_v20, 2  ;;  %v5043_v20 = vld [vmem:[#allocation40_spill] sm:$0xff] }
 0x229   :  { %v1231_v21 = vsel %vm3759_vm1, 0, %v1229_v61  ;;  %v928_v0 = vsel %vm926_vm11, %v5029_v48, %v927_v36  ;;  %v931_v13 = vsel %vm929_vm0, %v930_v62, %v5028_v19  ;;  %v1437_v58 = vsel %vm5035_vm3, %v1436_v53, %v5031_v49  ;;  %v5041_v36 = vld [vmem:[#allocation41_spill] sm:$0xff]  ;;  %v5044_v53 = vld [vmem:[#allocation39_spill] sm:$0xff] }
 0x22a   :  { %v1235_v6 = vadd.s32 3, %v1231_v21  ;;  %v4211_v33 = vsel %vm5036_vm9, nan, %v412_v56  ;;  %vm614_vm4 = vcmp.eq.s32.totalorder %v4160_v16, 0  ;;  %v932_v43 = vsel %vm925_vm13, %v928_v0, %v931_v13 }
 0x22b   :  { %v1439_v8 = vsel %vm3937_vm14, 0, %v1437_v58  ;;  %v1124_v41 = vsub.s32 4, %v5037_v32  ;;  %vm613_vm1 = vcmp.lt.s32.totalorder %v4160_v16, 2  ;;  %v4220_v35 = vsel %vm714_vm15, nan, %v724_v42 }
 0x22c   :  { %v1236_v11 = vand.u32 3, %v1235_v6  ;;  %v1239_v4 = vxor.u32 2147483648, %v3908_v54  ;;  %v1443_v26 = vadd.s32 3, %v1439_v8  ;;  %vm610_vm12 = vweird.f32 %v4975_v52 }
 0x22d   :  { %v1447_v27 = vxor.u32 2147483648, %v4087_v47  ;;  %v1450_v25 = vxor.u32 2147483648, %v4078_v60  ;;  %vm5039_vm14 = vcmp.lt.s32.totalorder %v5038_v40, 0  ;;  %v1332_v19 = vsub.s32 4, %v5040_v15 }
 0x22e   :  { %v1125_v7 = vsel %vm5039_vm14, %v1124_v41, %v5037_v32  ;;  %v4232_v1 = vsel %vm922_vm8, nan, %v932_v43  ;;  %v1242_v48 = vxor.u32 2147483648, %v5041_v36  ;;  %vm1442_vm15 = vweird.f32 %v3510_v3  ;;  %v2759_v61 = vpop.eup %2758 }
 0x22f   :  { %v1444_v62 = vand.u32 3, %v1443_v26  ;;  %v1127_v51 = vsel %vm3709_vm2, 0, %v1125_v7  ;;  %v1135_v49 = vxor.u32 2147483648, %v5043_v20  ;;  %v1138_v56 = vxor.u32 2147483648, %v5044_v53  ;;  %v2761_v14 = vpop.eup %2760 }
 0x230   :  { %vm5045_vm6 = vcmp.lt.s32.totalorder %v3418_v55, 0  ;;  %vm1237_vm13 = vcmp.lt.s32.totalorder %v1236_v11, 2  ;;  %vm1238_vm8 = vcmp.eq.s32.totalorder %v1236_v11, 0  ;;  %v618_v10 = vxor.u32 2147483648, %v2759_v61 }
 0x231   :  { %v1333_v42 = vsel %vm5045_vm6, %v1332_v19, %v5040_v15  ;;  %vm1446_vm11 = vcmp.eq.s32.totalorder %v1444_v62, 0  ;;  %vm1449_vm0 = vcmp.eq.s32.totalorder %v1444_v62, 2  ;;  %vm1234_vm3 = vweird.f32 %v5032_v38 }
 0x232   :  { %vm1241_vm9 = vcmp.eq.s32.totalorder %v1236_v11, 2  ;;  %v1448_v21 = vsel %vm1446_vm11, %v4078_v60, %v1447_v27  ;;  %v1451_v0 = vsel %vm1449_vm0, %v1450_v25, %v4087_v47  ;;  %v615_v13 = vxor.u32 2147483648, %v2761_v14 }
 0x233   :  { %v1240_v6 = vsel %vm1238_vm8, %v5041_v36, %v1239_v4  ;;  %v1131_v58 = vadd.s32 3, %v1127_v51  ;;  %v1335_v43 = vsel %vm3834_vm10, 0, %v1333_v42  ;;  %v619_v8 = vsel %vm617_vm5, %v618_v10, %v2761_v14  ;;  %v1662_v14 = vld [vmem:[%s4803_s3] sm:$0xff] }
 0x234   :  { %v1243_v32 = vsel %vm1241_vm9, %v1242_v48, %v3908_v54  ;;  %vm1445_vm2 = vcmp.lt.s32.totalorder %v1444_v62, 2  ;;  %v1339_v41 = vadd.s32 3, %v1335_v43  ;;  %v616_v26 = vsel %vm614_vm4, %v2759_v61, %v615_v13 }
 0x235   :  { %v1452_v60 = vsel %vm1445_vm2, %v1448_v21, %v1451_v0  ;;  %v1132_v27 = vand.u32 3, %v1131_v58  ;;  %v1343_v47 = vxor.u32 2147483648, %v3981_v46  ;;  %v620_v4 = vsel %vm613_vm1, %v616_v26, %v619_v8  ;;  %v1676_v8 = vpop.permute.xlu0 %1675 }
 0x236   :  { %v1340_v25 = vand.u32 3, %v1339_v41  ;;  %v1346_v2 = vxor.u32 2147483648, %v3960_v5  ;;  %v1644_v7 = vsub.s32 4, %v3894_v12  ;;  %v621_v54 = vsel %vm610_vm12, nan, %v620_v4 }
 0x237   :  { %v1244_v15 = vsel %vm1237_vm13, %v1240_v6, %v1243_v32  ;;  %vm1134_vm10 = vcmp.eq.s32.totalorder %v1132_v27, 0  ;;  %vm1137_vm5 = vcmp.eq.s32.totalorder %v1132_v27, 2  ;;  %v2600_v19 = vpack.c.bf16 %v621_v54, %v4211_v33 }
 0x238   :  { %v1453_v36 = vsel %vm1442_vm15, nan, %v1452_v60  ;;  %v1136_v16 = vsel %vm1134_vm10, %v5044_v53, %v1135_v49  ;;  %v1139_v48 = vsel %vm1137_vm5, %v1138_v56, %v5043_v20  ;;  %vm1133_vm4 = vcmp.lt.s32.totalorder %v1132_v27, 2 }
 0x239   :  { %vm1342_vm1 = vcmp.eq.s32.totalorder %v1340_v25, 0  ;;  %vm1345_vm14 = vcmp.eq.s32.totalorder %v1340_v25, 2  ;;  %vm5046_vm6 = vcmp.lt.s32.totalorder %v3654_v50, 0  ;;  %2601 = vmatprep.subr.bf16.mxu1 %v2600_v19  ;;  %vm1341_vm12 = vcmp.lt.s32.totalorder %v1340_v25, 2 }
 0x23a   :  { %v1645_v52 = vsel %vm5046_vm6, %v1644_v7, %v3894_v12  ;;  %v1344_v11 = vsel %vm1342_vm1, %v3960_v5, %v1343_v47  ;;  %v1347_v33 = vsel %vm1345_vm14, %v1346_v2, %v3981_v46  ;;  %2603 = vmatpush1.bf16.msra.mxu1 %v2602_v23  ;;  %v1245_v62 = vsel %vm1234_vm3, nan, %v1244_v15 }
 0x23b   :  { %v1647_v3 = vsel %vm4039_vm7, 0, %v1645_v52  ;;  %v1140_v30 = vsel %vm1133_vm4, %v1136_v16, %v1139_v48  ;;  %v1348_v51 = vsel %vm1341_vm12, %v1344_v11, %v1347_v33  ;;  %2605 = vmatprep.subr.bf16.mxu1 %v2604_v28  ;;  %v2608_v12 = vpack.c.bf16 %v1453_v36, %v1245_v62 }
 0x23c   :  { %v1651_v20 = vadd.s32 3, %v1647_v3  ;;  %v1655_v5 = vxor.u32 2147483648, %v4138_v22  ;;  %v1658_v46 = vxor.u32 2147483648, %v4131_v24  ;;  %v1540_v49 = vsub.s32 4, %v5047_v34 }
 0x23d   :  { %v2606_v39 = vpack.c.bf16 %v4232_v1, %v4220_v35  ;;  %vm1130_vm7 = vweird.f32 %v5038_v40  ;;  %vm1338_vm15 = vweird.f32 %v3418_v55  ;;  %vm1650_vm13 = vweird.f32 %v3654_v50 }
 0x23e   :  { %v1652_v63 = vand.u32 3, %v1651_v20  ;;  %v1141_v23 = vsel %vm1130_vm7, nan, %v1140_v30  ;;  %v1349_v38 = vsel %vm1338_vm15, nan, %v1348_v51  ;;  %vm5048_vm8 = vcmp.lt.s32.totalorder %v3515_v45, 0 }
 0x23f   :  { %v1541_v17 = vsel %vm5048_vm8, %v1540_v49, %v5047_v34  ;;  %2607 = vmatpush1.bf16.msra.mxu1 %v2606_v39  ;;  %vm1693_vm3 = vcmask 1041408   ;;  %vm5049_vm9 = vnez %v4993_v57  ;;  %v2610_v40 = vpack.c.bf16 %v1349_v38, %v1141_v23 }
 0x240   :  { %vm1654_vm11 = vcmp.eq.s32.totalorder %v1652_v63, 0  ;;  %vm1657_vm0 = vcmp.eq.s32.totalorder %v1652_v63, 2  ;;  %v1543_v9 = vsel %vm5049_vm9, 0, %v1541_v17  ;;  %2609 = vmatprep.subr.bf16.mxu1 %v2608_v12  ;;  %vm1653_vm2 = vcmp.lt.s32.totalorder %v1652_v63, 2 }
 0x241   :  { %v1656_v55 = vsel %vm1654_vm11, %v4131_v24, %v1655_v5  ;;  %v1659_v28 = vsel %vm1657_vm0, %v1658_v46, %v4138_v22  ;;  %v1547_v35 = vadd.s32 3, %v1543_v9  ;;  %v1551_v53 = vxor.u32 2147483648, %v4123_v44 }
 0x242   :  { %v1660_v1 = vsel %vm1653_vm2, %v1656_v55, %v1659_v28  ;;  %v1554_v56 = vxor.u32 2147483648, %v4108_v31  ;;  %vm1546_vm1 = vweird.f32 %v3515_v45  ;;  %vm1683_vm14 = vcmask 408576   ;;  %v1664_v45 = vld [vmem:[%s4803_s3 + $0x10] sm:$0xf] }
 0x243   :  { %v1661_v42 = vsel %vm1650_vm13, nan, %v1660_v1  ;;  %v1548_v61 = vand.u32 3, %v1547_v35  ;;  %2611 = vmatpush1.bf16.msra.mxu1 %v2610_v40  ;;  %v5050_v10 = vmov 0.0  }
 0x244   :  { %2568 = vmatprep.subr.msk.mxu1 %vm1693_vm3, %v1661_v42 }
 0x245   :  { %vm1550_vm10 = vcmp.eq.s32.totalorder %v1548_v61, 0  ;;  %vm1553_vm5 = vcmp.eq.s32.totalorder %v1548_v61, 2  ;;  %vm1549_vm4 = vcmp.lt.s32.totalorder %v1548_v61, 2 }
 0x246   :  { %v1552_v57 = vsel %vm1550_vm10, %v4108_v31, %v1551_v53  ;;  %v1555_v24 = vsel %vm1553_vm5, %v1554_v56, %v4123_v44  ;;  %v1663_v31 = vld [vmem:[%s4803_s3 + $0x8] sm:$0xff]  ;;  %v1671_v44 = vpop.permute.xlu1 %1670  ;;  %v5051_v53 = vmov 920167782  }
 0x247   :  { %v1556_v22 = vsel %vm1549_vm4, %v1552_v57, %v1555_v24 }
 0x248   :  { %v1557_v50 = vsel %vm1546_vm1, nan, %v1556_v22 }
 0x249   :  { %2569 = vmatpush1.msk.msra.mxu1 %vm1693_vm3, %v1557_v50 }
 0x24a   :  { %2570 = vmatmul.mubr.msk.f32.vlgmr.msra.gmra.mrb[0].mxu1 %vm1683_vm14, %v1662_v14  ;;  %v5052_v14 = vmov 1326507024  }
 0x24b   :  { %1770 = vmatprep.mubr.f32.mxu1 %v5050_v10 }
 0x24e   :  { %2571 = vmatmul.mubr.msk.f32.gmra.mrb[2].mxu1 %vm1683_vm14, %v1663_v31 }
 0x24f   :  { %1776 = vmatprep.mubr.f32.mxu1 %v5050_v10 }
 0x252   :  { %2572 = vmatmul.mubr.msk.f32.gmra.mrb[4].mxu1 %vm1683_vm14, %v1664_v45 }
 0x253   :  { %2489 = vmatprep.mubr.f32.mxu1 %v5050_v10 }
 0x31d   :  { %v1766_v21 = vpop.f32.mrb[0].mxu1 }
 0x31e   :  { %v4318_v0 = vadd.f32 %v1766_v21, %v1671_v44  ;;  %v1768_v13 = vpop.f32.mrb[1].mxu1 }
 0x31f   :  { %v4320_v6 = vadd.f32 %v1768_v13, %v1671_v44 }
 0x320   :  { %v1783_v58 = vand.u32 2147483647, %v4318_v0  ;;  %v1786_v43 = vand.u32 2139095040, %v4318_v0  ;;  %vm1785_vm5 = vcmp.lt.s32.totalorder %v4318_v0, 0 }
 0x321   :  { %v1887_v32 = vand.u32 2147483647, %v4320_v6  ;;  %v1890_v41 = vand.u32 2139095040, %v4320_v6  ;;  %v1772_v26 = vpop.f32.mrb[2].mxu1 }
 0x322   :  { %v1787_v60 = vshrl.u32 %v1786_v43, 23  ;;  %v1790_v27 = vand.u32 8388607, %v1783_v58  ;;  %v4328_v47 = vadd.f32 %v1772_v26, %v1676_v8  ;;  %v1774_v4 = vpop.f32.mrb[3].mxu1  ;;  %vm4458_vm1 = vcmp.le.f32.partialorder %v1783_v58, 0.7853982 }
 0x323   :  { %v1891_v25 = vshrl.u32 %v1890_v41, 23  ;;  %v1894_v2 = vand.u32 8388607, %v1887_v32  ;;  %v4334_v36 = vadd.f32 %v1774_v4, %v1676_v8 }
 0x324   :  { %v2573_v7 = vadd.s32 4294967169, %v1787_v60  ;;  %v1991_v54 = vand.u32 2147483647, %v4328_v47  ;;  %v1994_v19 = vand.u32 2139095040, %v4328_v47  ;;  %v1791_v48 = vor.u32 8388608, %v1790_v27 }
 0x325   :  { %v2577_v15 = vadd.s32 4294967169, %v1891_v25  ;;  %v4336_v16 = vpop.f32.mrb[4].mxu1  ;;  %v1895_v11 = vor.u32 8388608, %v1894_v2  ;;  %v2095_v12 = vand.u32 2147483647, %v4334_v36  ;;  %v2098_v38 = vand.u32 2139095040, %v4334_v36 }
 0x326   :  { %v1793_v52 = vadd.s32 1, %v2573_v7  ;;  %v1995_v3 = vshrl.u32 %v1994_v19, 23  ;;  %v4340_v62 = vand.u32 8388607, %v1991_v54  ;;  %v4342_v30 = vpop.f32.mrb[5].mxu1  ;;  %v4345_v34 = vshll.u32 %v1791_v48, 8 }
 0x327   :  { %v1897_v33 = vadd.s32 1, %v2577_v15  ;;  %v4349_v63 = vshll.u32 %v1895_v11, 8 }
 0x328   :  { %vm1794_vm6 = vcmp.gt.s32.totalorder %v1793_v52, 0  ;;  %v2581_v20 = vadd.s32 4294967169, %v1995_v3  ;;  %v1999_v23 = vor.u32 8388608, %v4340_v62 }
 0x329   :  { %v1795_v51 = vsel %vm1794_vm6, %v1793_v52, 0  ;;  %vm1898_vm12 = vcmp.gt.s32.totalorder %v1897_v33, 0 }
 0x32a   :  { %v1796_v5 = vshrl.u32 %v1795_v51, 5  ;;  %v1797_v46 = vand.u32 31, %v1795_v51  ;;  %v1899_v49 = vsel %vm1898_vm12, %v1897_v33, 0  ;;  %v4354_v28 = vadd.s32 1, %v2581_v20 }
 0x32b   :  { %v4347_v39 = vshrl.u32 %v1899_v49, 5  ;;  %v1901_v55 = vand.u32 31, %v1899_v49 }
 0x32c   :  { %v1798_v17 = vsub.s32 32, %v1797_v46  ;;  %v1800_v9 = vshll.u32 %v4917_v18, %v1797_v46  ;;  %v1803_v35 = vshll.u32 %v4911_v59, %v1797_v46  ;;  %v1806_v40 = vshll.u32 %v4912_v29, %v1797_v46 }
 0x32d   :  { %v1809_v1 = vshll.u32 %v4913_v37, %v1797_v46  ;;  %v1812_v56 = vshll.u32 %v5051_v53, %v1797_v46  ;;  %vm1815_vm7 = vcmp.lt.s32.totalorder %v1796_v5, 1  ;;  %vm1816_vm15 = vcmp.lt.s32.totalorder %v1796_v5, 2 }
 0x32e   :  { %v1801_v42 = vshrl.u32 %v4911_v59, %v1798_v17  ;;  %v1804_v61 = vshrl.u32 %v4912_v29, %v1798_v17  ;;  %v1807_v57 = vshrl.u32 %v4913_v37, %v1798_v17  ;;  %v1799_v24 = vshrl.u32 %v4917_v18, %v1798_v17 }
 0x32f   :  { %v1810_v22 = vshrl.u32 %v5051_v53, %v1798_v17  ;;  %v1813_v50 = vshrl.u32 %v5052_v14, %v1798_v17  ;;  %v1902_v44 = vsub.s32 32, %v1901_v55  ;;  %vm1817_vm13 = vcmp.lt.s32.totalorder %v1796_v5, 3 }
 0x330   :  { %v1802_v10 = vor.u32 %v1801_v42, %v1800_v9  ;;  %v1805_v31 = vor.u32 %v1804_v61, %v1803_v35  ;;  %v1808_v45 = vor.u32 %v1807_v57, %v1806_v40  ;;  %vm1818_vm8 = vcmp.lt.s32.totalorder %v1796_v5, 4 }
 0x331   :  { %v1811_v21 = vor.u32 %v1810_v22, %v1809_v1  ;;  %v1814_v13 = vor.u32 %v1813_v50, %v1812_v56  ;;  %v1904_v25 = vshll.u32 %v4917_v18, %v1901_v55  ;;  %v1905_v15 = vshrl.u32 %v4911_v59, %v1902_v44 }
 0x332   :  { %v1819_v43 = vsel %vm1815_vm7, %v1799_v24, %v1802_v10  ;;  %v1820_v8 = vsel %vm1818_vm8, %v1808_v45, 2102212464  ;;  %v1823_v41 = vsel %vm1815_vm7, %v1802_v10, %v1805_v31  ;;  %v1827_v26 = vsel %vm1815_vm7, %v1805_v31, %v1808_v45 }
 0x333   :  { %v1821_v60 = vsel %vm1817_vm13, %v1805_v31, %v1820_v8  ;;  %v1824_v27 = vsel %vm1818_vm8, %v1811_v21, 920167782  ;;  %v1828_v4 = vsel %vm1818_vm8, %v1814_v13, 1326507024  ;;  %v1907_v19 = vshll.u32 %v4911_v59, %v1901_v55 }
 0x334   :  { %v1825_v2 = vsel %vm1817_vm13, %v1808_v45, %v1824_v27  ;;  %v1829_v7 = vsel %vm1817_vm13, %v1811_v21, %v1828_v4  ;;  %v1822_v48 = vsel %vm1816_vm15, %v1819_v43, %v1821_v60  ;;  %v1908_v33 = vshrl.u32 %v4912_v29, %v1902_v44 }
 0x335   :  { %v1826_v52 = vsel %vm1816_vm15, %v1823_v41, %v1825_v2  ;;  %v1830_v11 = vsel %vm1816_vm15, %v1827_v26, %v1829_v7  ;;  %v1906_v49 = vor.u32 %v1905_v15, %v1904_v25  ;;  %v1910_v9 = vshll.u32 %v4912_v29, %v1901_v55 }
 0x336   :  { %v4377_v3 = vmul.u32.u64.low %v4345_v34, %v1830_v11  ;;  %v4378_v51 = vmul.u32.u64.high %v4345_v34, %v1830_v11, %v4377_v3  ;;  %v4381_v20 = vmul.u32.u64.low %v4345_v34, %v1826_v52  ;;  %v4382_v46 = vmul.u32.u64.high %v4345_v34, %v1826_v52, %v4381_v20 }
 0x337   :  { %v1909_v17 = vor.u32 %v1908_v33, %v1907_v19  ;;  %v1911_v35 = vshrl.u32 %v4913_v37, %v1902_v44  ;;  %v1903_v40 = vshrl.u32 %v4917_v18, %v1902_v44  ;;  %v1913_v5 = vshll.u32 %v4913_v37, %v1901_v55 }
 0x338   :  { %v1914_v1 = vshrl.u32 %v5051_v53, %v1902_v44  ;;  %v1917_v56 = vshrl.u32 %v5052_v14, %v1902_v44  ;;  %v1838_v42 = vmul.u32 %v4345_v34, %v1822_v48  ;;  %v1916_v57 = vshll.u32 %v5051_v53, %v1901_v55 }
 0x339   :  { %v1912_v61 = vor.u32 %v1911_v35, %v1910_v9  ;;  %vm1919_vm11 = vcmp.lt.s32.totalorder %v4347_v39, 1  ;;  %vm1840_vm0 = vc.u32 %v4378_v51, %v4381_v20  ;;  %v1841_v24 = vadd.s32 1, %v4382_v46 }
 0x33a   :  { %v1915_v22 = vor.u32 %v1914_v1, %v1913_v5  ;;  %vm1920_vm3 = vcmp.lt.s32.totalorder %v4347_v39, 2  ;;  %v1918_v50 = vor.u32 %v1917_v56, %v1916_v57  ;;  %vm1921_vm9 = vcmp.lt.s32.totalorder %v4347_v39, 3 }
 0x33b   :  { %vm1922_vm2 = vcmp.lt.s32.totalorder %v4347_v39, 4  ;;  %v1927_v10 = vsel %vm1919_vm11, %v1906_v49, %v1909_v17  ;;  %v1842_v34 = vsel %vm1840_vm0, %v1841_v24, %v4382_v46  ;;  %v1931_v55 = vsel %vm1919_vm11, %v1909_v17, %v1912_v61 }
 0x33c   :  { %v1924_v31 = vsel %vm1922_vm2, %v1912_v61, 2102212464  ;;  %v1928_v45 = vsel %vm1922_vm2, %v1915_v22, 920167782  ;;  %v1843_v44 = vadd.s32 %v1842_v34, %v1838_v42  ;;  %v1923_v21 = vsel %vm1919_vm11, %v1903_v40, %v1906_v49 }
 0x33d   :  { %v1929_v13 = vsel %vm1921_vm9, %v1912_v61, %v1928_v45  ;;  %v1932_v43 = vsel %vm1922_vm2, %v1918_v50, 1326507024  ;;  %v1925_v8 = vsel %vm1921_vm9, %v1909_v17, %v1924_v31  ;;  %vm2002_vm10 = vcmp.gt.s32.totalorder %v4354_v28, 0 }
 0x33e   :  { %v1930_v41 = vsel %vm1920_vm3, %v1927_v10, %v1929_v13  ;;  %v1933_v26 = vsel %vm1921_vm9, %v1915_v22, %v1932_v43  ;;  %v1844_v60 = vadd.s32 536870912, %v1843_v44  ;;  %v2003_v15 = vsel %vm2002_vm10, %v4354_v28, 0 }
 0x33f   :  { %v1934_v27 = vsel %vm1920_vm3, %v1931_v55, %v1933_v26  ;;  %v4405_v4 = vmul.u32.u64.low %v4349_v63, %v1930_v41  ;;  %v4406_v25 = vmul.u32.u64.high %v4349_v63, %v1930_v41, %v4405_v4  ;;  %v1926_v48 = vsel %vm1920_vm3, %v1923_v21, %v1925_v8 }
 0x340   :  { %v4410_v2 = vmul.u32.u64.low %v4349_v63, %v1934_v27  ;;  %v4411_v7 = vmul.u32.u64.high %v4349_v63, %v1934_v27, %v4410_v2  ;;  %v1845_v19 = vshrl.u32 %v1844_v60, 30  ;;  %v2005_v52 = vand.u32 31, %v2003_v15 }
 0x341   :  { %v4419_v11 = vshll.u32 %v1999_v23, 8  ;;  %v4423_v33 = vand.u32 8388607, %v2095_v12  ;;  %v1945_v46 = vadd.s32 1, %v4406_v25  ;;  %v2099_v28 = vshrl.u32 %v2098_v38, 23 }
 0x342   :  { %v1846_v3 = vshll.u32 %v1845_v19, 30  ;;  %v2006_v49 = vsub.s32 32, %v2005_v52  ;;  %v1839_v39 = vadd.s32 %v4381_v20, %v4378_v51  ;;  %v1869_v17 = vsub.s32 4, %v1845_v19 }
 0x343   :  { %v1942_v9 = vmul.u32 %v4349_v63, %v1926_v48  ;;  %vm1944_vm4 = vc.u32 %v4411_v7, %v4405_v4  ;;  %v4435_v35 = vshrl.u32 %v2003_v15, 5  ;;  %v2008_v40 = vshll.u32 %v4917_v18, %v2005_v52 }
 0x344   :  { %v4432_v62 = vsub.s32 %v1843_v44, %v1846_v3  ;;  %v1946_v23 = vsel %vm1944_vm4, %v1945_v46, %v4406_v25  ;;  %v2009_v1 = vshrl.u32 %v4911_v59, %v2006_v49  ;;  %v2011_v38 = vshll.u32 %v4911_v59, %v2005_v52 }
 0x345   :  { %v1947_v5 = vadd.s32 %v1946_v23, %v1942_v9  ;;  %v2012_v51 = vshrl.u32 %v4912_v29, %v2006_v49  ;;  %v2014_v20 = vshll.u32 %v4912_v29, %v2005_v52  ;;  %v2015_v56 = vshrl.u32 %v4913_v37, %v2006_v49 }
 0x346   :  { %v1849_v63 = vsub.s32 0, %v4432_v62  ;;  %v2585_v42 = vadd.s32 4294967169, %v2099_v28  ;;  %v4446_v61 = vsel %vm1785_vm5, %v1869_v17, %v1845_v19  ;;  %v2010_v24 = vor.u32 %v2009_v1, %v2008_v40 }
 0x347   :  { %v1948_v57 = vadd.s32 536870912, %v1947_v5  ;;  %v2013_v22 = vor.u32 %v2012_v51, %v2011_v38  ;;  %v2016_v10 = vor.u32 %v2015_v56, %v2014_v20  ;;  %v2017_v34 = vshll.u32 %v4913_v37, %v2005_v52 }
 0x348   :  { %v2574_v50 = vmin.u32 %v1849_v63, %v4432_v62  ;;  %v2018_v31 = vshrl.u32 %v5051_v53, %v2006_v49  ;;  %v2007_v55 = vshrl.u32 %v4917_v18, %v2006_v49  ;;  %v2020_v44 = vshll.u32 %v5051_v53, %v2005_v52 }
 0x349   :  { %v4451_v45 = vshrl.u32 %v1948_v57, 30  ;;  %v2021_v21 = vshrl.u32 %v5052_v14, %v2006_v49  ;;  %vm2023_vm14 = vcmp.lt.s32.totalorder %v4435_v35, 1  ;;  %vm2026_vm6 = vcmp.lt.s32.totalorder %v4435_v35, 4 }
 0x34a   :  { %v1851_v43 = vclz %v2574_v50  ;;  %v2019_v8 = vor.u32 %v2018_v31, %v2017_v34  ;;  %vm2024_vm12 = vcmp.lt.s32.totalorder %v4435_v35, 2  ;;  %v2028_v60 = vsel %vm2026_vm6, %v2016_v10, 2102212464  ;;  %v1681_v50 = vpop.permute.xlu1 %1680 }
 0x34b   :  { %v1950_v41 = vshll.u32 %v4451_v45, 30  ;;  %v2022_v26 = vor.u32 %v2021_v21, %v2020_v44  ;;  %vm2025_vm7 = vcmp.lt.s32.totalorder %v4435_v35, 3  ;;  %v2031_v58 = vsel %vm2023_vm14, %v2010_v24, %v2013_v22 }
 0x34c   :  { %v2575_v27 = vadd.s32 4294967294, %v1851_v43  ;;  %v2032_v25 = vsel %vm2026_vm6, %v2019_v8, 920167782  ;;  %v2027_v15 = vsel %vm2023_vm14, %v2007_v55, %v2010_v24  ;;  %v2035_v48 = vsel %vm2023_vm14, %v2013_v22, %v2016_v10 }
 0x34d   :  { %v4471_v2 = vsub.s32 %v1947_v5, %v1950_v41  ;;  %v2033_v19 = vsel %vm2025_vm7, %v2016_v10, %v2032_v25  ;;  %v2029_v52 = vsel %vm2025_vm7, %v2013_v22, %v2028_v60  ;;  %v2036_v46 = vsel %vm2026_vm6, %v2022_v26, 1326507024 }
 0x34e   :  { %vm2576_vm15 = vcmp.lt.s32.totalorder %v2575_v27, 0  ;;  %v2034_v3 = vsel %vm2024_vm12, %v2031_v58, %v2033_v19  ;;  %v2037_v17 = vsel %vm2025_vm7, %v2019_v8, %v2036_v46  ;;  %v2105_v9 = vadd.s32 1, %v2585_v42 }
 0x34f   :  { %v1854_v49 = vsel %vm2576_vm15, 0, %v2575_v27  ;;  %v1953_v28 = vsub.s32 0, %v4471_v2  ;;  %v2038_v1 = vsel %vm2024_vm12, %v2035_v48, %v2037_v17  ;;  %v2030_v31 = vsel %vm2024_vm12, %v2027_v15, %v2029_v52 }
 0x350   :  { %v1855_v23 = vsub.s32 32, %v1854_v49  ;;  %v1856_v40 = vshll.u32 %v4432_v62, %v1854_v49  ;;  %v1859_v5 = vsub.s32 4294967266, %v1854_v49  ;;  %vm2106_vm13 = vcmp.gt.s32.totalorder %v2105_v9, 0 }
 0x351   :  { %v2578_v38 = vmin.u32 %v1953_v28, %v4471_v2  ;;  %v4483_v51 = vmul.u32.u64.low %v4419_v11, %v2038_v1  ;;  %v4484_v63 = vmul.u32.u64.high %v4419_v11, %v2038_v1, %v4483_v51  ;;  %v1872_v62 = vsel %vm4458_vm1, 0, %v4446_v61 }
 0x352   :  { %v1857_v20 = vshrl.u32 %v1839_v39, %v1855_v23  ;;  %v1860_v56 = vadd.s32 127, %v1859_v5  ;;  %v4487_v57 = vmul.u32.u64.low %v4419_v11, %v2034_v3  ;;  %v4488_v24 = vmul.u32.u64.high %v4419_v11, %v2034_v3, %v4487_v57 }
 0x353   :  { %v1955_v42 = vclz %v2578_v38  ;;  %v2107_v22 = vsel %vm2106_vm13, %v2105_v9, 0  ;;  %v2103_v44 = vor.u32 8388608, %v4423_v33  ;;  %v4500_v21 = vadd.f32 %v4336_v16, %v1681_v50 }
 0x354   :  { %v1858_v10 = vor.u32 %v1857_v20, %v1856_v40  ;;  %v1861_v34 = vshll.u32 %v1860_v56, 23  ;;  %v2109_v55 = vand.u32 31, %v2107_v22  ;;  %vm2048_vm8 = vc.u32 %v4484_v63, %v4487_v57 }
 0x355   :  { %v2579_v39 = vadd.s32 4294967294, %v1955_v42  ;;  %v1943_v61 = vadd.s32 %v4405_v4, %v4411_v7  ;;  %v2049_v8 = vadd.s32 1, %v4488_v24  ;;  %v4506_v41 = vadd.f32 %v4342_v30, %v1681_v50 }
 0x356   :  { %v1862_v43 = vor.u32 4788187, %v1861_v34  ;;  %v4508_v35 = vadd.s32 3, %v1872_v62  ;;  %v2046_v26 = vmul.u32 %v4419_v11, %v2030_v31  ;;  %v2110_v60 = vsub.s32 32, %v2109_v55 }
 0x357   :  { %vm2580_vm11 = vcmp.lt.s32.totalorder %v2579_v39, 0  ;;  %v1865_v33 = vcvt.s32.f32 %v1858_v10  ;;  %v2050_v16 = vsel %vm2048_vm8, %v2049_v8, %v4488_v24  ;;  %v4512_v4 = vshll.u32 %v2103_v44, 8 }
 0x358   :  { %v1863_v27 = vand.u32 2147483647, %v1862_v43  ;;  %v1958_v58 = vsel %vm2580_vm11, 0, %v2579_v39  ;;  %v2051_v19 = vadd.s32 %v2050_v16, %v2046_v26  ;;  %v4515_v48 = vshrl.u32 %v2107_v22, 5 }
 0x359   :  { %v1959_v25 = vsub.s32 32, %v1958_v58  ;;  %v1963_v15 = vsub.s32 4294967266, %v1958_v58  ;;  %v1960_v30 = vshll.u32 %v4471_v2, %v1958_v58  ;;  %v2112_v52 = vshll.u32 %v4917_v18, %v2109_v55 }
 0x35a   :  { %v1866_v7 = vmul.f32 %v1865_v33, %v1863_v27  ;;  %v2052_v46 = vadd.s32 536870912, %v2051_v19  ;;  %v2113_v49 = vshrl.u32 %v4911_v59, %v2110_v60  ;;  %v2115_v17 = vshll.u32 %v4911_v59, %v2109_v55 }
 0x35b   :  { %v1961_v3 = vshrl.u32 %v1943_v61, %v1959_v25  ;;  %v1964_v11 = vadd.s32 127, %v1963_v15  ;;  %v2116_v9 = vshrl.u32 %v4912_v29, %v2110_v60  ;;  %v2119_v23 = vshrl.u32 %v4913_v37, %v2110_v60 }
 0x35c   :  { %v1867_v28 = vxor.u32 2147483648, %v1866_v7  ;;  %v2053_v1 = vshrl.u32 %v2052_v46, 30  ;;  %v2122_v2 = vshrl.u32 %v5051_v53, %v2110_v60  ;;  %v2118_v51 = vshll.u32 %v4912_v29, %v2109_v55 }
 0x35d   :  { %v1962_v40 = vor.u32 %v1961_v3, %v1960_v30  ;;  %v1965_v5 = vshll.u32 %v1964_v11, 23  ;;  %v2121_v20 = vshll.u32 %v4913_v37, %v2109_v55  ;;  %v2125_v56 = vshrl.u32 %v5052_v14, %v2110_v60 }
 0x35e   :  { %v1868_v38 = vsel %vm1785_vm5, %v1867_v28, %v1866_v7  ;;  %vm1993_vm0 = vcmp.lt.s32.totalorder %v4328_v47, 0  ;;  %v2054_v42 = vshll.u32 %v2053_v1, 30  ;;  %v2114_v22 = vor.u32 %v2113_v49, %v2112_v52 }
 0x35f   :  { %v1871_v24 = vsel %vm4458_vm1, %v4318_v0, %v1868_v38  ;;  %v1966_v62 = vor.u32 4788187, %v1965_v5  ;;  %v2117_v50 = vor.u32 %v2116_v9, %v2115_v17  ;;  %v2120_v10 = vor.u32 %v2119_v23, %v2118_v51 }
 0x360   :  { %v2123_v34 = vor.u32 %v2122_v2, %v2121_v20  ;;  %v2124_v31 = vshll.u32 %v5051_v53, %v2109_v55  ;;  %vm1889_vm3 = vcmp.lt.s32.totalorder %v4320_v6, 0  ;;  %v1969_v44 = vcvt.s32.f32 %v1962_v40 }
 0x361   :  { %v1967_v39 = vand.u32 2147483647, %v1966_v62  ;;  %v4534_v43 = vsub.s32 %v2051_v19, %v2054_v42  ;;  %v2199_v61 = vand.u32 2147483647, %v4500_v21  ;;  %vm4539_vm9 = vcmp.le.f32.partialorder %v1991_v54, 0.7853982 }
 0x362   :  { %v2047_v8 = vadd.s32 %v4487_v57, %v4484_v63  ;;  %v2111_v26 = vshrl.u32 %v4917_v18, %v2110_v60  ;;  %v2126_v55 = vor.u32 %v2125_v56, %v2124_v31  ;;  %vm2127_vm2 = vcmp.lt.s32.totalorder %v4515_v48, 1 }
 0x363   :  { %v1970_v27 = vmul.f32 %v1969_v44, %v1967_v39  ;;  %v2057_v33 = vsub.s32 0, %v4534_v43  ;;  %v2077_v58 = vsub.s32 4, %v2053_v1  ;;  %vm2130_vm10 = vcmp.lt.s32.totalorder %v4515_v48, 4 }
 0x364   :  { %vm4551_vm5 = vcmp.le.f32.partialorder %v1887_v32, 0.7853982  ;;  %vm2129_vm4 = vcmp.lt.s32.totalorder %v4515_v48, 3  ;;  %v2132_v63 = vsel %vm2130_vm10, %v2120_v10, 2102212464  ;;  %v2135_v57 = vsel %vm2127_vm2, %v2114_v22, %v2117_v50 }
 0x365   :  { %v2136_v60 = vsel %vm2130_vm10, %v2123_v34, 920167782  ;;  %2762 = vcosq.f32 %v1871_v24  ;;  %v2582_v16 = vmin.u32 %v2057_v33, %v4534_v43  ;;  %vm2128_vm1 = vcmp.lt.s32.totalorder %v4515_v48, 2 }
 0x366   :  { %v2137_v25 = vsel %vm2129_vm4, %v2120_v10, %v2136_v60  ;;  %v1971_v15 = vxor.u32 2147483648, %v1970_v27  ;;  %v2139_v19 = vsel %vm2127_vm2, %v2117_v50, %v2120_v10  ;;  %v2140_v7 = vsel %vm2130_vm10, %v2126_v55, 1326507024 }
 0x367   :  { %v2138_v32 = vsel %vm2128_vm1, %v2135_v57, %v2137_v25  ;;  %v2059_v30 = vclz %v2582_v16  ;;  %v2131_v52 = vsel %vm2127_vm2, %v2111_v26, %v2114_v22  ;;  %v2133_v3 = vsel %vm2129_vm4, %v2117_v50, %v2132_v63 }
 0x368   :  { %v2141_v11 = vsel %vm2129_vm4, %v2123_v34, %v2140_v7  ;;  %v4568_v46 = vsel %vm1993_vm0, %v2077_v58, %v2053_v1  ;;  %v4573_v28 = vmul.u32.u64.low %v4512_v4, %v2138_v32  ;;  %v4574_v17 = vmul.u32.u64.high %v4512_v4, %v2138_v32, %v4573_v28 }
 0x369   :  { %v2142_v49 = vsel %vm2128_vm1, %v2139_v19, %v2141_v11  ;;  %2764 = vsinq.f32 %v1871_v24  ;;  %v2583_v9 = vadd.s32 4294967294, %v2059_v30  ;;  %v1972_v5 = vsel %vm1889_vm3, %v1971_v15, %v1970_v27 }
 0x36a   :  { %v4577_v23 = vmul.u32.u64.low %v4512_v4, %v2142_v49  ;;  %v4578_v40 = vmul.u32.u64.high %v4512_v4, %v2142_v49, %v4577_v23  ;;  %v2134_v1 = vsel %vm2128_vm1, %v2131_v52, %v2133_v3  ;;  %v2202_v2 = vand.u32 2139095040, %v4500_v21 }
 0x36b   :  { %v2206_v38 = vand.u32 8388607, %v2199_v61  ;;  %vm2584_vm14 = vcmp.lt.s32.totalorder %v2583_v9, 0  ;;  %v2080_v51 = vsel %vm4539_vm9, 0, %v4568_v46  ;;  %v2303_v20 = vand.u32 2147483647, %v4506_v41 }
 0x36c   :  { %v2306_v56 = vand.u32 2139095040, %v4506_v41  ;;  %v2062_v24 = vsel %vm2584_vm14, 0, %v2583_v9  ;;  %v2153_v62 = vadd.s32 1, %v4574_v17  ;;  %v2203_v42 = vshrl.u32 %v2202_v2, 23 }
 0x36d   :  { %v1973_v48 = vsub.s32 4, %v4451_v45  ;;  %v1975_v22 = vsel %vm4551_vm5, %v4320_v6, %v1972_v5  ;;  %v2063_v50 = vsub.s32 32, %v2062_v24  ;;  %v2067_v10 = vsub.s32 4294967266, %v2062_v24 }
 0x36e   :  { %v2150_v34 = vmul.u32 %v4512_v4, %v2134_v1  ;;  %v2064_v31 = vshll.u32 %v4534_v43, %v2062_v24  ;;  %vm2152_vm6 = vc.u32 %v4578_v40, %v4573_v28  ;;  %v2589_v39 = vadd.s32 4294967169, %v2203_v42 }
 0x36f   :  { %v2207_v44 = vor.u32 8388608, %v2206_v38  ;;  %v4600_v26 = vpop.eup %2762  ;;  %v2065_v55 = vshrl.u32 %v2047_v8, %v2063_v50  ;;  %v2068_v27 = vadd.s32 127, %v2067_v10  ;;  %v2154_v33 = vsel %vm2152_vm6, %v2153_v62, %v4574_v17 }
 0x370   :  { %v2307_v58 = vshrl.u32 %v2306_v56, 23  ;;  %v2155_v63 = vadd.s32 %v2154_v33, %v2150_v34  ;;  %v2209_v57 = vadd.s32 1, %v2589_v39  ;;  %v2310_v60 = vand.u32 8388607, %v2303_v20 }
 0x371   :  { %v1974_v4 = vsel %vm1889_vm3, %v1973_v48, %v4451_v45  ;;  %v2066_v43 = vor.u32 %v2065_v55, %v2064_v31  ;;  %v2069_v16 = vshll.u32 %v2068_v27, 23  ;;  %2766 = vcosq.f32 %v1975_v22 }
 0x372   :  { %v2593_v25 = vadd.s32 4294967169, %v2307_v58  ;;  %v1976_v15 = vsel %vm4551_vm5, 0, %v1974_v4  ;;  %v2156_v8 = vadd.s32 536870912, %v2155_v63  ;;  %vm2210_vm12 = vcmp.gt.s32.totalorder %v2209_v57, 0 }
 0x373   :  { %v2311_v32 = vor.u32 8388608, %v2310_v60  ;;  %v4610_v19 = vpop.eup %2764  ;;  %2768 = vsinq.f32 %v1975_v22  ;;  %v2070_v7 = vor.u32 4788187, %v2069_v16  ;;  %v4613_v30 = vadd.s32 %v4573_v28, %v4578_v40 }
 0x374   :  { %v2211_v52 = vsel %vm2210_vm12, %v2209_v57, 0  ;;  %v4615_v3 = vshrl.u32 %v2156_v8, 30  ;;  %v4617_v11 = vshll.u32 %v2207_v44, 8  ;;  %v1980_v49 = vadd.s32 3, %v1976_v15 }
 0x375   :  { %v2213_v45 = vand.u32 31, %v2211_v52  ;;  %v2071_v54 = vand.u32 2147483647, %v2070_v7  ;;  %v2073_v17 = vcvt.s32.f32 %v2066_v43  ;;  %v2212_v9 = vshrl.u32 %v2211_v52, 5 }
 0x376   :  { %v2313_v23 = vadd.s32 1, %v2593_v25  ;;  %v2158_v5 = vshll.u32 %v4615_v3, 30  ;;  %v4621_v38 = vshll.u32 %v2311_v32, 8  ;;  %vm2097_vm10 = vcmp.lt.s32.totalorder %v4334_v36, 0 }
 0x377   :  { %v2214_v1 = vsub.s32 32, %v2213_v45  ;;  %v2216_v2 = vshll.u32 %v4917_v18, %v2213_v45  ;;  %v2074_v28 = vmul.f32 %v2073_v17, %v2071_v54  ;;  %v2219_v40 = vshll.u32 %v4911_v59, %v2213_v45 }
 0x378   :  { %v2222_v56 = vshll.u32 %v4912_v29, %v2213_v45  ;;  %v2225_v24 = vshll.u32 %v4913_v37, %v2213_v45  ;;  %v4626_v62 = vsub.s32 %v2155_v63, %v2158_v5  ;;  %v2228_v22 = vshll.u32 %v5051_v53, %v2213_v45 }
 0x379   :  { %v2217_v42 = vshrl.u32 %v4911_v59, %v2214_v1  ;;  %v2220_v48 = vshrl.u32 %v4912_v29, %v2214_v1  ;;  %v2075_v50 = vxor.u32 2147483648, %v2074_v28  ;;  %v2223_v10 = vshrl.u32 %v4913_v37, %v2214_v1 }
 0x37a   :  { %v2226_v34 = vshrl.u32 %v5051_v53, %v2214_v1  ;;  %v2229_v31 = vshrl.u32 %v5052_v14, %v2214_v1  ;;  %v2161_v39 = vsub.s32 0, %v4626_v62  ;;  %vm2314_vm7 = vcmp.gt.s32.totalorder %v2313_v23, 0 }
 0x37b   :  { %v2218_v44 = vor.u32 %v2217_v42, %v2216_v2  ;;  %v2221_v55 = vor.u32 %v2220_v48, %v2219_v40  ;;  %v2224_v27 = vor.u32 %v2223_v10, %v2222_v56  ;;  %v4635_v63 = vand.u32 3, %v1980_v49  ;;  %v4637_v57 = vpop.eup %2766 }
 0x37c   :  { %v2227_v33 = vor.u32 %v2226_v34, %v2225_v24  ;;  %v2230_v58 = vor.u32 %v2229_v31, %v2228_v22  ;;  %v2076_v60 = vsel %vm1993_vm0, %v2075_v50, %v2074_v28  ;;  %v2586_v4 = vmin.u32 %v2161_v39, %v4626_v62 }
 0x37d   :  { %v2215_v43 = vshrl.u32 %v4917_v18, %v2214_v1  ;;  %vm2231_vm15 = vcmp.lt.s32.totalorder %v2212_v9, 1  ;;  %v4643_v16 = vpop.eup %2768  ;;  %vm2232_vm13 = vcmp.lt.s32.totalorder %v2212_v9, 2  ;;  %vm2233_vm8 = vcmp.lt.s32.totalorder %v2212_v9, 3 }
 0x37e   :  { %vm2234_vm11 = vcmp.lt.s32.totalorder %v2212_v9, 4  ;;  %v2239_v25 = vsel %vm2231_vm15, %v2218_v44, %v2221_v55  ;;  %v2163_v15 = vclz %v2586_v4  ;;  %v2243_v49 = vsel %vm2231_vm15, %v2221_v55, %v2224_v27 }
 0x37f   :  { %v2235_v8 = vsel %vm2231_vm15, %v2215_v43, %v2218_v44  ;;  %v2236_v32 = vsel %vm2234_vm11, %v2224_v27, 2102212464  ;;  %v2240_v7 = vsel %vm2234_vm11, %v2227_v33, 920167782  ;;  %v2244_v54 = vsel %vm2234_vm11, %v2230_v58, 1326507024 }
 0x380   :  { %v2237_v52 = vsel %vm2233_vm8, %v2221_v55, %v2236_v32  ;;  %v2241_v45 = vsel %vm2233_vm8, %v2224_v27, %v2240_v7  ;;  %v2079_v17 = vsel %vm4539_vm9, %v4328_v47, %v2076_v60  ;;  %v2587_v5 = vadd.s32 4294967294, %v2163_v15 }
 0x381   :  { %v2242_v1 = vsel %vm2232_vm13, %v2239_v25, %v2241_v45  ;;  %v2245_v2 = vsel %vm2233_vm8, %v2227_v33, %v2244_v54  ;;  %v2238_v28 = vsel %vm2232_vm13, %v2235_v8, %v2237_v52  ;;  %v2315_v22 = vsel %vm2314_vm7, %v2313_v23, 0 }
 0x382   :  { %v2246_v40 = vsel %vm2232_vm13, %v2243_v49, %v2245_v2  ;;  %v4652_v56 = vmul.u32.u64.low %v4617_v11, %v2242_v1  ;;  %v4653_v24 = vmul.u32.u64.high %v4617_v11, %v2242_v1, %v4652_v56  ;;  %vm2588_vm0 = vcmp.lt.s32.totalorder %v2587_v5, 0 }
 0x383   :  { %v4657_v42 = vmul.u32.u64.low %v4617_v11, %v2246_v40  ;;  %v4658_v48 = vmul.u32.u64.high %v4617_v11, %v2246_v40, %v4657_v42  ;;  %2770 = vcosq.f32 %v2079_v17  ;;  %v2166_v50 = vsel %vm2588_vm0, 0, %v2587_v5 }
 0x384   :  { %v2317_v10 = vand.u32 31, %v2315_v22  ;;  %v1984_v34 = vxor.u32 2147483648, %v4643_v16  ;;  %2772 = vsinq.f32 %v2079_v17  ;;  %v2167_v9 = vsub.s32 32, %v2166_v50 }
 0x385   :  { %v2171_v31 = vsub.s32 4294967266, %v2166_v50  ;;  %v2254_v39 = vmul.u32 %v4617_v11, %v2238_v28  ;;  %v2168_v44 = vshll.u32 %v4626_v62, %v2166_v50  ;;  %v2257_v55 = vadd.s32 1, %v4653_v24 }
 0x386   :  { %v2316_v27 = vshrl.u32 %v2315_v22, 5  ;;  %v2318_v33 = vsub.s32 32, %v2317_v10  ;;  %v2169_v58 = vshrl.u32 %v4613_v30, %v2167_v9  ;;  %vm2256_vm3 = vc.u32 %v4658_v48, %v4652_v56 }
 0x387   :  { %v2172_v60 = vadd.s32 127, %v2171_v31  ;;  %v2320_v23 = vshll.u32 %v4917_v18, %v2317_v10  ;;  %v2258_v4 = vsel %vm2256_vm3, %v2257_v55, %v4653_v24  ;;  %v2323_v11 = vshll.u32 %v4911_v59, %v2317_v10 }
 0x388   :  { %v2321_v43 = vshrl.u32 %v4911_v59, %v2318_v33  ;;  %v2324_v62 = vshrl.u32 %v4912_v29, %v2318_v33  ;;  %v2170_v25 = vor.u32 %v2169_v58, %v2168_v44  ;;  %v2259_v8 = vadd.s32 %v2258_v4, %v2254_v39 }
 0x389   :  { %v2173_v15 = vshll.u32 %v2172_v60, 23  ;;  %v2319_v32 = vshrl.u32 %v4917_v18, %v2318_v33  ;;  %vm1983_vm2 = vcmp.eq.s32.totalorder %v4635_v63, 0  ;;  %v2326_v52 = vshll.u32 %v4912_v29, %v2317_v10 }
 0x38a   :  { %v2322_v30 = vor.u32 %v2321_v43, %v2320_v23  ;;  %v2325_v7 = vor.u32 %v2324_v62, %v2323_v11  ;;  %v2327_v45 = vshrl.u32 %v4913_v37, %v2318_v33  ;;  %vm4680_vm5 = vcmp.le.f32.partialorder %v2095_v12, 0.7853982 }
 0x38b   :  { %v2174_v49 = vor.u32 4788187, %v2173_v15  ;;  %v2260_v54 = vadd.s32 536870912, %v2259_v8  ;;  %v2329_v18 = vshll.u32 %v4913_v37, %v2317_v10  ;;  %v2330_v17 = vshrl.u32 %v5051_v53, %v2318_v33 }
 0x38c   :  { %v2177_v5 = vcvt.s32.f32 %v2170_v25  ;;  %v2328_v1 = vor.u32 %v2327_v45, %v2326_v52  ;;  %v2332_v2 = vshll.u32 %v5051_v53, %v2317_v10  ;;  %v2333_v29 = vshrl.u32 %v5052_v14, %v2318_v33 }
 0x38d   :  { %v2175_v28 = vand.u32 2147483647, %v2174_v49  ;;  %v4688_v40 = vshrl.u32 %v2260_v54, 30  ;;  %v2331_v24 = vor.u32 %v2330_v17, %v2329_v18  ;;  %vm2335_vm4 = vcmp.lt.s32.totalorder %v2316_v27, 1  ;;  %v4690_v12 = vpop.eup %2770 }
 0x38e   :  { %v2334_v42 = vor.u32 %v2333_v29, %v2332_v2  ;;  %vm2337_vm1 = vcmp.lt.s32.totalorder %v2316_v27, 3  ;;  %vm2338_vm14 = vcmp.lt.s32.totalorder %v2316_v27, 4  ;;  %v2339_v22 = vsel %vm2335_vm4, %v2319_v32, %v2322_v30  ;;  %v4692_v37 = vpop.eup %2772 }
 0x38f   :  { %v2178_v50 = vmul.f32 %v2177_v5, %v2175_v28  ;;  %v2262_v9 = vshll.u32 %v4688_v40, 30  ;;  %v2340_v31 = vsel %vm2338_vm14, %v2328_v1, 2102212464  ;;  %v2343_v53 = vsel %vm2335_vm4, %v2322_v30, %v2325_v7 }
 0x390   :  { %v2341_v14 = vsel %vm2337_vm1, %v2325_v7, %v2340_v31  ;;  %v2344_v10 = vsel %vm2338_vm14, %v2331_v24, 920167782  ;;  %v2347_v39 = vsel %vm2335_vm4, %v2325_v7, %v2328_v1  ;;  %v2348_v44 = vsel %vm2338_vm14, %v2334_v42, 1326507024 }
 0x391   :  { %v2179_v55 = vxor.u32 2147483648, %v2178_v50  ;;  %v4696_v33 = vsub.s32 %v2259_v8, %v2262_v9  ;;  %vm2336_vm6 = vcmp.lt.s32.totalorder %v2316_v27, 2  ;;  %v2345_v58 = vsel %vm2337_vm1, %v2328_v1, %v2344_v10 }
 0x392   :  { %v2342_v60 = vsel %vm2336_vm6, %v2339_v22, %v2341_v14  ;;  %v2346_v23 = vsel %vm2336_vm6, %v2343_v53, %v2345_v58  ;;  %v2349_v4 = vsel %vm2337_vm1, %v2331_v24, %v2348_v44  ;;  %v1985_v43 = vsel %vm1983_vm2, %v4637_v57, %v1984_v34 }
 0x393   :  { %v2180_v11 = vsel %vm2097_vm10, %v2179_v55, %v2178_v50  ;;  %v2265_v62 = vsub.s32 0, %v4696_v33  ;;  %v2350_v25 = vsel %vm2336_vm6, %v2347_v39, %v2349_v4  ;;  %vm1986_vm12 = vcmp.eq.s32.totalorder %v4635_v63, 2 }
 0x394   :  { %v2183_v15 = vsel %vm4680_vm5, %v4334_v36, %v2180_v11  ;;  %v4713_v27 = vmul.u32.u64.low %v4621_v38, %v2350_v25  ;;  %v4714_v8 = vmul.u32.u64.high %v4621_v38, %v2350_v25, %v4713_v27  ;;  %v1987_v32 = vxor.u32 2147483648, %v4637_v57 }
 0x395   :  { %vm1875_vm7 = vweird.f32 %v4318_v0  ;;  %2774 = vcosq.f32 %v2183_v15  ;;  %v2590_v34 = vmin.u32 %v2265_v62, %v4696_v33  ;;  %v2181_v45 = vsub.s32 4, %v4615_v3 }
 0x396   :  { %v4720_v30 = vmul.u32.u64.low %v4621_v38, %v2346_v23  ;;  %v4721_v7 = vmul.u32.u64.high %v4621_v38, %v2346_v23, %v4720_v30  ;;  %2776 = vsinq.f32 %v2183_v15  ;;  %v1988_v52 = vsel %vm1986_vm12, %v1987_v32, %v4643_v16 }
 0x397   :  { %v1877_v49 = vand.u32 3, %v4508_v35  ;;  %v2084_v57 = vadd.s32 3, %v2080_v51  ;;  %v2267_v54 = vclz %v2590_v34  ;;  %v1880_v18 = vxor.u32 2147483648, %v4610_v19 }
 0x398   :  { %v1883_v17 = vxor.u32 2147483648, %v4600_v26  ;;  %v2358_v5 = vmul.u32 %v4621_v38, %v2342_v60  ;;  %vm2360_vm15 = vc.u32 %v4714_v8, %v4720_v30  ;;  %vm1982_vm13 = vcmp.lt.s32.totalorder %v4635_v63, 2 }
 0x399   :  { %v2182_v35 = vsel %vm2097_vm10, %v2181_v45, %v4615_v3  ;;  %v2591_v13 = vadd.s32 4294967294, %v2267_v54  ;;  %v2361_v46 = vadd.s32 1, %v4721_v7  ;;  %v1989_v51 = vsel %vm1982_vm13, %v1985_v43, %v1988_v52 }
 0x39a   :  { %v2184_v16 = vsel %vm4680_vm5, 0, %v2182_v35  ;;  %vm1878_vm9 = vcmp.lt.s32.totalorder %v1877_v49, 2  ;;  %vm1879_vm8 = vcmp.eq.s32.totalorder %v1877_v49, 0  ;;  %vm1882_vm11 = vcmp.eq.s32.totalorder %v1877_v49, 2 }
 0x39b   :  { %v2188_v1 = vadd.s32 3, %v2184_v16  ;;  %vm2592_vm0 = vcmp.lt.s32.totalorder %v2591_v13, 0  ;;  %v2362_v38 = vsel %vm2360_vm15, %v2361_v46, %v4721_v7  ;;  %v1881_v63 = vsel %vm1879_vm8, %v4600_v26, %v1880_v18 }
 0x39c   :  { %v1884_v2 = vsel %vm1882_vm11, %v1883_v17, %v4610_v19  ;;  %v2270_v29 = vsel %vm2592_vm0, 0, %v2591_v13  ;;  %v2363_v3 = vadd.s32 %v2362_v38, %v2358_v5  ;;  %vm1979_vm3 = vweird.f32 %v4320_v6 }
 0x39d   :  { %v2189_v28 = vand.u32 3, %v2188_v1  ;;  %v1885_v24 = vsel %vm1878_vm9, %v1881_v63, %v1884_v2  ;;  %v2271_v42 = vsub.s32 32, %v2270_v29  ;;  %v2275_v22 = vsub.s32 4294967266, %v2270_v29 }
 0x39e   :  { %v1886_v59 = vsel %vm1875_vm7, nan, %v1885_v24  ;;  %v2255_v50 = vadd.s32 %v4652_v56, %v4658_v48  ;;  %v2364_v9 = vadd.s32 536870912, %v2363_v3  ;;  %v1990_v31 = vsel %vm1979_vm3, nan, %v1989_v51 }
 0x39f   :  { %vm2187_vm2 = vweird.f32 %v4334_v36  ;;  %v2775_v26 = vpop.eup %2774  ;;  %v2272_v19 = vshll.u32 %v4696_v33, %v2270_v29  ;;  %v2276_v53 = vadd.s32 127, %v2275_v22  ;;  %v2085_v14 = vand.u32 3, %v2084_v57 }
 0x3a0   :  { %v2088_v10 = vxor.u32 2147483648, %v4692_v37  ;;  %v2777_v39 = vpop.eup %2776  ;;  %v4754_v44 = vshrl.u32 %v2364_v9, 30  ;;  %vm2190_vm10 = vcmp.lt.s32.totalorder %v2189_v28, 2  ;;  %v2195_v0 = vxor.u32 2147483648, %v2775_v26 }
 0x3a1   :  { %v2091_v6 = vxor.u32 2147483648, %v4690_v12  ;;  %v2273_v55 = vshrl.u32 %v2255_v50, %v2271_v42  ;;  %v2277_v56 = vshll.u32 %v2276_v53, 23  ;;  %v2192_v48 = vxor.u32 2147483648, %v2777_v39 }
 0x3a2   :  { %vm2194_vm5 = vcmp.eq.s32.totalorder %v2189_v28, 2  ;;  %v2366_v58 = vshll.u32 %v4754_v44, 30  ;;  %vm2191_vm4 = vcmp.eq.s32.totalorder %v2189_v28, 0  ;;  %vm2087_vm1 = vcmp.eq.s32.totalorder %v2085_v14, 0 }
 0x3a3   :  { %v2196_v60 = vsel %vm2194_vm5, %v2195_v0, %v2777_v39  ;;  %v2278_v33 = vor.u32 4788187, %v2277_v56  ;;  %v2193_v23 = vsel %vm2191_vm4, %v2775_v26, %v2192_v48  ;;  %v2089_v4 = vsel %vm2087_vm1, %v4690_v12, %v2088_v10 }
 0x3a4   :  { %vm2090_vm14 = vcmp.eq.s32.totalorder %v2085_v14, 2  ;;  %v2367_v43 = vsub.s32 %v2363_v3, %v2366_v58  ;;  %v2197_v11 = vsel %vm2190_vm10, %v2193_v23, %v2196_v60  ;;  %vm2086_vm6 = vcmp.lt.s32.totalorder %v2085_v14, 2 }
 0x3a5   :  { %v2092_v62 = vsel %vm2090_vm14, %v2091_v6, %v4692_v37  ;;  %v2274_v25 = vor.u32 %v2273_v55, %v2272_v19  ;;  %v2198_v15 = vsel %vm2187_vm2, nan, %v2197_v11  ;;  %vm2083_vm12 = vweird.f32 %v4328_v47  ;;  %v2412_v11 = vpop.permute.xlu0 %2411 }
 0x3a6   :  { %v2093_v27 = vsel %vm2086_vm6, %v2089_v4, %v2092_v62  ;;  %v2369_v32 = vsub.s32 0, %v2367_v43  ;;  %v2612_v34 = vpack.c.bf16 %v2198_v15, %v1990_v31  ;;  %v2279_v52 = vand.u32 2147483647, %v2278_v33  ;;  %v2407_v4 = vld [vmem:[%s4804_s5] sm:$0x7] }
 0x3a7   :  { %v2094_v7 = vsel %vm2083_vm12, nan, %v2093_v27  ;;  %v2281_v49 = vcvt.s32.f32 %v2274_v25  ;;  %v2359_v36 = vadd.s32 %v4720_v30, %v4714_v8  ;;  %vm2201_vm15 = vcmp.lt.s32.totalorder %v4500_v21, 0 }
 0x3a8   :  { %v2614_v45 = vpack.c.bf16 %v2094_v7, %v1886_v59  ;;  %v2594_v12 = vmin.u32 %v2369_v32, %v2367_v43  ;;  %2613 = vmatprep.subr.bf16.mxu1 %v2612_v34  ;;  %vm4771_vm13 = vcmp.le.f32.partialorder %v2199_v61, 0.7853982  ;;  %v2285_v29 = vsub.s32 4, %v4688_v40 }
 0x3a9   :  { %v2282_v54 = vmul.f32 %v2281_v49, %v2279_v52  ;;  %v2389_v28 = vsub.s32 4, %v4754_v44  ;;  %vm2305_vm9 = vcmp.lt.s32.totalorder %v4506_v41, 0  ;;  %vm2304_vm8 = vcmp.le.f32.partialorder %v2303_v20, 0.7853982 }
 0x3aa   :  { %2615 = vmatpush1.bf16.msra.mxu1 %v2614_v45  ;;  %v2371_v57 = vclz %v2594_v12  ;;  %v2286_v61 = vsel %vm2201_vm15, %v2285_v29, %v4688_v40  ;;  %vm2418_vm4 = vcmask 1043456   ;;  %vm2395_vm1 = vweird.f32 %v4506_v41 }
 0x3ab   :  { %v2283_v37 = vxor.u32 2147483648, %v2282_v54  ;;  %v2390_v22 = vsel %vm2305_vm9, %v2389_v28, %v4754_v44  ;;  %v2288_v50 = vsel %vm4771_vm13, 0, %v2286_v61  ;;  %vm2291_vm14 = vweird.f32 %v4500_v21 }
 0x3ac   :  { %v2595_v18 = vadd.s32 4294967294, %v2371_v57  ;;  %v2392_v9 = vsel %vm2304_vm8, 0, %v2390_v22  ;;  %v2292_v31 = vadd.s32 3, %v2288_v50  ;;  %vm2414_vm6 = vcmask 162816  }
 0x3ad   :  { %v2284_v51 = vsel %vm2201_vm15, %v2283_v37, %v2282_v54  ;;  %v2396_v40 = vadd.s32 3, %v2392_v9 }
 0x3ae   :  { %vm2596_vm7 = vcmp.lt.s32.totalorder %v2595_v18, 0  ;;  %v2287_v8 = vsel %vm4771_vm13, %v4500_v21, %v2284_v51  ;;  %v2293_v53 = vand.u32 3, %v2292_v31 }
 0x3af   :  { %v2374_v17 = vsel %vm2596_vm7, 0, %v2595_v18  ;;  %2778 = vcosq.f32 %v2287_v8  ;;  %v2397_v39 = vand.u32 3, %v2396_v40 }
 0x3b0   :  { %v2375_v47 = vsub.s32 32, %v2374_v17  ;;  %v2379_v5 = vsub.s32 4294967266, %v2374_v17  ;;  %v2376_v35 = vshll.u32 %v2367_v43, %v2374_v17  ;;  %2780 = vsinq.f32 %v2287_v8 }
 0x3b1   :  { %vm2295_vm11 = vcmp.eq.s32.totalorder %v2293_v53, 0  ;;  %vm2298_vm0 = vcmp.eq.s32.totalorder %v2293_v53, 2  ;;  %vm2402_vm3 = vcmp.eq.s32.totalorder %v2397_v39, 2  ;;  %vm2399_vm2 = vcmp.eq.s32.totalorder %v2397_v39, 0 }
 0x3b2   :  { %v2377_v13 = vshrl.u32 %v2359_v36, %v2375_v47  ;;  %v2380_v46 = vadd.s32 127, %v2379_v5  ;;  %vm2294_vm10 = vcmp.lt.s32.totalorder %v2293_v53, 2  ;;  %vm2398_vm5 = vcmp.lt.s32.totalorder %v2397_v39, 2 }
 0x3b4   :  { %v2378_v16 = vor.u32 %v2377_v13, %v2376_v35  ;;  %v2381_v1 = vshll.u32 %v2380_v46, 23 }
 0x3b6   :  { %v2382_v30 = vor.u32 4788187, %v2381_v1  ;;  %v2385_v2 = vcvt.s32.f32 %v2378_v16 }
 0x3b8   :  { %v2383_v63 = vand.u32 2147483647, %v2382_v30 }
 0x3b9   :  { %v2779_v26 = vpop.eup %2778 }
 0x3ba   :  { %v2386_v3 = vmul.f32 %v2385_v2, %v2383_v63  ;;  %v2781_v19 = vpop.eup %2780  ;;  %v2299_v10 = vxor.u32 2147483648, %v2779_v26 }
 0x3bb   :  { %v2296_v14 = vxor.u32 2147483648, %v2781_v19 }
 0x3bc   :  { %v2387_v24 = vxor.u32 2147483648, %v2386_v3  ;;  %v2300_v55 = vsel %vm2298_vm0, %v2299_v10, %v2781_v19 }
 0x3bd   :  { %v2297_v6 = vsel %vm2295_vm11, %v2779_v26, %v2296_v14 }
 0x3be   :  { %v2388_v42 = vsel %vm2305_vm9, %v2387_v24, %v2386_v3  ;;  %v2301_v60 = vsel %vm2294_vm10, %v2297_v6, %v2300_v55 }
 0x3bf   :  { %v2391_v59 = vsel %vm2304_vm8, %v4506_v41, %v2388_v42  ;;  %v2302_v43 = vsel %vm2291_vm14, nan, %v2301_v60 }
 0x3c0   :  { %2782 = vcosq.f32 %v2391_v59 }
 0x3c1   :  { %2784 = vsinq.f32 %v2391_v59 }
 0x3ca   :  { %v2783_v20 = vpop.eup %2782 }
 0x3cb   :  { %v2785_v44 = vpop.eup %2784  ;;  %v2403_v0 = vxor.u32 2147483648, %v2783_v20 }
 0x3cc   :  { %v2400_v56 = vxor.u32 2147483648, %v2785_v44 }
 0x3cd   :  { %v2404_v48 = vsel %vm2402_vm3, %v2403_v0, %v2785_v44 }
 0x3ce   :  { %v2401_v58 = vsel %vm2399_vm2, %v2783_v20, %v2400_v56 }
 0x3cf   :  { %v2405_v33 = vsel %vm2398_vm5, %v2401_v58, %v2404_v48 }
 0x3d0   :  { %v2406_v23 = vsel %vm2395_vm1, nan, %v2405_v33 }
 0x3d1   :  { %2597 = vmatprep.subr.msk.mxu1 %vm2418_vm4, %v2406_v23 }
 0x3d2   :  { %2598 = vmatpush1.msk.msra.mxu1 %vm2418_vm4, %v2302_v43 }
 0x3d3   :  { %2599 = vmatmul.mubr.msk.f32.vlgmr.msra.gmra.mrb[6].mxu1 %vm2414_vm6, %v2407_v4 }
 0x4a6   :  { %v2491_v62 = vpop.f32.mrb[6].mxu1 }
 0x4a7   :  { %v2492_v25 = vadd.f32 %v2491_v62, %v2412_v11  ;;  %v2493_v15 = vpop.f32.mrb[7].mxu1 }
 0x4a8   :  { %v2494_v27 = vadd.f32 %v2493_v15, %v2412_v11 }
 0x4aa   :  { %v2498_v32 = vcombine.low %v2492_v25, %v2494_v27 }
 0x4ac   :  { %2500 = vst [vmem:[%s4805_s7] sm:$0x77] %v2498_v32 }

</bundles_post_ra>
